<compile_context>
chip_gen: v6e
topology: v6e:2x2x1
jax: 0.10.0
libtpu: 0.0.40
codegen_flags: <defaults>
</compile_context>

<pallas_src>
import functools

import jax
import jax.numpy as jnp
from jax.experimental import pallas as pl
from jax.experimental.pallas import tpu as pltpu


def _gelu_new(x):
    # T5 "gelu_new" (tanh approximation), matches HF ACT2FN["gelu_new"].
    c = jnp.sqrt(2.0 / jnp.pi).astype(x.dtype)
    return 0.5 * x * (1.0 + jnp.tanh(c * (x + 0.044715 * x * x * x)))


def _round_up(x, m):
    return (x + m - 1) // m * m


def _pick_ff_tile(d_ff, pref):
    for t in (pref, 512, 256, 128):
        if t <= d_ff and d_ff % t == 0:
            return t
    return d_ff  # unreachable after prepare_params (d_ff padded to 256-multiple)


def _vmem_capacity_bytes():
    # Physical VMEM per core (v5e/v6e: 128 MiB, v7x: 64 MiB). Conservative
    # fallback if the query is unavailable.
    try:
        return int(pltpu.get_tpu_info().vmem_capacity_bytes)
    except Exception:
        return 64 << 20


def prepare_params(params, *, compute_dtype=jnp.bfloat16, ff_multiple=256):
    """One-time (outside-jit) preprocessing: cast to compute dtype, pad d_ff to a
    multiple of `ff_multiple`, build the lane-padded fused LoRA-A matrix and the
    lane-aligned zero-padded LoRA-B matrices."""
    cd = compute_dtype
    wi0 = jnp.asarray(params["wi_0"], cd)
    wi1 = jnp.asarray(params["wi_1"], cd)
    wo = jnp.asarray(params["wo"], cd)
    a0 = jnp.asarray(params["lora_a_wi_0"], cd)
    a1 = jnp.asarray(params["lora_a_wi_1"], cd)
    b0 = jnp.asarray(params["lora_b_wi_0"], cd)
    b1 = jnp.asarray(params["lora_b_wi_1"], cd)
    awo = jnp.asarray(params["lora_a_wo"], cd)
    bwo = jnp.asarray(params["lora_b_wo"], cd)

    d_model, d_ff = wi0.shape
    r = a0.shape[1]

    # Zero-pad d_ff so a (D, tn)/(tn, D) streamed-chunk structure is always legal
    # (zero Wi columns -> gelu(0)*0 = 0 contribution; zero Wo/Awo rows contribute 0).
    d_ffp = _round_up(d_ff, ff_multiple)
    pf = d_ffp - d_ff
    if pf:
        wi0 = jnp.pad(wi0, ((0, 0), (0, pf)))
        wi1 = jnp.pad(wi1, ((0, 0), (0, pf)))
        wo = jnp.pad(wo, ((0, pf), (0, 0)))
        b0 = jnp.pad(b0, ((0, 0), (0, pf)))
        b1 = jnp.pad(b1, ((0, 0), (0, pf)))
        awo = jnp.pad(awo, ((0, pf), (0, 0)))

    # Lane-dense fused LoRA-A: columns [0:r] = A0, [r:2r] = A1, rest zero.
    rp = max(128, _round_up(2 * r, 128))
    a_cat = jnp.zeros((d_model, rp), cd)
    a_cat = a_cat.at[:, :r].set(a0).at[:, r:2 * r].set(a1)
    # Matching row-padded LoRA-B blocks so (x@[A0|A1|0]) @ B_pad == (x@Ai) @ Bi.
    b0_pad = jnp.zeros((rp, d_ffp), cd).at[:r, :].set(b0)
    b1_pad = jnp.zeros((rp, d_ffp), cd).at[r:2 * r, :].set(b1)

    return {"wi_0": wi0, "wi_1": wi1, "wo": wo, "a_cat": a_cat,
            "b0_pad": b0_pad, "b1_pad": b1_pad, "a_wo": awo, "b_wo": bwo}


def _ffn_kernel(x_ref, wi0_ref, wi1_ref, wo_ref,
                a_cat_ref, b0_ref, b1_ref, awo_ref, bwo_ref,
                o_ref,
                xa_sc, acc_sc, lora_sc):
    j = pl.program_id(1)
    nj = pl.num_programs(1)

    @pl.when(j == 0)
    def _init():
        # One fused, lane-dense x @ [A0 | A1 | 0] per row tile.
        xa = jnp.dot(x_ref[...], a_cat_ref[...],
                     preferred_element_type=jnp.float32)
        xa_sc[...] = xa.astype(xa_sc.dtype)
        acc_sc[...] = jnp.zeros_like(acc_sc)
        lora_sc[...] = jnp.zeros_like(lora_sc)

    x = x_ref[...]
    xa = xa_sc[...]

    # wi_0 / wi_1 branches for this d_ff chunk (+ LoRA), f32 accumulation.
    h0 = jnp.dot(x, wi0_ref[...], preferred_element_type=jnp.float32)
    h0 = h0 + jnp.dot(xa, b0_ref[...], preferred_element_type=jnp.float32)
    h1 = jnp.dot(x, wi1_ref[...], preferred_element_type=jnp.float32)
    h1 = h1 + jnp.dot(xa, b1_ref[...], preferred_element_type=jnp.float32)

    # Gated GELU in f32 (v5e VPU/EUP have no bf16 path). Dropout = identity (eval).
    h = _gelu_new(h0) * h1
    hb = h.astype(wo_ref.dtype)

    # Stream wo / lora_a_wo chunks; accumulate into persistent f32 VMEM scratch.
    acc_sc[...] += jnp.dot(hb, wo_ref[...], preferred_element_type=jnp.float32)
    lora_sc[...] += jnp.dot(hb, awo_ref[...], preferred_element_type=jnp.float32)

    @pl.when(j == nj - 1)
    def _finalize():
        # Keep the accumulated (h @ Awo) in f32 for the final Bwo contraction
        # (once per M tile, cost negligible; avoids an extra rounding step).
        out = acc_sc[...] + jnp.dot(lora_sc[...],
                                    bwo_ref[...].astype(jnp.float32),
                                    preferred_element_type=jnp.float32)
        o_ref[...] = out.astype(o_ref.dtype)


@functools.partial(jax.jit, static_argnames=("tile_m", "tile_ff"))
def lora_t5_feedforward(hidden_states, prep, *, tile_m=512, tile_ff=512):
    """hidden_states: [B, S, d_model]. prep: output of prepare_params()."""
    B, S, D = hidden_states.shape
    M = B * S
    out_dtype = hidden_states.dtype

    wi0, wi1, wo = prep["wi_0"], prep["wi_1"], prep["wo"]
    a_cat, b0p, b1p = prep["a_cat"], prep["b0_pad"], prep["b1_pad"]
    awo, bwo = prep["a_wo"], prep["b_wo"]
    cd = wi0.dtype
    d_ffp = wi0.shape[1]
    rp = a_cat.shape[1]
    r = bwo.shape[0]

    bpe = jnp.dtype(cd).itemsize
    bpe_o = jnp.dtype(out_dtype).itemsize
    Dp = _round_up(D, 128)

    # ---- tile selection, clamped to the physical VMEM of this generation ----
    cap = _vmem_capacity_bytes()
    budget = cap - (6 << 20)          # headroom for Mosaic internal scratch

    def est_vmem(tm_, tn_):
        blk = (tm_ * Dp * bpe                    # x tile
               + 2 * Dp * tn_ * bpe              # wi_0, wi_1 chunks
               + tn_ * Dp * bpe                  # wo chunk
               + Dp * rp * bpe                   # [A0 | A1 | 0]
               + 2 * rp * tn_ * bpe              # B0_pad, B1_pad chunks
               + tn_ * 128 * bpe                 # A_wo chunk (lane padded)
               + max(r, 16) * Dp * bpe           # B_wo
               + tm_ * Dp * bpe_o)               # output block
        scratch = tm_ * rp * bpe + tm_ * Dp * 4 + tm_ * 128 * 4
        return 2 * blk + scratch                 # double-buffered blocks

    tn = _pick_ff_tile(d_ffp, tile_ff)
    tm = min(_round_up(tile_m, 128), _round_up(M, 128))
    while est_vmem(tm, tn) > budget:
        if tm > 256:
            tm //= 2
        elif tn > 256:
            tn //= 2
        elif tm > 128:
            tm //= 2
        elif tn > 128:
            tn //= 2
        else:
            break

    Mp = _round_up(M, tm)
    grid = (Mp // tm, d_ffp // tn)

    # Per-call activation prep only (weights were prepared outside jit).
    x2d = hidden_states.reshape(M, D).astype(cd)
    if Mp != M:
        x2d = jnp.pad(x2d, ((0, Mp - M), (0, 0)))

    # Advisory cost estimate for XLA scheduling around the custom call.
    w_elems = 3 * D * d_ffp + D * rp + 2 * rp * d_ffp + d_ffp * r + r * D
    cost = pl.CostEstimate(
        flops=int(2 * M * w_elems),
        transcendentals=int(M * d_ffp),
        bytes_accessed=int(Mp * D * (bpe + bpe_o) + grid[0] * bpe * w_elems))

    vmem_limit = int(min(cap, max(est_vmem(tm, tn) + (4 << 20), 32 << 20)))

    out2d = pl.pallas_call(
        _ffn_kernel,
        out_shape=jax.ShapeDtypeStruct((Mp, D), out_dtype),
        grid_spec=pltpu.PrefetchScalarGridSpec(
            num_scalar_prefetch=0,
            grid=grid,
            in_specs=[
                pl.BlockSpec((tm, D), lambda i, j: (i, 0)),     # x tile
                pl.BlockSpec((D, tn), lambda i, j: (0, j)),     # wi_0 chunk
                pl.BlockSpec((D, tn), lambda i, j: (0, j)),     # wi_1 chunk
                pl.BlockSpec((tn, D), lambda i, j: (j, 0)),     # wo chunk
                pl.BlockSpec((D, rp), lambda i, j: (0, 0)),     # [A0 | A1 | 0]
                pl.BlockSpec((rp, tn), lambda i, j: (0, j)),    # B0_pad chunk
                pl.BlockSpec((rp, tn), lambda i, j: (0, j)),    # B1_pad chunk
                pl.BlockSpec((tn, r), lambda i, j: (j, 0)),     # A_wo chunk
                pl.BlockSpec((r, D), lambda i, j: (0, 0)),      # B_wo
            ],
            out_specs=pl.BlockSpec((tm, D), lambda i, j: (i, 0)),
            scratch_shapes=[
                pltpu.VMEM((tm, rp), cd),            # x @ [A0|A1|0] (lane dense)
                pltpu.VMEM((tm, D), jnp.float32),    # h @ Wo accumulator
                pltpu.VMEM((tm, r), jnp.float32),    # h @ A_wo accumulator (f32)
            ],
        ),
        compiler_params=pltpu.CompilerParams(
            dimension_semantics=("parallel", "arbitrary"),
            vmem_limit_bytes=vmem_limit),
        cost_estimate=cost,
    )(x2d, wi0, wi1, wo, a_cat, b0p, b1p, awo, bwo)

    return out2d[:M].reshape(B, S, D)


def _reference(x2d, params):
    h0 = x2d @ params["wi_0"] + (x2d @ params["lora_a_wi_0"]) @ params["lora_b_wi_0"]
    h_gelu = _gelu_new(h0)
    h1 = x2d @ params["wi_1"] + (x2d @ params["lora_a_wi_1"]) @ params["lora_b_wi_1"]
    h = h_gelu * h1
    return h @ params["wo"] + (h @ params["lora_a_wo"]) @ params["lora_b_wo"]


def make_params(key, d_model, d_ff, r, dtype=jnp.float32):
    ks = jax.random.split(key, 9)
    s = lambda fan_in: 1.0 / jnp.sqrt(fan_in)
    # NOTE: the PyTorch module zero-inits the LoRA "B" matrices so LoRA starts as a
    # no-op; small non-zero values are used here so the LoRA path is exercised.
    return {
        "wi_0":        (jax.random.normal(ks[0], (d_model, d_ff)) * s(d_model)).astype(dtype),
        "wi_1":        (jax.random.normal(ks[1], (d_model, d_ff)) * s(d_model)).astype(dtype),
        "wo":          (jax.random.normal(ks[2], (d_ff, d_model)) * s(d_ff)).astype(dtype),
        "lora_a_wi_0": (jax.random.normal(ks[3], (d_model, r)) * s(d_model)).astype(dtype),
        "lora_b_wi_0": (jax.random.normal(ks[4], (r, d_ff)) * 0.01).astype(dtype),
        "lora_a_wi_1": (jax.random.normal(ks[5], (d_model, r)) * s(d_model)).astype(dtype),
        "lora_b_wi_1": (jax.random.normal(ks[6], (r, d_ff)) * 0.01).astype(dtype),
        "lora_a_wo":   (jax.random.normal(ks[7], (d_ff, r)) * s(d_ff)).astype(dtype),
        "lora_b_wo":   (jax.random.normal(ks[8], (r, d_model)) * 0.01).astype(dtype),
    }


if __name__ == "__main__":
    # Small shapes that still exercise a multi-tile grid and a multi-step f32
    # accumulation: grid = (2 M-tiles, 4 d_ff-steps).
    B, S, d_model, d_ff, r = 2, 128, 256, 1024, 8
    key = jax.random.PRNGKey(0)
    kx, kp = jax.random.split(key)
    x = jax.random.normal(kx, (B, S, d_model), dtype=jnp.float32)
    params = make_params(kp, d_model, d_ff, r)

    # One-time weight preprocessing (hoisted out of the jitted per-call path).
    prep = prepare_params(params)

    out = lora_t5_feedforward(x, prep, tile_m=128, tile_ff=256)
    out = jax.block_until_ready(out)
    assert out.shape == (B, S, d_model)

    # Reference computed from the same bf16-rounded operands the kernel consumes
    # (remaining diff = bf16 rounding of the h intermediate).
    cast = lambda a: a.astype(jnp.bfloat16).astype(jnp.float32)
    ref = _reference(cast(x).reshape(B * S, d_model),
                     {k: cast(v) for k, v in params.items()}).reshape(B, S, d_model)
    assert jnp.allclose(out, ref, atol=5e-2, rtol=5e-2), "mismatch vs reference"
    print("KERNEL_OK")
</pallas_src>

<mosaic_0001>
module attributes {stable_mosaic.version = 11 : i64} {
  func.func @_ffn_kernel(%arg0: i32, %arg1: i32, %arg2: memref<128x256xbf16, #tpu.memory_space<vmem>>, %arg3: memref<256x256xbf16, #tpu.memory_space<vmem>>, %arg4: memref<256x256xbf16, #tpu.memory_space<vmem>>, %arg5: memref<256x256xbf16, #tpu.memory_space<vmem>>, %arg6: memref<256x128xbf16, #tpu.memory_space<vmem>>, %arg7: memref<128x256xbf16, #tpu.memory_space<vmem>>, %arg8: memref<128x256xbf16, #tpu.memory_space<vmem>>, %arg9: memref<256x8xbf16, #tpu.memory_space<vmem>>, %arg10: memref<8x256xbf16, #tpu.memory_space<vmem>>, %arg11: memref<128x256xf32, #tpu.memory_space<vmem>>, %arg12: memref<128x128xbf16, #tpu.memory_space<vmem>>, %arg13: memref<128x256xf32, #tpu.memory_space<vmem>>, %arg14: memref<128x8xf32, #tpu.memory_space<vmem>>) attributes {dimension_semantics = [#tpu.dimension_semantics<parallel>, #tpu.dimension_semantics<arbitrary>], iteration_bounds = array<i64: 2, 4>, scalar_prefetch = 0 : i64, scratch_operands = 3 : i64, tpu.core_type = #tpu.core_type<tc>, window_params = [{transform_indices = @transform_0, window_bounds = array<i64: 128, 256>}, {transform_indices = @transform_1, window_bounds = array<i64: 256, 256>}, {transform_indices = @transform_2, window_bounds = array<i64: 256, 256>}, {transform_indices = @transform_3, window_bounds = array<i64: 256, 256>}, {pipeline_mode = #tpu.pipeline_mode<synchronous>, transform_indices = @transform_4, window_bounds = array<i64: 256, 128>}, {transform_indices = @transform_5, window_bounds = array<i64: 128, 256>}, {transform_indices = @transform_6, window_bounds = array<i64: 128, 256>}, {transform_indices = @transform_7, window_bounds = array<i64: 256, 8>}, {pipeline_mode = #tpu.pipeline_mode<synchronous>, transform_indices = @transform_8, window_bounds = array<i64: 8, 256>}, {transform_indices = @transform_9, window_bounds = array<i64: 128, 256>}]} {
    %c0_i32 = arith.constant 0 : i32
    %0 = arith.cmpi eq, %arg1, %c0_i32 : i32
    %1 = arith.extui %0 : i1 to i32
    %c0_i32_0 = arith.constant 0 : i32
    %2 = arith.cmpi ne, %1, %c0_i32_0 : i32
    scf.if %2 {
      %c0_34 = arith.constant 0 : index
      %c0_35 = arith.constant 0 : index
      %44 = vector.load %arg2[%c0_34, %c0_35] : memref<128x256xbf16, #tpu.memory_space<vmem>>, vector<128x256xbf16>
      %c0_36 = arith.constant 0 : index
      %c0_37 = arith.constant 0 : index
      %45 = vector.load %arg6[%c0_36, %c0_37] : memref<256x128xbf16, #tpu.memory_space<vmem>>, vector<256x128xbf16>
      %cst_38 = arith.constant dense<0.000000e+00> : vector<128x128xf32>
      %46 = tpu.matmul %44, %45, %cst_38 {dimension_numbers = #tpu.dot_dimension_numbers<[1], [0], [0], [1], [0, 0, 1, 1], [], []>} : vector<128x256xbf16>, vector<256x128xbf16>, vector<128x128xf32> -> vector<128x128xf32>
      %47 = arith.truncf %46 : vector<128x128xf32> to vector<128x128xbf16>
      %c0_39 = arith.constant 0 : index
      %c0_40 = arith.constant 0 : index
      %48 = vector.load %arg12[%c0_39, %c0_40] : memref<128x128xbf16, #tpu.memory_space<vmem>>, vector<128x128xbf16>
      tpu.vector_store %arg12[%c0_39, %c0_40], %47 {strides = array<i32>} : memref<128x128xbf16, #tpu.memory_space<vmem>>, vector<128x128xbf16>,
      %cst_41 = arith.constant 0.000000e+00 : f32
      %49 = vector.broadcast %cst_41 : f32 to vector<128x256xf32>
      %c0_42 = arith.constant 0 : index
      %c0_43 = arith.constant 0 : index
      %50 = vector.load %arg13[%c0_42, %c0_43] : memref<128x256xf32, #tpu.memory_space<vmem>>, vector<128x256xf32>
      tpu.vector_store %arg13[%c0_42, %c0_43], %49 {strides = array<i32>} : memref<128x256xf32, #tpu.memory_space<vmem>>, vector<128x256xf32>,
      %cst_44 = arith.constant 0.000000e+00 : f32
      %51 = vector.broadcast %cst_44 : f32 to vector<128x8xf32>
      %c0_45 = arith.constant 0 : index
      %c0_46 = arith.constant 0 : index
      %52 = vector.load %arg14[%c0_45, %c0_46] : memref<128x8xf32, #tpu.memory_space<vmem>>, vector<128x8xf32>
      tpu.vector_store %arg14[%c0_45, %c0_46], %51 {strides = array<i32>} : memref<128x8xf32, #tpu.memory_space<vmem>>, vector<128x8xf32>,
    } else {
    }
    %c0 = arith.constant 0 : index
    %c0_1 = arith.constant 0 : index
    %3 = vector.load %arg2[%c0, %c0_1] : memref<128x256xbf16, #tpu.memory_space<vmem>>, vector<128x256xbf16>
    %c0_2 = arith.constant 0 : index
    %c0_3 = arith.constant 0 : index
    %4 = vector.load %arg12[%c0_2, %c0_3] : memref<128x128xbf16, #tpu.memory_space<vmem>>, vector<128x128xbf16>
    %c0_4 = arith.constant 0 : index
    %c0_5 = arith.constant 0 : index
    %5 = vector.load %arg3[%c0_4, %c0_5] : memref<256x256xbf16, #tpu.memory_space<vmem>>, vector<256x256xbf16>
    %cst = arith.constant dense<0.000000e+00> : vector<128x256xf32>
    %6 = tpu.matmul %3, %5, %cst {dimension_numbers = #tpu.dot_dimension_numbers<[1], [0], [0], [1], [0, 0, 1, 1], [], []>} : vector<128x256xbf16>, vector<256x256xbf16>, vector<128x256xf32> -> vector<128x256xf32>
    %c0_6 = arith.constant 0 : index
    %c0_7 = arith.constant 0 : index
    %7 = vector.load %arg7[%c0_6, %c0_7] : memref<128x256xbf16, #tpu.memory_space<vmem>>, vector<128x256xbf16>
    %cst_8 = arith.constant dense<0.000000e+00> : vector<128x256xf32>
    %8 = tpu.matmul %4, %7, %cst_8 {dimension_numbers = #tpu.dot_dimension_numbers<[1], [0], [0], [1], [0, 0, 1, 1], [], []>} : vector<128x128xbf16>, vector<128x256xbf16>, vector<128x256xf32> -> vector<128x256xf32>
    %9 = arith.addf %6, %8 : vector<128x256xf32>
    %c0_9 = arith.constant 0 : index
    %c0_10 = arith.constant 0 : index
    %10 = vector.load %arg4[%c0_9, %c0_10] : memref<256x256xbf16, #tpu.memory_space<vmem>>, vector<256x256xbf16>
    %cst_11 = arith.constant dense<0.000000e+00> : vector<128x256xf32>
    %11 = tpu.matmul %3, %10, %cst_11 {dimension_numbers = #tpu.dot_dimension_numbers<[1], [0], [0], [1], [0, 0, 1, 1], [], []>} : vector<128x256xbf16>, vector<256x256xbf16>, vector<128x256xf32> -> vector<128x256xf32>
    %c0_12 = arith.constant 0 : index
    %c0_13 = arith.constant 0 : index
    %12 = vector.load %arg8[%c0_12, %c0_13] : memref<128x256xbf16, #tpu.memory_space<vmem>>, vector<128x256xbf16>
    %cst_14 = arith.constant dense<0.000000e+00> : vector<128x256xf32>
    %13 = tpu.matmul %4, %12, %cst_14 {dimension_numbers = #tpu.dot_dimension_numbers<[1], [0], [0], [1], [0, 0, 1, 1], [], []>} : vector<128x128xbf16>, vector<128x256xbf16>, vector<128x256xf32> -> vector<128x256xf32>
    %14 = arith.addf %11, %13 : vector<128x256xf32>
    %cst_15 = arith.constant 0.636619746 : f32
    %15 = math.sqrt %cst_15 : f32
    %cst_16 = arith.constant 5.000000e-01 : f32
    %16 = vector.broadcast %cst_16 : f32 to vector<128x256xf32>
    %17 = arith.mulf %16, %9 : vector<128x256xf32>
    %cst_17 = arith.constant 4.471500e-02 : f32
    %18 = vector.broadcast %cst_17 : f32 to vector<128x256xf32>
    %19 = arith.mulf %18, %9 : vector<128x256xf32>
    %20 = arith.mulf %19, %9 : vector<128x256xf32>
    %21 = arith.mulf %20, %9 : vector<128x256xf32>
    %22 = arith.addf %9, %21 : vector<128x256xf32>
    %23 = vector.broadcast %15 : f32 to vector<128x256xf32>
    %24 = arith.mulf %23, %22 : vector<128x256xf32>
    %25 = math.tanh %24 : vector<128x256xf32>
    %cst_18 = arith.constant 1.000000e+00 : f32
    %26 = vector.broadcast %cst_18 : f32 to vector<128x256xf32>
    %27 = arith.addf %26, %25 : vector<128x256xf32>
    %28 = arith.mulf %17, %27 : vector<128x256xf32>
    %29 = arith.mulf %28, %14 : vector<128x256xf32>
    %30 = arith.truncf %29 : vector<128x256xf32> to vector<128x256xbf16>
    %c0_19 = arith.constant 0 : index
    %c0_20 = arith.constant 0 : index
    %31 = vector.load %arg13[%c0_19, %c0_20] : memref<128x256xf32, #tpu.memory_space<vmem>>, vector<128x256xf32>
    %c0_21 = arith.constant 0 : index
    %c0_22 = arith.constant 0 : index
    %32 = vector.load %arg5[%c0_21, %c0_22] : memref<256x256xbf16, #tpu.memory_space<vmem>>, vector<256x256xbf16>
    %cst_23 = arith.constant dense<0.000000e+00> : vector<128x256xf32>
    %33 = tpu.matmul %30, %32, %cst_23 {dimension_numbers = #tpu.dot_dimension_numbers<[1], [0], [0], [1], [0, 0, 1, 1], [], []>} : vector<128x256xbf16>, vector<256x256xbf16>, vector<128x256xf32> -> vector<128x256xf32>
    %34 = arith.addf %31, %33 : vector<128x256xf32>
    %c0_24 = arith.constant 0 : index
    %c0_25 = arith.constant 0 : index
    %35 = vector.load %arg13[%c0_24, %c0_25] : memref<128x256xf32, #tpu.memory_space<vmem>>, vector<128x256xf32>
    tpu.vector_store %arg13[%c0_24, %c0_25], %34 {strides = array<i32>} : memref<128x256xf32, #tpu.memory_space<vmem>>, vector<128x256xf32>,
    %c0_26 = arith.constant 0 : index
    %c0_27 = arith.constant 0 : index
    %36 = vector.load %arg14[%c0_26, %c0_27] : memref<128x8xf32, #tpu.memory_space<vmem>>, vector<128x8xf32>
    %c0_28 = arith.constant 0 : index
    %c0_29 = arith.constant 0 : index
    %37 = vector.load %arg9[%c0_28, %c0_29] : memref<256x8xbf16, #tpu.memory_space<vmem>>, vector<256x8xbf16>
    %cst_30 = arith.constant dense<0.000000e+00> : vector<128x8xf32>
    %38 = tpu.matmul %30, %37, %cst_30 {dimension_numbers = #tpu.dot_dimension_numbers<[1], [0], [0], [1], [0, 0, 1, 1], [], []>} : vector<128x256xbf16>, vector<256x8xbf16>, vector<128x8xf32> -> vector<128x8xf32>
    %39 = arith.addf %36, %38 : vector<128x8xf32>
    %c0_31 = arith.constant 0 : index
    %c0_32 = arith.constant 0 : index
    %40 = vector.load %arg14[%c0_31, %c0_32] : memref<128x8xf32, #tpu.memory_space<vmem>>, vector<128x8xf32>
    tpu.vector_store %arg14[%c0_31, %c0_32], %39 {strides = array<i32>} : memref<128x8xf32, #tpu.memory_space<vmem>>, vector<128x8xf32>,
    %c3_i32 = arith.constant 3 : i32
    %41 = arith.cmpi eq, %arg1, %c3_i32 : i32
    %42 = arith.extui %41 : i1 to i32
    %c0_i32_33 = arith.constant 0 : i32
    %43 = arith.cmpi ne, %42, %c0_i32_33 : i32
    scf.if %43 {
      %c0_34 = arith.constant 0 : index
      %c0_35 = arith.constant 0 : index
      %44 = vector.load %arg13[%c0_34, %c0_35] : memref<128x256xf32, #tpu.memory_space<vmem>>, vector<128x256xf32>
      %c0_36 = arith.constant 0 : index
      %c0_37 = arith.constant 0 : index
      %45 = vector.load %arg14[%c0_36, %c0_37] : memref<128x8xf32, #tpu.memory_space<vmem>>, vector<128x8xf32>
      %c0_38 = arith.constant 0 : index
      %c0_39 = arith.constant 0 : index
      %46 = vector.load %arg10[%c0_38, %c0_39] : memref<8x256xbf16, #tpu.memory_space<vmem>>, vector<8x256xbf16>
      %47 = arith.extf %46 : vector<8x256xbf16> to vector<8x256xf32>
      %cst_40 = arith.constant dense<0.000000e+00> : vector<128x256xf32>
      %48 = tpu.matmul %45, %47, %cst_40 {dimension_numbers = #tpu.dot_dimension_numbers<[1], [0], [0], [1], [0, 0, 1, 1], [], []>} : vector<128x8xf32>, vector<8x256xf32>, vector<128x256xf32> -> vector<128x256xf32>
      %49 = arith.addf %44, %48 : vector<128x256xf32>
      %c0_41 = arith.constant 0 : index
      %c0_42 = arith.constant 0 : index
      %50 = vector.load %arg11[%c0_41, %c0_42] : memref<128x256xf32, #tpu.memory_space<vmem>>, vector<128x256xf32>
      tpu.vector_store %arg11[%c0_41, %c0_42], %49 {strides = array<i32>} : memref<128x256xf32, #tpu.memory_space<vmem>>, vector<128x256xf32>,
    } else {
    }
    return
  }
  func.func @transform_0(%arg0: i32, %arg1: i32) -> (i32, i32) {
    %c0_i32 = arith.constant 0 : i32
    %c0_i32_0 = arith.constant 0 : i32
    return %arg0, %c0_i32 : i32, i32
  }
  func.func @transform_1(%arg0: i32, %arg1: i32) -> (i32, i32) {
    %c0_i32 = arith.constant 0 : i32
    %c0_i32_0 = arith.constant 0 : i32
    return %c0_i32, %arg1 : i32, i32
  }
  func.func @transform_2(%arg0: i32, %arg1: i32) -> (i32, i32) {
    %c0_i32 = arith.constant 0 : i32
    %c0_i32_0 = arith.constant 0 : i32
    return %c0_i32, %arg1 : i32, i32
  }
  func.func @transform_3(%arg0: i32, %arg1: i32) -> (i32, i32) {
    %c0_i32 = arith.constant 0 : i32
    %c0_i32_0 = arith.constant 0 : i32
    return %arg1, %c0_i32 : i32, i32
  }
  func.func @transform_4(%arg0: i32, %arg1: i32) -> (i32, i32) {
    %c0_i32 = arith.constant 0 : i32
    %c0_i32_0 = arith.constant 0 : i32
    %c0_i32_1 = arith.constant 0 : i32
    return %c0_i32, %c0_i32_0 : i32, i32
  }
  func.func @transform_5(%arg0: i32, %arg1: i32) -> (i32, i32) {
    %c0_i32 = arith.constant 0 : i32
    %c0_i32_0 = arith.constant 0 : i32
    return %c0_i32, %arg1 : i32, i32
  }
  func.func @transform_6(%arg0: i32, %arg1: i32) -> (i32, i32) {
    %c0_i32 = arith.constant 0 : i32
    %c0_i32_0 = arith.constant 0 : i32
    return %c0_i32, %arg1 : i32, i32
  }
  func.func @transform_7(%arg0: i32, %arg1: i32) -> (i32, i32) {
    %c0_i32 = arith.constant 0 : i32
    %c0_i32_0 = arith.constant 0 : i32
    return %arg1, %c0_i32 : i32, i32
  }
  func.func @transform_8(%arg0: i32, %arg1: i32) -> (i32, i32) {
    %c0_i32 = arith.constant 0 : i32
    %c0_i32_0 = arith.constant 0 : i32
    %c0_i32_1 = arith.constant 0 : i32
    return %c0_i32, %c0_i32_0 : i32, i32
  }
  func.func @transform_9(%arg0: i32, %arg1: i32) -> (i32, i32) {
    %c0_i32 = arith.constant 0 : i32
    %c0_i32_0 = arith.constant 0 : i32
    return %arg0, %c0_i32 : i32, i32
  }
}

</mosaic_0001>

<bundles_post_ra>
// kernel: lora_t5_feedforward.1
= control target key start
LH: loop header
LB: loop body
LE: loop exit
PB: predicated region body
PF: predicated region fallthrough
CT: control target
= control target key end

     0   :  { %s6538_s0 = inlined_call_operand.vmem [shape: bf16[256,256], index: 0, kind: input, shape index: {}]   ;;  %s6539_s1 = inlined_call_operand.vmem [shape: bf16[256,1024], index: 1, kind: input, shape index: {}]   ;;  %s6540_s2 = inlined_call_operand.hbm [shape: bf16[256,1024], index: 2, kind: input, shape index: {}]   ;;  %s6541_s3 = inlined_call_operand.hbm [shape: bf16[1024,256], index: 3, kind: input, shape index: {}]   ;;  %s6542_s4 = inlined_call_operand.vmem [shape: bf16[256,128], index: 4, kind: input, shape index: {}]   ;;  %s6543_s5 = inlined_call_operand.hbm [shape: bf16[128,1024], index: 5, kind: input, shape index: {}]   ;;  %s6544_s6 = inlined_call_operand.hbm [shape: bf16[128,1024], index: 6, kind: input, shape index: {}]   ;;  %s6545_s7 = inlined_call_operand.vmem [shape: bf16[1024,8], index: 7, kind: input, shape index: {}]   ;;  %s6546_s8 = inlined_call_operand.vmem [shape: bf16[8,256], index: 8, kind: input, shape index: {}]   ;;  %s6547_s9 = inlined_call_operand.hbm [shape: f32[256,256], index: 9, kind: output, shape index: {}]  }
   0x1   :  { %6577 = sst [smem:[#allocation59_spill]] %s6538_s0 }
   0x2   :  { %6578 = sst [smem:[#allocation60_spill]] %s6539_s1 }
   0x3   :  { %6579 = sst [smem:[#allocation61_spill]] %s6540_s2 }
   0x4   :  { %6580 = sst [smem:[#allocation62_spill]] %s6541_s3 }
   0x5   :  { %6581 = sst [smem:[#allocation63_spill]] %s6542_s4 }
   0x6   :  { %6582 = sst [smem:[#allocation64_spill]] %s6545_s7 }
   0x7   :  { %6583 = sst [smem:[#allocation65_spill]] %s6546_s8 }
   0x8   :  { %6584 = sst [smem:[#allocation66_spill]] %s6547_s9 }
   0x9   :  { %14 = vsyncpa [#allocation7], 0 }
   0xa   :  { %16 = vsyncpa [#allocation7 + $0x1], 0 }
   0xb   :  { %17 = vsyncpa [#allocation10], 0 }
   0xc   :  { %19 = vsyncpa [#allocation10 + $0x1], 0 }
   0xd   :  { %20 = vsyncpa [#allocation13], 0 }
   0xe   :  { %22 = vsyncpa [#allocation13 + $0x1], 0 }
   0xf   :  { %23 = vsyncpa [#allocation8], 0 }
  0x10   :  { %25 = vsyncpa [#allocation8 + $0x1], 0  ;;  %s5161_s30 = smov 0   ;;  %s5163_s10 = smov 0  }
  0x11   :  { %s5165_s11 = smov 0   ;;  %s5167_s12 = smov 0  }
  0x12   :  { %s5169_s13 = smov 0   ;;  %s5171_s14 = smov 0  }
  0x13   :  { %s5173_s15 = smov 0   ;;  %s5175_s16 = smov 0  }
  0x14   :  { %s5177_s17 = smov 0   ;;  %s5179_s18 = smov 0  }
  0x15   :  { %s5181_s19 = smov 0  }
  0x16 LB: > { %6585 = sst [smem:[#allocation19_spill]] %s5056_s30  ;;  %s5215_s20 = sadd.s32 4294967295, %s5096_s19   ;;  %s5096_s19 = sphi %s5181_s19, %s31_s19   ;;  %s5092_s18 = sphi %s5179_s18, %s6679_s18   ;;  %s5088_s17 = sphi %s5177_s17, %s6678_s17   ;;  %s5084_s16 = sphi %s5175_s16, %s6677_s16   ;;  %s5080_s15 = sphi %s5173_s15, %s6684_s15   ;;  %s5076_s14 = sphi %s5171_s14, %s6675_s14   ;;  %s5072_s13 = sphi %s5169_s13, %s6683_s13   ;;  %s5068_s12 = sphi %s5167_s12, %s6682_s12   ;;  %s5064_s11 = sphi %s5165_s11, %s6673_s11   ;;  %s5060_s10 = sphi %s5163_s10, %s6681_s10   ;;  %s5056_s30 = sphi %s5161_s30, %s6680_s30  }
  0x17   : > { %6586 = sst [smem:[#allocation20_spill]] %s5064_s11  ;;  %s3904_s21 = sadd.s32 4294967294, %s5096_s19  }
  0x18   : > { %6587 = sst [smem:[#allocation21_spill]] %s5076_s14  ;;  %s40_s22 = sadd.s32 1, %s5088_s17 }
  0x19   : > { %6588 = sst [smem:[#allocation22_spill]] %s5088_s17  ;;  %s43_s23 = sadd.s32 1, %s5092_s18 }
  0x1a   : > { %6589 = sst [smem:[#allocation23_spill]] %s5092_s18  ;;  %p41_p0 = scmp.ge.s32.totalorder %s40_s22, 4 }
  0x1b   : > { %s76_s24 = sadd.s32 1, %s5076_s14  ;;  %p83_p1 = scmp.ne.s32.totalorder %s5076_s14, %s5072_s13 }
  0x1c   : > { %p84_p2 = scmp.eq.s32.totalorder %s5096_s19, 0  ;;  %s6686_s22 = smov (%p41_p0, %s40_s22), 0 }
  0x1d   : > { %6590 = sst [smem:[#allocation24_spill]] %s6686_s22  ;;  %s6688_s23 = smov (!%p41_p0, %s43_s23), %s5092_s18 }
  0x1e   : > { %s73_s25 = ssub.s32 %s5088_s17, %s6686_s22  ;;  %p5229_p3 = por %p84_p2, %p83_p1 }
  0x1f   : > { %p45_p4 = scmp.ge.s32.totalorder %s6688_s23, 2  ;;  %p74_p5 = scmp.eq.s32.totalorder %s73_s25, 0 }
  0x20   : > { %p115_p6 = scmp.ne.s32.totalorder %s5072_s13, %s5068_s12  ;;  %p116_p7 = scmp.eq.s32.totalorder %s5215_s20, 0 }
  0x21   : > { %s6690_s23 = smov (%p45_p4, %s6688_s23), 0  ;;  %s274_s22 = sadd.s32 1, %s5064_s11 }
  0x22   : > { %6592 = sst [smem:[#allocation25_spill]] %s6690_s23  ;;  %p5240_p8 = por %p116_p7, %p115_p6 }
  0x23   : > { %s5238_s27 = scalar_select %p74_p5, %s5076_s14, %s76_s24  }
  0x24   : > { %s271_s29 = ssub.s32 %s5092_s18, %s6690_s23  ;;  %p284_p10 = scmp.ne.s32.totalorder %s5064_s11, %s5060_s10 }
  0x25   : > { %6593 = sst [smem:[#allocation26_spill]] %s5238_s27  ;;  %p272_p9 = scmp.eq.s32.totalorder %s271_s29, 0 }
  0x26   : > { %p285_p11 = scmp.eq.s32.totalorder %s5215_s20, 7  ;;  %p290_p13 = scmp.ne.s32.totalorder %s5060_s10, %s5056_s30 }
  0x27   : > { %s5251_s9 = scalar_select %p272_p9, %s5064_s11, %s274_s22  }
  0x28   : > { %p5253_p12 = por %p285_p11, %p284_p10  ;;  %p291_p0 = scmp.eq.s32.totalorder %s3904_s21, 7 }
  0x29   : > { %6595 = sst [smem:[#allocation27_spill]] %s5251_s9  ;;  %p3906_p2 = scmp.ge.s32.totalorder %s5096_s19, 8 }
  0x2a   : > { %s6596_s25 = scalar_select %p5253_p12, 1, 0 }
  0x2b   : > { %p5259_p1 = por %p291_p0, %p290_p13  ;;  %313 = sbr.rel (%p3906_p2) target bundleno = 148 (0x94), region = 24 }
  0x2c   : > { %6597 = sst [smem:[#allocation28_spill]] %s6596_s25 }
  0x2d   : > { %s6598_s12 = scalar_select %p5259_p1, 1, 0 }
  0x2f   : > { %6599 = sst [smem:[#allocation29_spill]] %s6598_s12 }
  0x30   : > { %326 = sbr.rel (!%p5229_p3) target bundleno = 90 (0x5a), region = 32  ;;  %s328_s22 = sand.u32 (%p5229_p3), 1, %s5076_s14  }
  0x31   : > { %s4175_s24 = sshll.u32 (%p5229_p3), %s5088_s17, 3  ;;  %s3907_s29 = sshll.u32 (%p5229_p3), %s328_s22, 8 }
  0x32   : > { %s6600_s1 = sld [smem:[#allocation60_spill]] (%p5229_p3)  ;;  %s5276_s21 = scalar_lea.vmem (%p5229_p3), [#allocation5], %s3907_s29 }
  0x38   : > { %s5271_s27 = scalar_lea.vmem %s6600_s1, %s4175_s24 }
  0x39   : > { %v424_v0 = vld [vmem:[%s5271_s27] sm:$0xff] }
  0x3a   : > { %v426_v1 = vld [vmem:[%s5271_s27 + $0x20] sm:$0xff]  ;;  %425 = vst [vmem:[%s5276_s21] sm:$0xff] %v424_v0 }
  0x3b   : > { %v428_v2 = vld [vmem:[%s5271_s27 + $0x40] sm:$0xff]  ;;  %427 = vst [vmem:[%s5276_s21 + $0x8] sm:$0xff] %v426_v1 }
  0x3c   : > { %429 = vst [vmem:[%s5276_s21 + $0x10] sm:$0xff] %v428_v2  ;;  %v430_v3 = vld [vmem:[%s5271_s27 + $0x60] sm:$0xff] }
  0x3d   : > { %v432_v4 = vld [vmem:[%s5271_s27 + $0x80] sm:$0xff]  ;;  %431 = vst [vmem:[%s5276_s21 + $0x18] sm:$0xff] %v430_v3 }
  0x3e   : > { %v434_v5 = vld [vmem:[%s5271_s27 + $0xa0] sm:$0xff]  ;;  %433 = vst [vmem:[%s5276_s21 + $0x20] sm:$0xff] %v432_v4 }
  0x3f   : > { %435 = vst [vmem:[%s5276_s21 + $0x28] sm:$0xff] %v434_v5  ;;  %v436_v6 = vld [vmem:[%s5271_s27 + $0xc0] sm:$0xff] }
  0x40   : > { %v438_v7 = vld [vmem:[%s5271_s27 + $0xe0] sm:$0xff]  ;;  %437 = vst [vmem:[%s5276_s21 + $0x30] sm:$0xff] %v436_v6 }
  0x41   : > { %v440_v8 = vld [vmem:[%s5271_s27 + $0x100] sm:$0xff]  ;;  %439 = vst [vmem:[%s5276_s21 + $0x38] sm:$0xff] %v438_v7 }
  0x42   : > { %441 = vst [vmem:[%s5276_s21 + $0x40] sm:$0xff] %v440_v8  ;;  %v442_v9 = vld [vmem:[%s5271_s27 + $0x120] sm:$0xff] }
  0x43   : > { %v444_v10 = vld [vmem:[%s5271_s27 + $0x140] sm:$0xff]  ;;  %443 = vst [vmem:[%s5276_s21 + $0x48] sm:$0xff] %v442_v9 }
  0x44   : > { %v446_v11 = vld [vmem:[%s5271_s27 + $0x160] sm:$0xff]  ;;  %445 = vst [vmem:[%s5276_s21 + $0x50] sm:$0xff] %v444_v10 }
  0x45   : > { %447 = vst [vmem:[%s5276_s21 + $0x58] sm:$0xff] %v446_v11  ;;  %v448_v12 = vld [vmem:[%s5271_s27 + $0x180] sm:$0xff] }
  0x46   : > { %v450_v13 = vld [vmem:[%s5271_s27 + $0x1a0] sm:$0xff]  ;;  %449 = vst [vmem:[%s5276_s21 + $0x60] sm:$0xff] %v448_v12 }
  0x47   : > { %v452_v14 = vld [vmem:[%s5271_s27 + $0x1c0] sm:$0xff]  ;;  %451 = vst [vmem:[%s5276_s21 + $0x68] sm:$0xff] %v450_v13 }
  0x48   : > { %453 = vst [vmem:[%s5276_s21 + $0x70] sm:$0xff] %v452_v14  ;;  %v454_v15 = vld [vmem:[%s5271_s27 + $0x1e0] sm:$0xff] }
  0x49   : > { %v456_v16 = vld [vmem:[%s5271_s27 + $0x200] sm:$0xff]  ;;  %455 = vst [vmem:[%s5276_s21 + $0x78] sm:$0xff] %v454_v15 }
  0x4a   : > { %v458_v17 = vld [vmem:[%s5271_s27 + $0x220] sm:$0xff]  ;;  %457 = vst [vmem:[%s5276_s21 + $0x80] sm:$0xff] %v456_v16 }
  0x4b   : > { %459 = vst [vmem:[%s5276_s21 + $0x88] sm:$0xff] %v458_v17  ;;  %v460_v18 = vld [vmem:[%s5271_s27 + $0x240] sm:$0xff] }
  0x4c   : > { %v462_v19 = vld [vmem:[%s5271_s27 + $0x260] sm:$0xff]  ;;  %461 = vst [vmem:[%s5276_s21 + $0x90] sm:$0xff] %v460_v18 }
  0x4d   : > { %v464_v20 = vld [vmem:[%s5271_s27 + $0x280] sm:$0xff]  ;;  %463 = vst [vmem:[%s5276_s21 + $0x98] sm:$0xff] %v462_v19 }
  0x4e   : > { %465 = vst [vmem:[%s5276_s21 + $0xa0] sm:$0xff] %v464_v20  ;;  %v466_v21 = vld [vmem:[%s5271_s27 + $0x2a0] sm:$0xff] }
  0x4f   : > { %v468_v22 = vld [vmem:[%s5271_s27 + $0x2c0] sm:$0xff]  ;;  %467 = vst [vmem:[%s5276_s21 + $0xa8] sm:$0xff] %v466_v21 }
  0x50   : > { %v470_v23 = vld [vmem:[%s5271_s27 + $0x2e0] sm:$0xff]  ;;  %469 = vst [vmem:[%s5276_s21 + $0xb0] sm:$0xff] %v468_v22 }
  0x51   : > { %471 = vst [vmem:[%s5276_s21 + $0xb8] sm:$0xff] %v470_v23  ;;  %v472_v24 = vld [vmem:[%s5271_s27 + $0x300] sm:$0xff] }
  0x52   : > { %v474_v25 = vld [vmem:[%s5271_s27 + $0x320] sm:$0xff]  ;;  %473 = vst [vmem:[%s5276_s21 + $0xc0] sm:$0xff] %v472_v24 }
  0x53   : > { %v476_v26 = vld [vmem:[%s5271_s27 + $0x340] sm:$0xff]  ;;  %475 = vst [vmem:[%s5276_s21 + $0xc8] sm:$0xff] %v474_v25 }
  0x54   : > { %477 = vst [vmem:[%s5276_s21 + $0xd0] sm:$0xff] %v476_v26  ;;  %v478_v27 = vld [vmem:[%s5271_s27 + $0x360] sm:$0xff] }
  0x55   : > { %v480_v28 = vld [vmem:[%s5271_s27 + $0x380] sm:$0xff]  ;;  %479 = vst [vmem:[%s5276_s21 + $0xd8] sm:$0xff] %v478_v27 }
  0x56   : > { %v482_v29 = vld [vmem:[%s5271_s27 + $0x3a0] sm:$0xff]  ;;  %481 = vst [vmem:[%s5276_s21 + $0xe0] sm:$0xff] %v480_v28 }
  0x57   : > { %483 = vst [vmem:[%s5276_s21 + $0xe8] sm:$0xff] %v482_v29  ;;  %v484_v30 = vld [vmem:[%s5271_s27 + $0x3c0] sm:$0xff] }
  0x58   : > { %v486_v31 = vld [vmem:[%s5271_s27 + $0x3e0] sm:$0xff]  ;;  %485 = vst [vmem:[%s5276_s21 + $0xf0] sm:$0xff] %v484_v30 }
  0x59   : > { %487 = vst [vmem:[%s5276_s21 + $0xf8] sm:$0xff] %v486_v31 }
  0x5a PF: > { %s5340_s18 = sand.u32 1, %s5076_s14   ;;  %s515_s22 = sand.u32 1, %s5096_s19  }
  0x5b   : > { %s3910_s23 = sshll.u32 %s5340_s18, 8  ;;  %s4178_s1 = sshll.u32 %s5088_s17, 12 }
  0x5c   : > { %s498_s24 = scalar_lea.vmem [#allocation6], %s3910_s23  ;;  %s6601_s3 = sld [smem:[#allocation62_spill]] }
  0x5d   : > { %s505_s29 = sshll.u32 %s498_s24, 4  ;;  %s519_s27 = scalar_lea.vmem [#allocation9], %s3910_s23  ;;  %s506_s29 = int_to_ptr.vmem [resolvable:$true] %s505_s29 }
  0x5e   : > { %s527_s30 = sshll.u32 %s519_s27, 4  ;;  %s5348_s21 = scalar_lea.sflag [#allocation10], %s515_s22  ;;  %s528_s30 = int_to_ptr.vmem [resolvable:$true] %s527_s30 }
  0x5f   : > { %s4876_s25 = scalar_lea.vmem %s528_s30, 4096  ;;  %s5098_s14 = smov [#allocation9]  }
  0x60   : > { %p4877_p4 = scmp.ne.s32.totalorder %s528_s30, %s4876_s25  ;;  %s4880_s8 = sshll.u32 %s5098_s14, 4  ;;  %s4881_s8 = int_to_ptr.vmem [resolvable:$false] %s4880_s8 }
  0x61   : > { %s4882_s4 = scalar_lea.vmem %s4881_s8, 8192  ;;  %p4883_p7 = scmp.lt.s32.totalorder %s528_s30, %s4881_s8 }
  0x62   : > { %s526_s12 = scalar_lea.hbm %s6601_s3, %s4178_s1  ;;  %p4878_p5 = pnand %p4877_p4, %p5229_p3 }
  0x63   : > { %p4884_p9 = scmp.lt.s32.totalorder %s4882_s4, %s4876_s25 }
  0x64   : > { %p4879_p6 = pneg %p4878_p5 }
  0x65   : > { %p4885_p10 = por %p4884_p9, %p4883_p7 }
  0x67   : > { %p4886_p11 = pnand %p4885_p10, %p4879_p6 }
  0x69   : > { %4889 = shalt.err (!%p4886_p11)
}
  0x6a   : > { %s5099_s1 = smov 128   ;;  %s5100_s9 = smov 8  }
  0x6b   : > { %4410 = dma.hbm_to_vmem [thread:$0]  (%p5229_p3), %s526_s12, 4096, %s528_s30, %s5348_s21, %s5099_s1, %s5099_s1, %s5100_s9  }
  0x6c   : > { %s5359_s11 = sshll.u32 %s5088_s17, 7  ;;  %s6602_s2 = sld [smem:[#allocation61_spill]] }
  0x6d   : > { %s495_s25 = scalar_lea.sflag [#allocation7], %s5340_s18  ;;  %s4902_s23 = scalar_lea.vmem %s506_s29, 4096 }
  0x6e   : > { %p4903_p13 = scmp.ne.s32.totalorder %s506_s29, %s4902_s23  ;;  %s5101_s22 = smov [#allocation6]  }
  0x6f   : > { %s4906_s24 = sshll.u32 %s5101_s22, 4  ;;  %s4907_s24 = int_to_ptr.vmem [resolvable:$false] %s4906_s24 }
  0x70   : > { %p4904_p0 = pnand %p4903_p13, %p5229_p3  ;;  %s4908_s27 = scalar_lea.vmem %s4907_s24, 8192 }
  0x71   : > { %p4909_p4 = scmp.lt.s32.totalorder %s506_s29, %s4907_s24  ;;  %p4910_p5 = scmp.lt.s32.totalorder %s4908_s27, %s4902_s23 }
  0x72   : > { %s504_s14 = scalar_lea.hbm %s6602_s2, %s5359_s11  ;;  %p4905_p2 = pneg %p4904_p0 }
  0x73   : > { %p4911_p6 = por %p4910_p5, %p4909_p4 }
  0x75   : > { %p4912_p7 = pnand %p4911_p6, %p4905_p2 }
  0x77   : > { %4915 = shalt.err (!%p4912_p7)
}
  0x78   : > { %s5102_s30 = smov 512   ;;  %s3917_s12 = sshll.u32 %s5340_s18, 7 }
  0x79   : > { %4409 = dma.hbm_to_vmem [thread:$0]  (%p5229_p3), %s504_s14, 4096, %s506_s29, %s495_s25, %s5102_s30, %s5099_s1, %s5100_s9  }
  0x7a   : > { %s547_s22 = scalar_lea.hbm %s6543_s5, %s5359_s11  ;;  %s541_s23 = scalar_lea.vmem [#allocation11], %s3917_s12 }
  0x7b   : > { %s548_s24 = sshll.u32 %s541_s23, 4  ;;  %s568_s3 = scalar_lea.hbm %s6544_s6, %s5359_s11  ;;  %s549_s24 = int_to_ptr.vmem [resolvable:$true] %s548_s24 }
  0x7c   : > { %s4928_s17 = scalar_lea.vmem %s549_s24, 2048  ;;  %s5103_s7 = smov [#allocation11]  }
  0x7d   : > { %p4929_p9 = scmp.ne.s32.totalorder %s549_s24, %s4928_s17  ;;  %s4932_s0 = sshll.u32 %s5103_s7, 4  ;;  %s4933_s0 = int_to_ptr.vmem [resolvable:$false] %s4932_s0 }
  0x7e   : > { %s4934_s29 = scalar_lea.vmem %s4933_s0, 4096  ;;  %p4935_p13 = scmp.lt.s32.totalorder %s549_s24, %s4933_s0 }
  0x7f   : > { %p4930_p10 = pnand %p4929_p9, %p5229_p3  ;;  %p4936_p0 = scmp.lt.s32.totalorder %s4934_s29, %s4928_s17 }
  0x81   : > { %p4931_p11 = pneg %p4930_p10  ;;  %p4937_p2 = por %p4936_p0, %p4935_p13 }
  0x83   : > { %p4938_p4 = pnand %p4937_p2, %p4931_p11 }
  0x85   : > { %4941 = shalt.err (!%p4938_p4)
}
  0x86   : > { %4411 = dma.hbm_to_vmem [thread:$0]  (%p5229_p3), %s547_s22, 2048, %s549_s24, %s5348_s21, %s5102_s30, %s5099_s1, %s5100_s9  }
  0x87   : > { %s562_s2 = scalar_lea.vmem [#allocation12], %s3917_s12  ;;  %s559_s7 = scalar_lea.sflag [#allocation13], %s5340_s18 }
  0x88   : > { %s569_s14 = sshll.u32 %s562_s2, 4  ;;  %s5104_s0 = smov [#allocation12]   ;;  %s570_s14 = int_to_ptr.vmem [resolvable:$true] %s569_s14 }
  0x89   : > { %s4954_s25 = scalar_lea.vmem %s570_s14, 2048  ;;  %s4958_s17 = sshll.u32 %s5104_s0, 4  ;;  %s4959_s17 = int_to_ptr.vmem [resolvable:$false] %s4958_s17 }
  0x8a   : > { %p4955_p5 = scmp.ne.s32.totalorder %s570_s14, %s4954_s25  ;;  %s4960_s4 = scalar_lea.vmem %s4959_s17, 4096 }
  0x8b   : > { %p4961_p9 = scmp.lt.s32.totalorder %s570_s14, %s4959_s17  ;;  %p4962_p10 = scmp.lt.s32.totalorder %s4960_s4, %s4954_s25 }
  0x8c   : > { %p4956_p6 = pnand %p4955_p5, %p5229_p3 }
  0x8d   : > { %p4963_p11 = por %p4962_p10, %p4961_p9 }
  0x8e   : > { %p4957_p7 = pneg %p4956_p6 }
  0x90   : > { %p4964_p13 = pnand %p4963_p11, %p4957_p7 }
  0x92   : > { %4967 = shalt.err (!%p4964_p13)
}
  0x93   : > { %4412 = dma.hbm_to_vmem [thread:$0]  (%p5229_p3), %s568_s3, 2048, %s570_s14, %s559_s7, %s5102_s30, %s5099_s1, %s5100_s9  }
  0x94 PF: > { %p3923_p0 = scmp.ge.s32.totalorder %s5096_s19, 1  ;;  %p586_p2 = scmp.lt.s32.totalorder %s5096_s19, 9 }
  0x96   : > { %p587_p4 = pnand %p3923_p0, %p586_p2 }
  0x98   : > { %590 = sbr.rel (%p587_p4) target bundleno = 1307 (0x51b), region = 90 }
  0x9d   : > { %s593_s12 = sand.u32 1, %s5072_s13  }
  0x9e   : > { %s3924_s26 = sshll.u32 %s593_s12, 8  ;;  %s600_s22 = scalar_lea.sflag [#allocation7], %s593_s12 }
  0x9f   : > { %s5406_s8 = scalar_lea.vmem [#allocation5], %s3924_s26  ;;  %s5408_s23 = scalar_lea.vmem [#allocation6], %s3924_s26 }
  0xa0   : > { %5039 = dma.done.wait (%p5240_p8), %s600_s22, 4096  }
  0xa1   : > { %5041 = vsyncadd (%p5240_p8), %s600_s22, 4294963200  ;;  %s608_s3 = sand.u32 1, %s5215_s20   ;;  %s5415_s9 = scalar_lea.vmem [#allocation9], %s3924_s26 }
  0xa2   : > { %s609_s1 = scalar_lea.sflag [#allocation10], %s608_s3 }
  0xa3   : > { %5043 = dma.done.wait (%p5240_p8), %s609_s1, 6144  }
  0xa4   : > { %5045 = vsyncadd (%p5240_p8), %s609_s1, 4294961152  ;;  %s3927_s11 = sshll.u32 %s593_s12, 7  ;;  %s627_s24 = scalar_lea.sflag [#allocation13], %s593_s12 }
  0xa5   : > { %s5421_s30 = scalar_lea.vmem [#allocation11], %s3927_s11  ;;  %s5423_s27 = scalar_lea.vmem [#allocation12], %s3927_s11 }
  0xa6   : > { %5047 = dma.done.wait (%p5240_p8), %s627_s24, 2048  }
  0xa7   : > { %5049 = vsyncadd (%p5240_p8), %s627_s24, 4294965248  ;;  %s692_s20 = sand.u32 1, %s5060_s10   ;;  %s3930_s29 = sshll.u32 %s5084_s16, 4 }
  0xa8   : > { %s3929_s2 = sshll.u32 %s692_s20, 8  ;;  %p696_p3 = scmp.lt.s32.totalorder %s3930_s29, 31 }
  0xa9   : > { %s3933_s14 = sshll.u32 %s5080_s15, 5  ;;  %s6603_s17 = sld [smem:[#allocation59_spill]] }
  0xaa   : > { %s6692_s29 = smov (!%p696_p3, %s3930_s29), 31  ;;  %p708_p5 = scmp.lt.s32.totalorder %s3933_s14, 127 }
  0xab   : > { %s4181_s7 = sshll.u32 %s6692_s29, 3  ;;  %s6604_s12 = sld [smem:[#allocation64_spill]] }
  0xac   : > { %s6694_s14 = smov (!%p708_p5, %s3933_s14), 127  ;;  %s5444_s22 = scalar_lea.vmem [#allocation14], %s3929_s2 }
  0xad   : > { %s3934_s28 = sshll.u32 %s6694_s14, 2  ;;  %p3935_p8 = scmp.ne.s32.totalorder %s5080_s15, 0 }
  0xae   : > { %s6605_s11 = sld [smem:[#allocation63_spill]] (!%p3935_p8) }
  0xaf   : > { %s5437_s4 = scalar_lea.vmem %s6603_s17, %s4181_s7  ;;  %718 = sbr.rel (%p3935_p8) target bundleno = 441 (0x1b9), region = 114 }
  0xb1   : > { %s5442_s26 = scalar_lea.vmem %s6604_s12, %s3934_s28 }
  0xb4   : > { %s6606_s24 = smov %s6605_s11  ;;  %v4520_v32 = vld [vmem:[%s6605_s11 + $0x78] sm:$0xff]   ;;  %v4538_v43 = vld [vmem:[%s5437_s4 + $0x4] ss:$8 sps:$4 sm:$0xff]   ;;  %v4536_v50 = vld [vmem:[%s5437_s4] ss:$8 sps:$4 sm:$0xff]   ;;  %vm1152_vm0 = vcmask 64512  }
  0xb5   : > { %v4521_v33 = vld [vmem:[%s6606_s24 + $0x38] sm:$0xff]   ;;  %4247 = vmatprep.subr.bf16.mxu0 %v4520_v32  ;;  %4375 = vmatprep.subr.bf16.mxu1 %v4520_v32  ;;  %v4522_v34 = vld [vmem:[%s6606_s24 + $0x70] sm:$0xff]   ;;  %v4524_v36 = vld [vmem:[%s6606_s24 + $0x68] sm:$0xff]   ;;  %v5105_v0 = vmov 0.0  }
  0xb6   : > { %4248 = vmatpush3.bf16.msra.mxu0 %v4521_v33  ;;  %4383 = vmatpush3.bf16.msra.mxu1 %v4521_v33  ;;  %v4523_v35 = vld [vmem:[%s6606_s24 + $0x30] sm:$0xff]   ;;  %v4525_v37 = vld [vmem:[%s6606_s24 + $0x28] sm:$0xff]   ;;  %v4526_v38 = vld [vmem:[%s6606_s24 + $0x60] sm:$0xff]   ;;  %1120 = vst [vmem:[#allocation3 + $0xb0] sm:$0xff] %v5105_v0 }
  0xb7   : > { %4249 = vmatprep.subr.bf16.mxu0 %v4522_v34  ;;  %4376 = vmatprep.subr.bf16.mxu1 %v4522_v34  ;;  %v4527_v39 = vld [vmem:[%s6606_s24 + $0x20] sm:$0xff]   ;;  %v4528_v40 = vld [vmem:[%s6606_s24 + $0x58] sm:$0xff]   ;;  %v4530_v42 = vld [vmem:[%s6606_s24 + $0x50] sm:$0xff]   ;;  %1121 = vst [vmem:[#allocation3] sm:$0xff] %v5105_v0 }
  0xb8   : > { %v4529_v41 = vld [vmem:[%s6606_s24 + $0x18] sm:$0xff]   ;;  %v4541_v44 = vld [vmem:[%s5437_s4 + $0x44] ss:$8 sps:$4 sm:$0xff]   ;;  %v4531_v45 = vld [vmem:[%s6606_s24 + $0x10] sm:$0xff]   ;;  %975 = vmatprep.mubr.bf16.mxu0 %v4538_v43  ;;  %1122 = vst [vmem:[#allocation3 + $0xd8] sm:$0xff] %v5105_v0 }
  0xb9   : > { %v4532_v46 = vld [vmem:[%s6606_s24 + $0x48] sm:$0xff]   ;;  %1007 = vmatprep.mubr.bf16.mxu1 %v4541_v44  ;;  %v4534_v48 = vld [vmem:[%s6606_s24 + $0x40] sm:$0xff]   ;;  %v4542_v52 = vld [vmem:[%s5437_s4 + $0x14] ss:$8 sps:$4 sm:$0xff]   ;;  %1123 = vst [vmem:[#allocation3 + $0x18] sm:$0xff] %v5105_v0 }
  0xba   : > { %4250 = vmatpush3.bf16.msra.mxu0 %v4523_v35  ;;  %4384 = vmatpush3.bf16.msra.mxu1 %v4523_v35  ;;  %v4533_v47 = vld [vmem:[%s6606_s24 + $0x8] sm:$0xff]   ;;  %v4535_v49 = vld [vmem:[%s6606_s24] sm:$0xff]   ;;  %v4544_v53 = vld [vmem:[%s5437_s4 + $0x54] ss:$8 sps:$4 sm:$0xff]   ;;  %1124 = vst [vmem:[#allocation3 + $0x50] sm:$0xff] %v5105_v0 }
  0xbb   : > { %4251 = vmatprep.subr.bf16.mxu0 %v4524_v36  ;;  %4377 = vmatprep.subr.bf16.mxu1 %v4524_v36  ;;  %v4539_v51 = vld [vmem:[%s5437_s4 + $0x40] ss:$8 sps:$4 sm:$0xff]   ;;  %v4546_v54 = vld [vmem:[%s5437_s4 + $0x10] ss:$8 sps:$4 sm:$0xff]   ;;  %v4548_v56 = vld [vmem:[%s5437_s4 + $0x24] ss:$8 sps:$4 sm:$0xff]  }
  0xbc   : > { %v4547_v55 = vld [vmem:[%s5437_s4 + $0x50] ss:$8 sps:$4 sm:$0xff]   ;;  %v4550_v57 = vld [vmem:[%s5437_s4 + $0x64] ss:$8 sps:$4 sm:$0xff]   ;;  %v4552_v58 = vld [vmem:[%s5437_s4 + $0x20] ss:$8 sps:$4 sm:$0xff]  }
  0xbd   : > { %v4553_v59 = vld [vmem:[%s5437_s4 + $0x60] ss:$8 sps:$4 sm:$0xff]   ;;  %v4554_v60 = vld [vmem:[%s5437_s4 + $0x34] ss:$8 sps:$4 sm:$0xff]   ;;  %v4558_v62 = vld [vmem:[%s5437_s4 + $0x30] ss:$8 sps:$4 sm:$0xff]  }
  0xbe   : > { %4252 = vmatpush3.bf16.msra.mxu0 %v4525_v37  ;;  %4385 = vmatpush3.bf16.msra.mxu1 %v4525_v37  ;;  %v4556_v61 = vld [vmem:[%s5437_s4 + $0x74] ss:$8 sps:$4 sm:$0xff]   ;;  %v4559_v63 = vld [vmem:[%s5437_s4 + $0x70] ss:$8 sps:$4 sm:$0xff]   ;;  %1125 = vst [vmem:[#allocation3 + $0x68] sm:$0xff] %v5105_v0  ;;  %1126 = vst [vmem:[#allocation3 + $0x30] sm:$0xff] %v5105_v0 }
  0xbf   : > { %4253 = vmatprep.subr.bf16.mxu0 %v4526_v38  ;;  %4378 = vmatprep.subr.bf16.mxu1 %v4526_v38  ;;  %1127 = vst [vmem:[#allocation3 + $0x48] sm:$0xff] %v5105_v0  ;;  %1128 = vst [vmem:[#allocation3 + $0x80] sm:$0xff] %v5105_v0 }
  0xc0   : > { %1129 = vst [vmem:[#allocation3 + $0x88] sm:$0xff] %v5105_v0  ;;  %1130 = vst [vmem:[#allocation3 + $0xe8] sm:$0xff] %v5105_v0 }
  0xc1   : > { %1131 = vst [vmem:[#allocation3 + $0xb8] sm:$0xff] %v5105_v0  ;;  %1132 = vst [vmem:[#allocation3 + $0x60] sm:$0xff] %v5105_v0 }
  0xc2   : > { %4254 = vmatpush3.bf16.msra.mxu0 %v4527_v39  ;;  %4386 = vmatpush3.bf16.msra.mxu1 %v4527_v39  ;;  %1133 = vst [vmem:[#allocation3 + $0xf0] sm:$0xff] %v5105_v0  ;;  %1134 = vst [vmem:[#allocation3 + $0x8] sm:$0xff] %v5105_v0 }
  0xc3   : > { %4255 = vmatprep.subr.bf16.mxu0 %v4528_v40  ;;  %4379 = vmatprep.subr.bf16.mxu1 %v4528_v40  ;;  %1135 = vst [vmem:[#allocation3 + $0x78] sm:$0xff] %v5105_v0  ;;  %1136 = vst [vmem:[#allocation3 + $0x38] sm:$0xff] %v5105_v0 }
  0xc4   : > { %1137 = vst [vmem:[#allocation3 + $0x58] sm:$0xff] %v5105_v0  ;;  %1138 = vst [vmem:[#allocation3 + $0x40] sm:$0xff] %v5105_v0 }
  0xc5   : > { %1139 = vst [vmem:[#allocation3 + $0xc8] sm:$0xff] %v5105_v0  ;;  %1140 = vst [vmem:[#allocation3 + $0xe0] sm:$0xff] %v5105_v0 }
  0xc6   : > { %4256 = vmatpush3.bf16.msra.mxu0 %v4529_v41  ;;  %4387 = vmatpush3.bf16.msra.mxu1 %v4529_v41  ;;  %1141 = vst [vmem:[#allocation3 + $0x90] sm:$0xff] %v5105_v0  ;;  %1142 = vst [vmem:[#allocation3 + $0x70] sm:$0xff] %v5105_v0 }
  0xc7   : > { %4257 = vmatprep.subr.bf16.mxu0 %v4530_v42  ;;  %4380 = vmatprep.subr.bf16.mxu1 %v4530_v42  ;;  %1143 = vst [vmem:[#allocation3 + $0xc0] sm:$0xff] %v5105_v0  ;;  %1144 = vst [vmem:[#allocation3 + $0xa8] sm:$0xff] %v5105_v0 }
  0xc8   : > { %1145 = vst [vmem:[#allocation3 + $0xd0] sm:$0xff] %v5105_v0  ;;  %1146 = vst [vmem:[#allocation3 + $0x10] sm:$0xff] %v5105_v0 }
  0xc9   : > { %1147 = vst [vmem:[#allocation3 + $0x28] sm:$0xff] %v5105_v0  ;;  %1148 = vst [vmem:[#allocation3 + $0xa0] sm:$0xff] %v5105_v0 }
  0xca   : > { %4258 = vmatpush3.bf16.msra.mxu0 %v4531_v45  ;;  %4388 = vmatpush3.bf16.msra.mxu1 %v4531_v45  ;;  %1149 = vst [vmem:[#allocation3 + $0xf8] sm:$0xff] %v5105_v0  ;;  %1150 = vst [vmem:[#allocation3 + $0x20] sm:$0xff] %v5105_v0 }
  0xcb   : > { %4259 = vmatprep.subr.bf16.mxu0 %v4532_v46  ;;  %4381 = vmatprep.subr.bf16.mxu1 %v4532_v46  ;;  %1151 = vst [vmem:[#allocation3 + $0x98] sm:$0xff] %v5105_v0  ;;  %1153 = vst.msk [vmem:[#allocation4] sm:$0xff] %vm1152_vm0, %v5105_v0 }
  0xcc   : > { %1154 = vst.msk [vmem:[#allocation4 + $0x8] sm:$0xff] %vm1152_vm0, %v5105_v0  ;;  %1155 = vst.msk [vmem:[#allocation4 + $0x10] sm:$0xff] %vm1152_vm0, %v5105_v0 }
  0xcd   : > { %1156 = vst.msk [vmem:[#allocation4 + $0x18] sm:$0xff] %vm1152_vm0, %v5105_v0  ;;  %1157 = vst.msk [vmem:[#allocation4 + $0x20] sm:$0xff] %vm1152_vm0, %v5105_v0 }
  0xce   : > { %4260 = vmatpush3.bf16.msra.mxu0 %v4533_v47  ;;  %4389 = vmatpush3.bf16.msra.mxu1 %v4533_v47  ;;  %1158 = vst.msk [vmem:[#allocation4 + $0x28] sm:$0xff] %vm1152_vm0, %v5105_v0  ;;  %1159 = vst.msk [vmem:[#allocation4 + $0x30] sm:$0xff] %vm1152_vm0, %v5105_v0 }
  0xcf   : > { %4261 = vmatprep.subr.bf16.mxu0 %v4534_v48  ;;  %4382 = vmatprep.subr.bf16.mxu1 %v4534_v48  ;;  %1160 = vst.msk [vmem:[#allocation4 + $0x38] sm:$0xff] %vm1152_vm0, %v5105_v0  ;;  %1161 = vst.msk [vmem:[#allocation4 + $0x40] sm:$0xff] %vm1152_vm0, %v5105_v0 }
  0xd0   : > { %1162 = vst.msk [vmem:[#allocation4 + $0x48] sm:$0xff] %vm1152_vm0, %v5105_v0  ;;  %1163 = vst.msk [vmem:[#allocation4 + $0x50] sm:$0xff] %vm1152_vm0, %v5105_v0 }
  0xd1   : > { %1164 = vst.msk [vmem:[#allocation4 + $0x58] sm:$0xff] %vm1152_vm0, %v5105_v0  ;;  %1165 = vst.msk [vmem:[#allocation4 + $0x60] sm:$0xff] %vm1152_vm0, %v5105_v0 }
  0xd2   : > { %4262 = vmatpush3.bf16.msra.mxu0 %v4535_v49  ;;  %4390 = vmatpush3.bf16.msra.mxu1 %v4535_v49  ;;  %1166 = vst.msk [vmem:[#allocation4 + $0x68] sm:$0xff] %vm1152_vm0, %v5105_v0  ;;  %1167 = vst.msk [vmem:[#allocation4 + $0x70] sm:$0xff] %vm1152_vm0, %v5105_v0 }
  0xd3   : > { %1168 = vst.msk [vmem:[#allocation4 + $0x78] sm:$0xff] %vm1152_vm0, %v5105_v0 }
  0xd5   : > { %976 = vmatmul.mubr.bf16.vlgmr.msra.gmra.mxu0 %v4536_v50  ;;  %1008 = vmatmul.mubr.bf16.vlgmr.msra.gmra.mxu1 %v4539_v51 }
  0xd6   : > { %983 = vmatprep.mubr.bf16.mxu0 %v4542_v52  ;;  %1015 = vmatprep.mubr.bf16.mxu1 %v4544_v53 }
  0xdd   : > { %984 = vmatmul.mubr.bf16.gmra.mxu0 %v4546_v54  ;;  %1016 = vmatmul.mubr.bf16.gmra.mxu1 %v4547_v55 }
  0xde   : > { %991 = vmatprep.mubr.bf16.mxu0 %v4548_v56  ;;  %1023 = vmatprep.mubr.bf16.mxu1 %v4550_v57 }
  0xe5   : > { %992 = vmatmul.mubr.bf16.gmra.mxu0 %v4552_v58  ;;  %1024 = vmatmul.mubr.bf16.gmra.mxu1 %v4553_v59 }
  0xe6   : > { %999 = vmatprep.mubr.bf16.mxu0 %v4554_v60  ;;  %1031 = vmatprep.mubr.bf16.mxu1 %v4556_v61 }
  0xed   : > { %1000 = vmatmul.mubr.bf16.gmra.mxu0 %v4558_v62  ;;  %1032 = vmatmul.mubr.bf16.gmra.mxu1 %v4559_v63 }
 0x195   : > { %v4263_v1 = vpop.f32.mrf.mxu0  ;;  %v4287_v2 = vpop.f32.mrf.mxu1 }
 0x197   : > { %v4264_v3 = vpop.f32.mrf.mxu0  ;;  %v4288_v4 = vpop.f32.mrf.mxu1 }
 0x198   : > { %v4265_v9 = vadd.f32 %v4264_v3, %v4263_v1  ;;  %v4289_v10 = vadd.f32 %v4288_v4, %v4287_v2 }
 0x199   : > { %v4266_v5 = vpop.f32.mrf.mxu0  ;;  %v4290_v6 = vpop.f32.mrf.mxu1 }
 0x19b   : > { %v4267_v7 = vpop.f32.mrf.mxu0  ;;  %v4291_v8 = vpop.f32.mrf.mxu1 }
 0x19c   : > { %v4268_v11 = vadd.f32 %v4267_v7, %v4266_v5  ;;  %v4292_v12 = vadd.f32 %v4291_v8, %v4290_v6 }
 0x19d   : > { %v4269_v13 = vpop.f32.mrf.mxu0  ;;  %v4293_v14 = vpop.f32.mrf.mxu1 }
 0x19e   : > { %v4203_v15 = vpack.c.bf16 %v4268_v11, %v4265_v9  ;;  %v4223_v16 = vpack.c.bf16 %v4292_v12, %v4289_v10 }
 0x19f   : > { %v4270_v17 = vpop.f32.mrf.mxu0  ;;  %v4294_v18 = vpop.f32.mrf.mxu1 }
 0x1a0   : > { %4204 = vst [vmem:[#allocation2] sm:$0xff] %v4203_v15   ;;  %4243 = vst [vmem:[#allocation2 + $0x20] sm:$0xff] %v4223_v16   ;;  %v4271_v23 = vadd.f32 %v4270_v17, %v4269_v13  ;;  %v4295_v24 = vadd.f32 %v4294_v18, %v4293_v14 }
 0x1a1   : > { %v4272_v19 = vpop.f32.mrf.mxu0  ;;  %v4296_v20 = vpop.f32.mrf.mxu1 }
 0x1a3   : > { %v4273_v21 = vpop.f32.mrf.mxu0  ;;  %v4297_v22 = vpop.f32.mrf.mxu1 }
 0x1a4   : > { %v4274_v25 = vadd.f32 %v4273_v21, %v4272_v19  ;;  %v4298_v26 = vadd.f32 %v4297_v22, %v4296_v20 }
 0x1a5   : > { %v4275_v27 = vpop.f32.mrf.mxu0  ;;  %v4299_v28 = vpop.f32.mrf.mxu1 }
 0x1a6   : > { %v4208_v29 = vpack.c.bf16 %v4274_v25, %v4271_v23  ;;  %v4228_v30 = vpack.c.bf16 %v4298_v26, %v4295_v24 }
 0x1a7   : > { %v4276_v31 = vpop.f32.mrf.mxu0  ;;  %v4300_v32 = vpop.f32.mrf.mxu1 }
 0x1a8   : > { %4240 = vst [vmem:[#allocation2 + $0x8] sm:$0xff] %v4208_v29   ;;  %4244 = vst [vmem:[#allocation2 + $0x28] sm:$0xff] %v4228_v30   ;;  %v4277_v37 = vadd.f32 %v4276_v31, %v4275_v27  ;;  %v4301_v38 = vadd.f32 %v4300_v32, %v4299_v28 }
 0x1a9   : > { %v4278_v33 = vpop.f32.mrf.mxu0  ;;  %v4302_v34 = vpop.f32.mrf.mxu1 }
 0x1ab   : > { %v4279_v35 = vpop.f32.mrf.mxu0  ;;  %v4303_v36 = vpop.f32.mrf.mxu1 }
 0x1ac   : > { %v4280_v39 = vadd.f32 %v4279_v35, %v4278_v33  ;;  %v4304_v40 = vadd.f32 %v4303_v36, %v4302_v34 }
 0x1ad   : > { %v4281_v41 = vpop.f32.mrf.mxu0  ;;  %v4305_v42 = vpop.f32.mrf.mxu1 }
 0x1ae   : > { %v4213_v43 = vpack.c.bf16 %v4280_v39, %v4277_v37  ;;  %v4233_v44 = vpack.c.bf16 %v4304_v40, %v4301_v38 }
 0x1af   : > { %v4282_v45 = vpop.f32.mrf.mxu0  ;;  %v4306_v46 = vpop.f32.mrf.mxu1 }
 0x1b0   : > { %4241 = vst [vmem:[#allocation2 + $0x10] sm:$0xff] %v4213_v43   ;;  %4245 = vst [vmem:[#allocation2 + $0x30] sm:$0xff] %v4233_v44   ;;  %v4283_v51 = vadd.f32 %v4282_v45, %v4281_v41  ;;  %v4307_v52 = vadd.f32 %v4306_v46, %v4305_v42 }
 0x1b1   : > { %v4284_v47 = vpop.f32.mrf.mxu0  ;;  %v4308_v48 = vpop.f32.mrf.mxu1 }
 0x1b3   : > { %v4285_v49 = vpop.f32.mrf.mxu0  ;;  %v4309_v50 = vpop.f32.mrf.mxu1 }
 0x1b4   : > { %v4286_v53 = vadd.f32 %v4285_v49, %v4284_v47  ;;  %v4310_v54 = vadd.f32 %v4309_v50, %v4308_v48 }
 0x1b6   : > { %v4218_v55 = vpack.c.bf16 %v4286_v53, %v4283_v51  ;;  %v4238_v56 = vpack.c.bf16 %v4310_v54, %v4307_v52 }
 0x1b8   : > { %4242 = vst [vmem:[#allocation2 + $0x18] sm:$0xff] %v4218_v55   ;;  %4246 = vst [vmem:[#allocation2 + $0x38] sm:$0xff] %v4238_v56  }
 0x1b9 PF: > { %v4560_v57 = vld [vmem:[%s5406_s8 + $0x74] ss:$8 sps:$4 sm:$0xff]   ;;  %v4562_v58 = vld [vmem:[%s5406_s8 + $0x70] ss:$8 sps:$4 sm:$0xff]   ;;  %v5106_v59 = vmov 0   ;;  %v5572_v35 = vld [vmem:[#allocation2] sm:$0xff]  }
 0x1ba   : > { %1409 = vmatprep.mubr.bf16.mxu0 %v5106_v59  ;;  %1730 = vmatprep.subr.bf16.mxu1 %v4560_v57  ;;  %v4563_v60 = vld [vmem:[%s5406_s8 + $0x64] ss:$8 sps:$4 sm:$0xff]   ;;  %v4565_v61 = vld [vmem:[%s5406_s8 + $0x60] ss:$8 sps:$4 sm:$0xff]   ;;  %v4566_v62 = vld [vmem:[%s5406_s8 + $0x54] ss:$8 sps:$4 sm:$0xff]  }
 0x1bb   : > { %1731 = vmatpush1.bf16.msra.mxu1 %v4562_v58  ;;  %v4568_v63 = vld [vmem:[%s5406_s8 + $0x50] ss:$8 sps:$4 sm:$0xff]   ;;  %v4569_v0 = vld [vmem:[%s5406_s8 + $0x44] ss:$8 sps:$4 sm:$0xff]   ;;  %v4581_v1 = vld [vmem:[%s5421_s30 + $0x74] ss:$8 sps:$4 sm:$0xff]  }
 0x1bc   : > { %1732 = vmatprep.subr.bf16.mxu1 %v4563_v60  ;;  %v4583_v2 = vld [vmem:[%s5421_s30 + $0x70] ss:$8 sps:$4 sm:$0xff]   ;;  %v4571_v3 = vld [vmem:[%s5406_s8 + $0x40] ss:$8 sps:$4 sm:$0xff]   ;;  %v4572_v4 = vld [vmem:[%s5406_s8 + $0x34] ss:$8 sps:$4 sm:$0xff]   ;;  %1377 = vmatprep.subr.bf16.mxu0 %v4581_v1 }
 0x1bd   : > { %v4587_v5 = vld [vmem:[%s5421_s30 + $0x64] ss:$8 sps:$4 sm:$0xff]   ;;  %1378 = vmatpush1.bf16.msra.mxu0 %v4583_v2  ;;  %v4589_v6 = vld [vmem:[%s5421_s30 + $0x60] ss:$8 sps:$4 sm:$0xff]   ;;  %v4574_v7 = vld [vmem:[%s5406_s8 + $0x30] ss:$8 sps:$4 sm:$0xff]  }
 0x1be   : > { %1379 = vmatprep.subr.bf16.mxu0 %v4587_v5  ;;  %v4593_v8 = vld [vmem:[%s5421_s30 + $0x54] ss:$8 sps:$4 sm:$0xff]   ;;  %v4575_v9 = vld [vmem:[%s5406_s8 + $0x24] ss:$8 sps:$4 sm:$0xff]   ;;  %v4595_v10 = vld [vmem:[%s5421_s30 + $0x50] ss:$8 sps:$4 sm:$0xff]  }
 0x1bf   : > { %1733 = vmatpush1.bf16.msra.mxu1 %v4565_v61  ;;  %v4599_v11 = vld [vmem:[%s5421_s30 + $0x44] ss:$8 sps:$4 sm:$0xff]   ;;  %v4577_v12 = vld [vmem:[%s5406_s8 + $0x20] ss:$8 sps:$4 sm:$0xff]   ;;  %v4578_v13 = vld [vmem:[%s5406_s8 + $0x14] ss:$8 sps:$4 sm:$0xff]  }
 0x1c0   : > { %1734 = vmatprep.subr.bf16.mxu1 %v4566_v62  ;;  %v4601_v14 = vld [vmem:[%s5421_s30 + $0x40] ss:$8 sps:$4 sm:$0xff]   ;;  %v4605_v15 = vld [vmem:[%s5421_s30 + $0x34] ss:$8 sps:$4 sm:$0xff]   ;;  %v4580_v16 = vld [vmem:[%s5406_s8 + $0x10] ss:$8 sps:$4 sm:$0xff]  }
 0x1c1   : > { %1380 = vmatpush1.bf16.msra.mxu0 %v4589_v6  ;;  %v4584_v17 = vld [vmem:[%s5406_s8 + $0x4] ss:$8 sps:$4 sm:$0xff]   ;;  %v4607_v18 = vld [vmem:[%s5421_s30 + $0x30] ss:$8 sps:$4 sm:$0xff]   ;;  %v4586_v20 = vld [vmem:[%s5406_s8] ss:$8 sps:$4 sm:$0xff]  }
 0x1c2   : > { %1381 = vmatprep.subr.bf16.mxu0 %v4593_v8  ;;  %v4611_v19 = vld [vmem:[%s5421_s30 + $0x24] ss:$8 sps:$4 sm:$0xff]   ;;  %v4590_v21 = vld [vmem:[%s5406_s8 + $0xf4] ss:$8 sps:$4 sm:$0xff]   ;;  %v4613_v22 = vld [vmem:[%s5421_s30 + $0x20] ss:$8 sps:$4 sm:$0xff]  }
 0x1c3   : > { %1735 = vmatpush1.bf16.msra.mxu1 %v4568_v63  ;;  %v4617_v23 = vld [vmem:[%s5421_s30 + $0x14] ss:$8 sps:$4 sm:$0xff]   ;;  %v4592_v24 = vld [vmem:[%s5406_s8 + $0xf0] ss:$8 sps:$4 sm:$0xff]   ;;  %v4596_v25 = vld [vmem:[%s5406_s8 + $0xe4] ss:$8 sps:$4 sm:$0xff]  }
 0x1c4   : > { %1736 = vmatprep.subr.bf16.mxu1 %v4569_v0  ;;  %v4619_v26 = vld [vmem:[%s5421_s30 + $0x10] ss:$8 sps:$4 sm:$0xff]   ;;  %v4623_v27 = vld [vmem:[%s5421_s30 + $0x4] ss:$8 sps:$4 sm:$0xff]   ;;  %v4598_v29 = vld [vmem:[%s5406_s8 + $0xe0] ss:$8 sps:$4 sm:$0xff]  }
 0x1c5   : > { %1382 = vmatpush1.bf16.msra.mxu0 %v4595_v10  ;;  %v5563_v28 = vld [vmem:[%s5437_s4 + $0x4] ss:$8 sps:$4 sm:$0xff]   ;;  %v4602_v30 = vld [vmem:[%s5406_s8 + $0xd4] ss:$8 sps:$4 sm:$0xff]   ;;  %v4625_v31 = vld [vmem:[%s5421_s30] ss:$8 sps:$4 sm:$0xff]  }
 0x1c6   : > { %1383 = vmatprep.subr.bf16.mxu0 %v4599_v11  ;;  %1762 = vmatprep.mubr.bf16.mxu1 %v5563_v28  ;;  %v4638_v32 = vld [vmem:[%s5423_s27 + $0x74] ss:$8 sps:$4 sm:$0xff]   ;;  %v4604_v33 = vld [vmem:[%s5406_s8 + $0xd0] ss:$8 sps:$4 sm:$0xff]   ;;  %v4608_v34 = vld [vmem:[%s5406_s8 + $0xc4] ss:$8 sps:$4 sm:$0xff]  }
 0x1c7   : > { %1737 = vmatpush1.bf16.msra.mxu1 %v4571_v3  ;;  %v4636_v36 = vld [vmem:[%s5423_s27 + $0x70] ss:$8 sps:$4 sm:$0xff]   ;;  %v4651_v37 = vld [vmem:[%s5423_s27 + $0x64] ss:$8 sps:$4 sm:$0xff]   ;;  %v4610_v38 = vld [vmem:[%s5406_s8 + $0xc0] ss:$8 sps:$4 sm:$0xff]  }
 0x1c8   : > { %1738 = vmatprep.subr.bf16.mxu1 %v4572_v4  ;;  %v4614_v39 = vld [vmem:[%s5406_s8 + $0xb4] ss:$8 sps:$4 sm:$0xff]   ;;  %v4649_v40 = vld [vmem:[%s5423_s27 + $0x60] ss:$8 sps:$4 sm:$0xff]   ;;  %v4616_v41 = vld [vmem:[%s5406_s8 + $0xb0] ss:$8 sps:$4 sm:$0xff]  }
 0x1c9   : > { %1384 = vmatpush1.bf16.msra.mxu0 %v4601_v14  ;;  %v4620_v42 = vld [vmem:[%s5406_s8 + $0xa4] ss:$8 sps:$4 sm:$0xff]   ;;  %v4664_v44 = vld [vmem:[%s5423_s27 + $0x54] ss:$8 sps:$4 sm:$0xff]   ;;  %v4662_v45 = vld [vmem:[%s5423_s27 + $0x50] ss:$8 sps:$4 sm:$0xff]  }
 0x1ca   : > { %1385 = vmatprep.subr.bf16.mxu0 %v4605_v15  ;;  %v5583_v43 = vld [vmem:[#allocation2 + $0x8] sm:$0xff]   ;;  %v4626_v47 = vld [vmem:[%s5406_s8 + $0x94] ss:$8 sps:$4 sm:$0xff]   ;;  %v4628_v50 = vld [vmem:[%s5406_s8 + $0x90] ss:$8 sps:$4 sm:$0xff]   ;;  %vm3351_vm1 = vcmask 64512  }
 0x1cb   : > { %1739 = vmatpush1.bf16.msra.mxu1 %v4574_v7  ;;  %v4622_v46 = vld [vmem:[%s5406_s8 + $0xa0] ss:$8 sps:$4 sm:$0xff]   ;;  %v4677_v49 = vld [vmem:[%s5423_s27 + $0x44] ss:$8 sps:$4 sm:$0xff]   ;;  %v5595_v52 = vld [vmem:[#allocation2 + $0x10] sm:$0xff]   ;;  %p4152_p6 = scmp.ne.s32.totalorder %s5080_s15, 3 }
 0x1cc   : > { %1740 = vmatprep.subr.bf16.mxu1 %v4575_v9  ;;  %v4675_v48 = vld [vmem:[%s5423_s27 + $0x40] ss:$8 sps:$4 sm:$0xff]   ;;  %v4630_v51 = vld [vmem:[%s5406_s8 + $0x84] ss:$8 sps:$4 sm:$0xff]   ;;  %v4641_v54 = vld [vmem:[%s5408_s23 + $0x74] ss:$8 sps:$4 sm:$0xff]  }
 0x1cd   : > { %1386 = vmatpush1.bf16.msra.mxu0 %v4607_v18  ;;  %v4632_v53 = vld [vmem:[%s5406_s8 + $0x80] ss:$8 sps:$4 sm:$0xff]   ;;  %v4688_v55 = vld [vmem:[%s5423_s27 + $0x30] ss:$8 sps:$4 sm:$0xff]   ;;  %v4690_v56 = vld [vmem:[%s5423_s27 + $0x34] ss:$8 sps:$4 sm:$0xff]  }
 0x1ce   : > { %1387 = vmatprep.subr.bf16.mxu0 %v4611_v19  ;;  %v5603_v57 = vld [vmem:[%s5437_s4] ss:$8 sps:$4 sm:$0xff]   ;;  %v4639_v58 = vld [vmem:[%s5408_s23 + $0x70] ss:$8 sps:$4 sm:$0xff]   ;;  %v5608_v60 = vld [vmem:[%s5437_s4 + $0x14] ss:$8 sps:$4 sm:$0xff]  }
 0x1cf   : > { %1741 = vmatpush1.bf16.msra.mxu1 %v4577_v12  ;;  %v4645_v61 = vld [vmem:[%s5408_s23 + $0x64] ss:$8 sps:$4 sm:$0xff]   ;;  %v5611_v62 = vld [vmem:[#allocation2 + $0x18] sm:$0xff]   ;;  %v4643_v63 = vld [vmem:[%s5408_s23 + $0x60] ss:$8 sps:$4 sm:$0xff]  }
 0x1d0   : > { %1742 = vmatprep.subr.bf16.mxu1 %v4578_v13  ;;  %v4701_v0 = vld [vmem:[%s5423_s27 + $0x20] ss:$8 sps:$4 sm:$0xff]   ;;  %v4703_v1 = vld [vmem:[%s5423_s27 + $0x24] ss:$8 sps:$4 sm:$0xff]   ;;  %v4654_v2 = vld [vmem:[%s5408_s23 + $0x54] ss:$8 sps:$4 sm:$0xff]  }
 0x1d1   : > { %1388 = vmatpush1.bf16.msra.mxu0 %v4613_v22  ;;  %v5621_v3 = vld [vmem:[%s5437_s4 + $0x10] ss:$8 sps:$4 sm:$0xff]   ;;  %v4658_v5 = vld [vmem:[%s5408_s23 + $0x44] ss:$8 sps:$4 sm:$0xff]   ;;  %v4716_v8 = vld [vmem:[%s5423_s27 + $0x14] ss:$8 sps:$4 sm:$0xff]  }
 0x1d2   : > { %1389 = vmatprep.subr.bf16.mxu0 %v4617_v23  ;;  %v4652_v4 = vld [vmem:[%s5408_s23 + $0x50] ss:$8 sps:$4 sm:$0xff]   ;;  %v5627_v6 = vld [vmem:[%s5437_s4 + $0x24] ss:$8 sps:$4 sm:$0xff]   ;;  %v4656_v10 = vld [vmem:[%s5408_s23 + $0x40] ss:$8 sps:$4 sm:$0xff]  }
 0x1d3   : > { %1743 = vmatpush1.bf16.msra.mxu1 %v4580_v16  ;;  %v5629_v7 = vld [vmem:[#allocation2 + $0x20] sm:$0xff]   ;;  %v4714_v9 = vld [vmem:[%s5423_s27 + $0x10] ss:$8 sps:$4 sm:$0xff]   ;;  %v4667_v12 = vld [vmem:[%s5408_s23 + $0x34] ss:$8 sps:$4 sm:$0xff]  }
 0x1d4   : > { %1744 = vmatprep.subr.bf16.mxu1 %v4584_v17  ;;  %v5637_v11 = vld [vmem:[%s5437_s4 + $0x20] ss:$8 sps:$4 sm:$0xff]   ;;  %v4665_v13 = vld [vmem:[%s5408_s23 + $0x30] ss:$8 sps:$4 sm:$0xff]   ;;  %v4671_v14 = vld [vmem:[%s5408_s23 + $0x24] ss:$8 sps:$4 sm:$0xff]  }
 0x1d5   : > { %1390 = vmatpush1.bf16.msra.mxu0 %v4619_v26  ;;  %v5645_v15 = vld [vmem:[%s5437_s4 + $0x34] ss:$8 sps:$4 sm:$0xff]   ;;  %v4726_v16 = vld [vmem:[%s5423_s27] ss:$8 sps:$4 sm:$0xff]   ;;  %v4728_v17 = vld [vmem:[%s5423_s27 + $0x4] ss:$8 sps:$4 sm:$0xff]  }
 0x1d6   : > { %1391 = vmatprep.subr.bf16.mxu0 %v4623_v27  ;;  %v5649_v18 = vld [vmem:[#allocation2 + $0x28] sm:$0xff]   ;;  %v4678_v22 = vld [vmem:[%s5408_s23 + $0x10] ss:$8 sps:$4 sm:$0xff]   ;;  %v4693_v27 = vld [vmem:[%s5408_s23 + $0xf4] ss:$8 sps:$4 sm:$0xff]  }
 0x1d7   : > { %1745 = vmatpush1.bf16.msra.mxu1 %v4586_v20  ;;  %v4669_v19 = vld [vmem:[%s5408_s23 + $0x20] ss:$8 sps:$4 sm:$0xff]   ;;  %v4680_v20 = vld [vmem:[%s5408_s23 + $0x14] ss:$8 sps:$4 sm:$0xff]   ;;  %v5661_v23 = vld [vmem:[%s5437_s4 + $0x44] ss:$8 sps:$4 sm:$0xff]  }
 0x1d8   : > { %1746 = vmatprep.subr.bf16.mxu1 %v4590_v21  ;;  %v5656_v21 = vld [vmem:[%s5437_s4 + $0x30] ss:$8 sps:$4 sm:$0xff]   ;;  %v4682_v26 = vld [vmem:[%s5408_s23] ss:$8 sps:$4 sm:$0xff]  }
 0x1d9   : > { %1392 = vmatpush1.bf16.msra.mxu0 %v4625_v31  ;;  %v5677_v31 = vld [vmem:[%s5437_s4 + $0x54] ss:$8 sps:$4 sm:$0xff]  }
 0x1da   : > { %1971 = vmatprep.subr.bf16.mxu0 %v4638_v32  ;;  %v4697_v32 = vld [vmem:[%s5408_s23 + $0xe4] ss:$8 sps:$4 sm:$0xff]  }
 0x1db   : > { %1747 = vmatpush2.bf16.msra.mxu1 %v4592_v24  ;;  %v4684_v24 = vld [vmem:[%s5408_s23 + $0x4] ss:$8 sps:$4 sm:$0xff]  }
 0x1dc   : > { %1748 = vmatprep.subr.bf16.mxu1 %v4596_v25  ;;  %1410 = vmatmul.mubr.bf16.vlgmr.msra.gmra.mxu0 %v5572_v35  ;;  %v5665_v25 = vld [vmem:[#allocation2 + $0x30] sm:$0xff]  }
 0x1dd   : > { %1972 = vmatpush1.bf16.msra.mxu0 %v4636_v36  ;;  %1419 = vmatprep.mubr.bf16.mxu0 %v5106_v59  ;;  %v4706_v36 = vld [vmem:[%s5408_s23 + $0xd4] ss:$8 sps:$4 sm:$0xff]  }
 0x1de   : > { %1973 = vmatprep.subr.bf16.mxu0 %v4651_v37  ;;  %v5688_v37 = vld [vmem:[%s5437_s4 + $0x50] ss:$8 sps:$4 sm:$0xff]  }
 0x1df   : > { %1749 = vmatpush2.bf16.msra.mxu1 %v4598_v29  ;;  %v5672_v29 = vld [vmem:[%s5437_s4 + $0x40] ss:$8 sps:$4 sm:$0xff]  }
 0x1e0   : > { %1750 = vmatprep.subr.bf16.mxu1 %v4602_v30  ;;  %v4691_v30 = vld [vmem:[%s5408_s23 + $0xf0] ss:$8 sps:$4 sm:$0xff]  }
 0x1e1   : > { %1974 = vmatpush1.bf16.msra.mxu0 %v4649_v40  ;;  %v4710_v40 = vld [vmem:[%s5408_s23 + $0xc4] ss:$8 sps:$4 sm:$0xff]  }
 0x1e2   : > { %1975 = vmatprep.subr.bf16.mxu0 %v4664_v44  ;;  %v5704_v44 = vld [vmem:[%s5437_s4 + $0x60] ss:$8 sps:$4 sm:$0xff]  }
 0x1e3   : > { %1751 = vmatpush2.bf16.msra.mxu1 %v4604_v33  ;;  %v5681_v33 = vld [vmem:[#allocation2 + $0x38] sm:$0xff]  }
 0x1e4   : > { %1752 = vmatprep.subr.bf16.mxu1 %v4608_v34  ;;  %1420 = vmatmul.mubr.bf16.gmra.mxu0 %v5583_v43  ;;  %v4695_v34 = vld [vmem:[%s5408_s23 + $0xe0] ss:$8 sps:$4 sm:$0xff]  }
 0x1e5   : > { %1429 = vmatprep.mubr.bf16.mxu0 %v5106_v59  ;;  %1976 = vmatpush1.bf16.msra.mxu0 %v4662_v45  ;;  %v4717_v45 = vld [vmem:[%s5408_s23 + $0xb0] ss:$8 sps:$4 sm:$0xff]  }
 0x1e6   : > { %1977 = vmatprep.subr.bf16.mxu0 %v4677_v49  ;;  %v5718_v49 = vld [vmem:[%s5437_s4 + $0x70] ss:$8 sps:$4 sm:$0xff]  }
 0x1e7   : > { %1753 = vmatpush2.bf16.msra.mxu1 %v4610_v38  ;;  %v4704_v38 = vld [vmem:[%s5408_s23 + $0xd0] ss:$8 sps:$4 sm:$0xff]  }
 0x1e8   : > { %1754 = vmatprep.subr.bf16.mxu1 %v4614_v39  ;;  %v5693_v39 = vld [vmem:[%s5437_s4 + $0x64] ss:$8 sps:$4 sm:$0xff]  }
 0x1e9   : > { %1978 = vmatpush1.bf16.msra.mxu0 %v4675_v48  ;;  %v4721_v48 = vld [vmem:[%s5408_s23 + $0xa0] ss:$8 sps:$4 sm:$0xff]  }
 0x1ea   : > { %1979 = vmatprep.subr.bf16.mxu0 %v4690_v56  ;;  %v4742_v56 = vld [vmem:[%s5415_s9 + $0x50] ss:$8 sps:$4 sm:$0xff]  }
 0x1eb   : > { %1755 = vmatpush2.bf16.msra.mxu1 %v4616_v41  ;;  %v4708_v41 = vld [vmem:[%s5408_s23 + $0xc0] ss:$8 sps:$4 sm:$0xff]  }
 0x1ec   : > { %1756 = vmatprep.subr.bf16.mxu1 %v4620_v42  ;;  %1430 = vmatmul.mubr.bf16.gmra.mxu0 %v5595_v52  ;;  %v4719_v42 = vld [vmem:[%s5408_s23 + $0xb4] ss:$8 sps:$4 sm:$0xff]  }
 0x1ed   : > { %1439 = vmatprep.mubr.bf16.mxu0 %v5106_v59  ;;  %1980 = vmatpush1.bf16.msra.mxu0 %v4688_v55  ;;  %v4744_v55 = vld [vmem:[%s5415_s9 + $0x54] ss:$8 sps:$4 sm:$0xff]  }
 0x1ee   : > { %1981 = vmatprep.subr.bf16.mxu0 %v4703_v1  ;;  %v4759_v1 = vld [vmem:[%s5415_s9 + $0x4] ss:$8 sps:$4 sm:$0xff]  }
 0x1ef   : > { %1757 = vmatpush2.bf16.msra.mxu1 %v4622_v46  ;;  %v5708_v46 = vld [vmem:[%s5437_s4 + $0x74] ss:$8 sps:$4 sm:$0xff]  }
 0x1f0   : > { %1758 = vmatprep.subr.bf16.mxu1 %v4626_v47  ;;  %v4723_v47 = vld [vmem:[%s5408_s23 + $0xa4] ss:$8 sps:$4 sm:$0xff]  }
 0x1f1   : > { %1982 = vmatpush1.bf16.msra.mxu0 %v4701_v0  ;;  %v4754_v0 = vld [vmem:[%s5415_s9 + $0x10] ss:$8 sps:$4 sm:$0xff]  }
 0x1f2   : > { %1983 = vmatprep.subr.bf16.mxu0 %v4716_v8  ;;  %v5772_v8 = vld [vmem:[%s5442_s26 + $0x38] sm:$0xff]  }
 0x1f3   : > { %1759 = vmatpush2.bf16.msra.mxu1 %v4628_v50  ;;  %v4730_v50 = vld [vmem:[%s5408_s23 + $0x90] ss:$8 sps:$4 sm:$0xff]   ;;  %6607 = vst [vmem:[#allocation30_spill] sm:$0xff] %v5772_v8 }
 0x1f4   : > { %1760 = vmatprep.subr.bf16.mxu1 %v4630_v51  ;;  %1440 = vmatmul.mubr.bf16.gmra.mxu0 %v5611_v62  ;;  %v4735_v51 = vld [vmem:[%s5408_s23 + $0x84] ss:$8 sps:$4 sm:$0xff]  }
 0x1f5   : > { %1449 = vmatprep.mubr.bf16.mxu0 %v5106_v59  ;;  %1984 = vmatpush1.bf16.msra.mxu0 %v4714_v9  ;;  %v4770_v9 = vld [vmem:[%s5415_s9 + $0xd4] ss:$8 sps:$4 sm:$0xff]  }
 0x1f6   : > { %1985 = vmatprep.subr.bf16.mxu0 %v4728_v17  ;;  %v4783_v17 = vld [vmem:[%s5415_s9 + $0xa4] ss:$8 sps:$4 sm:$0xff]  }
 0x1f7   : > { %1761 = vmatpush2.bf16.msra.mxu1 %v4632_v53  ;;  %v4733_v53 = vld [vmem:[%s5408_s23 + $0x80] ss:$8 sps:$4 sm:$0xff]  }
 0x1f8   : > { %2244 = vmatprep.subr.bf16.mxu1 %v4641_v54  ;;  %v4739_v54 = vld [vmem:[%s5415_s9 + $0x60] ss:$8 sps:$4 sm:$0xff]  }
 0x1f9   : > { %1986 = vmatpush1.bf16.msra.mxu0 %v4726_v16  ;;  %v4776_v16 = vld [vmem:[%s5415_s9 + $0xb0] ss:$8 sps:$4 sm:$0xff]  }
 0x1fa   : > { %1763 = vmatmul.mubr.bf16.vlgmr.msra.gmra.mxu1 %v5603_v57 }
 0x1fb   : > { %2245 = vmatpush1.bf16.msra.mxu1 %v4639_v58  ;;  %1772 = vmatprep.mubr.bf16.mxu1 %v5608_v60  ;;  %v4745_v58 = vld [vmem:[%s5415_s9 + $0x40] ss:$8 sps:$4 sm:$0xff]  }
 0x1fc   : > { %2246 = vmatprep.subr.bf16.mxu1 %v4645_v61  ;;  %1450 = vmatmul.mubr.bf16.gmra.mxu0 %v5629_v7  ;;  %v4748_v61 = vld [vmem:[%s5415_s9 + $0x30] ss:$8 sps:$4 sm:$0xff]  }
 0x1fd   : > { %1459 = vmatprep.mubr.bf16.mxu0 %v5106_v59 }
 0x1ff   : > { %2247 = vmatpush1.bf16.msra.mxu1 %v4643_v63  ;;  %v4751_v63 = vld [vmem:[%s5415_s9 + $0x20] ss:$8 sps:$4 sm:$0xff]  }
 0x200   : > { %2248 = vmatprep.subr.bf16.mxu1 %v4654_v2  ;;  %v4757_v2 = vld [vmem:[%s5415_s9] ss:$8 sps:$4 sm:$0xff]  }
 0x202   : > { %1773 = vmatmul.mubr.bf16.gmra.mxu1 %v5621_v3 }
 0x203   : > { %2249 = vmatpush1.bf16.msra.mxu1 %v4652_v4  ;;  %1782 = vmatprep.mubr.bf16.mxu1 %v5627_v6  ;;  %v4760_v4 = vld [vmem:[%s5415_s9 + $0xf0] ss:$8 sps:$4 sm:$0xff]  }
 0x204   : > { %2250 = vmatprep.subr.bf16.mxu1 %v4658_v5  ;;  %1460 = vmatmul.mubr.bf16.gmra.mxu0 %v5649_v18  ;;  %v4767_v5 = vld [vmem:[%s5415_s9 + $0xe4] ss:$8 sps:$4 sm:$0xff]  }
 0x205   : > { %1469 = vmatprep.mubr.bf16.mxu0 %v5106_v59 }
 0x207   : > { %2251 = vmatpush1.bf16.msra.mxu1 %v4656_v10  ;;  %v4768_v10 = vld [vmem:[%s5415_s9 + $0xd0] ss:$8 sps:$4 sm:$0xff]  }
 0x208   : > { %2252 = vmatprep.subr.bf16.mxu1 %v4667_v12  ;;  %v4773_v12 = vld [vmem:[%s5415_s9 + $0xc0] ss:$8 sps:$4 sm:$0xff]  }
 0x20a   : > { %1783 = vmatmul.mubr.bf16.gmra.mxu1 %v5637_v11 }
 0x20b   : > { %2253 = vmatpush1.bf16.msra.mxu1 %v4665_v13  ;;  %1792 = vmatprep.mubr.bf16.mxu1 %v5645_v15  ;;  %v5781_v13 = vld [vmem:[%s5442_s26 + $0x70] sm:$0xff]  }
 0x20c   : > { %2254 = vmatprep.subr.bf16.mxu1 %v4671_v14  ;;  %1470 = vmatmul.mubr.bf16.gmra.mxu0 %v5665_v25  ;;  %6608 = vst [vmem:[#allocation31_spill] sm:$0xff] %v5781_v13  ;;  %v5784_v14 = vld [vmem:[%s5442_s26 + $0x30] sm:$0xff]  }
 0x20d   : > { %1479 = vmatprep.mubr.bf16.mxu0 %v5106_v59  ;;  %6609 = vst [vmem:[#allocation32_spill] sm:$0xff] %v5784_v14 }
 0x20f   : > { %2255 = vmatpush1.bf16.msra.mxu1 %v4669_v19  ;;  %v5793_v19 = vld [vmem:[%s5442_s26 + $0x68] sm:$0xff]  }
 0x210   : > { %2256 = vmatprep.subr.bf16.mxu1 %v4680_v20  ;;  %6610 = vst [vmem:[#allocation33_spill] sm:$0xff] %v5793_v19  ;;  %v5796_v20 = vld [vmem:[%s5442_s26 + $0x28] sm:$0xff]  }
 0x211   : > { %6611 = vst [vmem:[#allocation34_spill] sm:$0xff] %v5796_v20 }
 0x212   : > { %1793 = vmatmul.mubr.bf16.gmra.mxu1 %v5656_v21 }
 0x213   : > { %2257 = vmatpush1.bf16.msra.mxu1 %v4678_v22  ;;  %1802 = vmatprep.mubr.bf16.mxu1 %v5661_v23  ;;  %v4784_v22 = vld [vmem:[%s5415_s9 + $0x90] ss:$8 sps:$4 sm:$0xff]  }
 0x214   : > { %2258 = vmatprep.subr.bf16.mxu1 %v4684_v24  ;;  %1480 = vmatmul.mubr.bf16.gmra.mxu0 %v5681_v33  ;;  %v5806_v24 = vld [vmem:[%s5442_s26 + $0x20] sm:$0xff]  }
 0x215   : > { %2003 = vmatprep.mubr.bf16.mxu0 %v5106_v59  ;;  %6613 = vst [vmem:[#allocation36_spill] sm:$0xff] %v5806_v24 }
 0x217   : > { %2259 = vmatpush1.bf16.msra.mxu1 %v4682_v26  ;;  %v4789_v26 = vld [vmem:[%s5415_s9 + $0x80] ss:$8 sps:$4 sm:$0xff]  }
 0x218   : > { %2260 = vmatprep.subr.bf16.mxu1 %v4693_v27  ;;  %v5813_v27 = vld [vmem:[%s5442_s26 + $0x58] sm:$0xff]  }
 0x219   : > { %6614 = vst [vmem:[#allocation37_spill] sm:$0xff] %v5813_v27 }
 0x21a   : > { %1803 = vmatmul.mubr.bf16.gmra.mxu1 %v5672_v29 }
 0x21b   : > { %2261 = vmatpush2.bf16.msra.mxu1 %v4691_v30  ;;  %1812 = vmatprep.mubr.bf16.mxu1 %v5677_v31  ;;  %v5821_v30 = vld [vmem:[%s5442_s26 + $0x50] sm:$0xff]  }
 0x21c   : > { %2262 = vmatprep.subr.bf16.mxu1 %v4697_v32  ;;  %2004 = vmatmul.mubr.bf16.vlgmr.msra.gmra.mxu0 %v5572_v35  ;;  %v4732_v35 = vld [vmem:[%s5408_s23 + $0x94] ss:$8 sps:$4 sm:$0xff]   ;;  %6616 = vst [vmem:[#allocation39_spill] sm:$0xff] %v5821_v30  ;;  %v5829_v32 = vld [vmem:[%s5442_s26 + $0x48] sm:$0xff]  }
 0x21d   : > { %2013 = vmatprep.mubr.bf16.mxu0 %v5106_v59  ;;  %6618 = vst [vmem:[#allocation41_spill] sm:$0xff] %v5829_v32 }
 0x21f   : > { %2263 = vmatpush2.bf16.msra.mxu1 %v4695_v34  ;;  %v5837_v34 = vld [vmem:[%s5442_s26 + $0x40] sm:$0xff]  }
 0x220   : > { %2264 = vmatprep.subr.bf16.mxu1 %v4706_v36  ;;  %6620 = vst [vmem:[#allocation43_spill] sm:$0xff] %v5837_v34  ;;  %v5840_v36 = vld [vmem:[%s5442_s26] sm:$0xff]  }
 0x221   : > { %6621 = vst [vmem:[#allocation44_spill] sm:$0xff] %v5840_v36 }
 0x222   : > { %1813 = vmatmul.mubr.bf16.gmra.mxu1 %v5688_v37 }
 0x223   : > { %2265 = vmatpush2.bf16.msra.mxu1 %v4704_v38  ;;  %1822 = vmatprep.mubr.bf16.mxu1 %v5693_v39 }
 0x224   : > { %2266 = vmatprep.subr.bf16.mxu1 %v4710_v40  ;;  %2014 = vmatmul.mubr.bf16.gmra.mxu0 %v5583_v43  ;;  %v4736_v43 = vld [vmem:[%s5415_s9 + $0x70] ss:$8 sps:$4 sm:$0xff]  }
 0x225   : > { %2023 = vmatprep.mubr.bf16.mxu0 %v5106_v59 }
 0x227   : > { %2267 = vmatpush2.bf16.msra.mxu1 %v4708_v41 }
 0x228   : > { %2268 = vmatprep.subr.bf16.mxu1 %v4719_v42 }
 0x22a   : > { %1823 = vmatmul.mubr.bf16.gmra.mxu1 %v5704_v44 }
 0x22b   : > { %2269 = vmatpush2.bf16.msra.mxu1 %v4717_v45  ;;  %1832 = vmatprep.mubr.bf16.mxu1 %v5708_v46 }
 0x22c   : > { %2270 = vmatprep.subr.bf16.mxu1 %v4723_v47  ;;  %2024 = vmatmul.mubr.bf16.gmra.mxu0 %v5595_v52  ;;  %v4741_v52 = vld [vmem:[%s5415_s9 + $0x64] ss:$8 sps:$4 sm:$0xff]  }
 0x22d   : > { %2033 = vmatprep.mubr.bf16.mxu0 %v5106_v59 }
 0x22f   : > { %2271 = vmatpush2.bf16.msra.mxu1 %v4721_v48 }
 0x230   : > { %2272 = vmatprep.subr.bf16.mxu1 %v4732_v35 }
 0x232   : > { %1833 = vmatmul.mubr.bf16.gmra.mxu1 %v5718_v49 }
 0x233   : > { %2273 = vmatpush2.bf16.msra.mxu1 %v4730_v50  ;;  %2276 = vmatprep.mubr.bf16.mxu1 %v5563_v28  ;;  %v4738_v28 = vld [vmem:[%s5415_s9 + $0x74] ss:$8 sps:$4 sm:$0xff]  }
 0x234   : > { %2274 = vmatprep.subr.bf16.mxu1 %v4735_v51  ;;  %2034 = vmatmul.mubr.bf16.gmra.mxu0 %v5611_v62  ;;  %v4753_v62 = vld [vmem:[%s5415_s9 + $0x24] ss:$8 sps:$4 sm:$0xff]  }
 0x235   : > { %2043 = vmatprep.mubr.bf16.mxu0 %v5106_v59  ;;  %2917 = vmatprep.subr.bf16.mxu0 %v4738_v28 }
 0x236   : > { %2918 = vmatpush1.bf16.msra.mxu0 %v4736_v43 }
 0x237   : > { %2275 = vmatpush2.bf16.msra.mxu1 %v4733_v53  ;;  %2919 = vmatprep.subr.bf16.mxu0 %v4741_v52 }
 0x23a   : > { %2277 = vmatmul.mubr.bf16.vlgmr.msra.gmra.mxu1 %v5603_v57  ;;  %2920 = vmatpush1.bf16.msra.mxu0 %v4739_v54  ;;  %v4747_v57 = vld [vmem:[%s5415_s9 + $0x44] ss:$8 sps:$4 sm:$0xff]  }
 0x23b   : > { %2286 = vmatprep.mubr.bf16.mxu1 %v5608_v60  ;;  %2921 = vmatprep.subr.bf16.mxu0 %v4744_v55  ;;  %v4750_v60 = vld [vmem:[%s5415_s9 + $0x34] ss:$8 sps:$4 sm:$0xff]  }
 0x23c   : > { %2044 = vmatmul.mubr.bf16.gmra.mxu0 %v5629_v7  ;;  %v4763_v7 = vld [vmem:[%s5442_s26 + $0x78] sm:$0xff]  }
 0x23d   : > { %2053 = vmatprep.mubr.bf16.mxu0 %v5106_v59  ;;  %4391 = vmatprep.subr.bf16.mxu1 %v4763_v7 }
 0x23e   : > { %2922 = vmatpush1.bf16.msra.mxu0 %v4742_v56  ;;  %4399 = vmatpush3.bf16.msra.mxu1 %v5772_v8 }
 0x23f   : > { %2923 = vmatprep.subr.bf16.mxu0 %v4747_v57  ;;  %4392 = vmatprep.subr.bf16.mxu1 %v5781_v13 }
 0x242   : > { %2287 = vmatmul.mubr.bf16.gmra.mxu1 %v5621_v3  ;;  %2924 = vmatpush1.bf16.msra.mxu0 %v4745_v58  ;;  %v4762_v3 = vld [vmem:[%s5415_s9 + $0xf4] ss:$8 sps:$4 sm:$0xff]  }
 0x243   : > { %2296 = vmatprep.mubr.bf16.mxu1 %v5627_v6  ;;  %2925 = vmatprep.subr.bf16.mxu0 %v4750_v60  ;;  %v4765_v6 = vld [vmem:[%s5415_s9 + $0xe0] ss:$8 sps:$4 sm:$0xff]  }
 0x244   : > { %2054 = vmatmul.mubr.bf16.gmra.mxu0 %v5649_v18  ;;  %4400 = vmatpush3.bf16.msra.mxu1 %v5784_v14  ;;  %v4781_v18 = vld [vmem:[%s5415_s9 + $0xa0] ss:$8 sps:$4 sm:$0xff]  }
 0x245   : > { %2063 = vmatprep.mubr.bf16.mxu0 %v5106_v59  ;;  %4393 = vmatprep.subr.bf16.mxu1 %v5793_v19 }
 0x246   : > { %2926 = vmatpush1.bf16.msra.mxu0 %v4748_v61 }
 0x247   : > { %2927 = vmatprep.subr.bf16.mxu0 %v4753_v62 }
 0x248   : > { %4401 = vmatpush3.bf16.msra.mxu1 %v5796_v20 }
 0x24a   : > { %2297 = vmatmul.mubr.bf16.gmra.mxu1 %v5637_v11  ;;  %2928 = vmatpush1.bf16.msra.mxu0 %v4751_v63  ;;  %v4775_v11 = vld [vmem:[%s5415_s9 + $0xc4] ss:$8 sps:$4 sm:$0xff]  }
 0x24b   : > { %2306 = vmatprep.mubr.bf16.mxu1 %v5645_v15  ;;  %v4778_v15 = vld [vmem:[%s5415_s9 + $0xb4] ss:$8 sps:$4 sm:$0xff]  }
 0x24c   : > { %2064 = vmatmul.mubr.bf16.gmra.mxu0 %v5665_v25  ;;  %v4791_v25 = vld [vmem:[%s5415_s9 + $0x84] ss:$8 sps:$4 sm:$0xff]  }
 0x24d   : > { %2073 = vmatprep.mubr.bf16.mxu0 %v5106_v59  ;;  %v4756_v59 = vld [vmem:[%s5415_s9 + $0x14] ss:$8 sps:$4 sm:$0xff]  }
 0x24e   : > { %2929 = vmatprep.subr.bf16.mxu0 %v4756_v59 }
 0x24f   : > { %2930 = vmatpush1.bf16.msra.mxu0 %v4754_v0 }
 0x250   : > { %2931 = vmatprep.subr.bf16.mxu0 %v4759_v1 }
 0x252   : > { %2307 = vmatmul.mubr.bf16.gmra.mxu1 %v5656_v21  ;;  %v4786_v21 = vld [vmem:[%s5415_s9 + $0x94] ss:$8 sps:$4 sm:$0xff]   ;;  %s6667_s9 = sld [smem:[#allocation65_spill]] (!%p4152_p6) }
 0x253   : > { %2316 = vmatprep.mubr.bf16.mxu1 %v5661_v23  ;;  %2932 = vmatpush1.bf16.msra.mxu0 %v4757_v2  ;;  %v5803_v23 = vld [vmem:[%s5442_s26 + $0x60] sm:$0xff]  }
 0x254   : > { %2074 = vmatmul.mubr.bf16.gmra.mxu0 %v5681_v33  ;;  %2933 = vmatprep.subr.bf16.mxu0 %v4762_v3  ;;  %6612 = vst [vmem:[#allocation35_spill] sm:$0xff] %v5803_v23  ;;  %v5832_v33 = vld [vmem:[%s5442_s26 + $0x8] sm:$0xff]  }
 0x255   : > { %4394 = vmatprep.subr.bf16.mxu1 %v5803_v23  ;;  %6619 = vst [vmem:[#allocation42_spill] sm:$0xff] %v5832_v33 }
 0x256   : > { %4402 = vmatpush3.bf16.msra.mxu1 %v5806_v24 }
 0x257   : > { %2934 = vmatpush2.bf16.msra.mxu0 %v4760_v4  ;;  %4395 = vmatprep.subr.bf16.mxu1 %v5813_v27 }
 0x258   : > { %2935 = vmatprep.subr.bf16.mxu0 %v4767_v5 }
 0x25a   : > { %2317 = vmatmul.mubr.bf16.gmra.mxu1 %v5672_v29  ;;  %v5816_v29 = vld [vmem:[%s5442_s26 + $0x18] sm:$0xff]  }
 0x25b   : > { %2326 = vmatprep.mubr.bf16.mxu1 %v5677_v31  ;;  %2936 = vmatpush2.bf16.msra.mxu0 %v4765_v6  ;;  %6615 = vst [vmem:[#allocation38_spill] sm:$0xff] %v5816_v29  ;;  %v5824_v31 = vld [vmem:[%s5442_s26 + $0x10] sm:$0xff]  }
 0x25c   : > { %2937 = vmatprep.subr.bf16.mxu0 %v4770_v9  ;;  %4403 = vmatpush3.bf16.msra.mxu1 %v5816_v29  ;;  %6617 = vst [vmem:[#allocation40_spill] sm:$0xff] %v5824_v31 }
 0x25d   : > { %4396 = vmatprep.subr.bf16.mxu1 %v5821_v30 }
 0x25f   : > { %2938 = vmatpush2.bf16.msra.mxu0 %v4768_v10 }
 0x260   : > { %2939 = vmatprep.subr.bf16.mxu0 %v4775_v11  ;;  %4404 = vmatpush3.bf16.msra.mxu1 %v5824_v31 }
 0x261   : > { %4397 = vmatprep.subr.bf16.mxu1 %v5829_v32 }
 0x262   : > { %2327 = vmatmul.mubr.bf16.gmra.mxu1 %v5688_v37 }
 0x263   : > { %2336 = vmatprep.mubr.bf16.mxu1 %v5693_v39  ;;  %2940 = vmatpush2.bf16.msra.mxu0 %v4773_v12 }
 0x264   : > { %2941 = vmatprep.subr.bf16.mxu0 %v4778_v15  ;;  %4405 = vmatpush3.bf16.msra.mxu1 %v5832_v33 }
 0x265   : > { %4398 = vmatprep.subr.bf16.mxu1 %v5837_v34 }
 0x267   : > { %2942 = vmatpush2.bf16.msra.mxu0 %v4776_v16 }
 0x268   : > { %2943 = vmatprep.subr.bf16.mxu0 %v4783_v17  ;;  %4406 = vmatpush3.bf16.msra.mxu1 %v5840_v36 }
 0x26a   : > { %2337 = vmatmul.mubr.bf16.gmra.mxu1 %v5704_v44 }
 0x26b   : > { %2346 = vmatprep.mubr.bf16.mxu1 %v5708_v46  ;;  %2944 = vmatpush2.bf16.msra.mxu0 %v4781_v18 }
 0x26c   : > { %2945 = vmatprep.subr.bf16.mxu0 %v4786_v21 }
 0x26f   : > { %2946 = vmatpush2.bf16.msra.mxu0 %v4784_v22 }
 0x270   : > { %2947 = vmatprep.subr.bf16.mxu0 %v4791_v25 }
 0x272   : > { %2347 = vmatmul.mubr.bf16.gmra.mxu1 %v5718_v49 }
 0x273   : > { %2948 = vmatpush2.bf16.msra.mxu0 %v4789_v26 }
 0x274   : > { %4311 = vmatprep.subr.bf16.mxu0 %v4763_v7 }
 0x29c   : > { %v1411_v37 = vpop.f32.mrf.mxu0 }
 0x29e   : > { %v1413_v38 = vpop.f32.mrf.mxu0 }
 0x2a0   : > { %v1415_v39 = vpop.f32.mrf.mxu0 }
 0x2a2   : > { %v1417_v40 = vpop.f32.mrf.mxu0 }
 0x2a4   : > { %v1421_v41 = vpop.f32.mrf.mxu0 }
 0x2a6   : > { %v1423_v42 = vpop.f32.mrf.mxu0 }
 0x2a8   : > { %v1425_v44 = vpop.f32.mrf.mxu0 }
 0x2aa   : > { %v1427_v45 = vpop.f32.mrf.mxu0 }
 0x2ac   : > { %v1431_v46 = vpop.f32.mrf.mxu0 }
 0x2ae   : > { %v1433_v47 = vpop.f32.mrf.mxu0 }
 0x2b0   : > { %v1435_v48 = vpop.f32.mrf.mxu0 }
 0x2b2   : > { %v5844_v49 = vpop.f32.mrf.mxu0 }
 0x2b4   : > { %v5846_v51 = vpop.f32.mrf.mxu0 }
 0x2b6   : > { %v5848_v28 = vpop.f32.mrf.mxu0 }
 0x2b8   : > { %v5852_v54 = vpop.f32.mrf.mxu0 }
 0x2ba   : > { %v1764_v35 = vpop.f32.mrf.mxu1  ;;  %v5858_v58 = vpop.f32.mrf.mxu0 }
 0x2bb   : > { %v5850_v43 = vadd.f32 %v1764_v35, %v1411_v37 }
 0x2bc   : > { %v1766_v50 = vpop.f32.mrf.mxu1  ;;  %v5861_v62 = vpop.f32.mrf.mxu0 }
 0x2bd   : > { %v5854_v55 = vadd.f32 %v1766_v50, %v1413_v38  ;;  %v2389_v60 = vmul.f32 0.044715, %v5850_v43 }
 0x2be   : > { %v1768_v53 = vpop.f32.mrf.mxu1  ;;  %v5867_v2 = vpop.f32.mrf.mxu0 }
 0x2bf   : > { %v5856_v56 = vadd.f32 %v1768_v53, %v1415_v39  ;;  %v2390_v63 = vmul.f32 0.044715, %v5854_v55  ;;  %v2421_v4 = vmul.f32 %v2389_v60, %v5850_v43 }
 0x2c0   : > { %v1770_v52 = vpop.f32.mrf.mxu1  ;;  %v5872_v6 = vpop.f32.mrf.mxu0 }
 0x2c1   : > { %v2391_v59 = vmul.f32 0.044715, %v5856_v56  ;;  %v5865_v0 = vadd.f32 %v1770_v52, %v1417_v40  ;;  %v2422_v7 = vmul.f32 %v2390_v63, %v5854_v55  ;;  %v2453_v22 = vmul.f32 %v2421_v4, %v5850_v43 }
 0x2c2   : > { %v1774_v57 = vpop.f32.mrf.mxu1  ;;  %v5879_v15 = vpop.f32.mrf.mxu0 }
 0x2c3   : > { %v5869_v3 = vadd.f32 %v1774_v57, %v1421_v41  ;;  %v2423_v10 = vmul.f32 %v2391_v59, %v5856_v56  ;;  %v2392_v11 = vmul.f32 0.044715, %v5865_v0  ;;  %v2454_v26 = vmul.f32 %v2422_v7, %v5854_v55 }
 0x2c4   : > { %v1776_v61 = vpop.f32.mrf.mxu1  ;;  %v5884_v21 = vpop.f32.mrf.mxu0  ;;  %v2485_v57 = vadd.f32 %v2453_v22, %v5850_v43  ;;  %v2360_v23 = vmul.f32 0.5, %v5865_v0 }
 0x2c5   : > { %v5875_v9 = vadd.f32 %v1776_v61, %v1423_v42  ;;  %v2393_v16 = vmul.f32 0.044715, %v5869_v3  ;;  %v2424_v37 = vmul.f32 %v2392_v11, %v5865_v0  ;;  %v2455_v41 = vmul.f32 %v2423_v10, %v5856_v56 }
 0x2c6   : > { %v1778_v1 = vpop.f32.mrf.mxu1  ;;  %v5892_v40 = vpop.f32.mrf.mxu0  ;;  %v2486_v61 = vadd.f32 %v2454_v26, %v5854_v55 }
 0x2c7   : > { %v5882_v17 = vadd.f32 %v1778_v1, %v1425_v44  ;;  %v2394_v25 = vmul.f32 0.044715, %v5875_v9  ;;  %v2425_v42 = vmul.f32 %v2393_v16, %v5869_v3 }
 0x2c8   : > { %v1780_v5 = vpop.f32.mrf.mxu1  ;;  %v5901_v52 = vpop.f32.mrf.mxu0 }
 0x2c9   : > { %v5890_v38 = vadd.f32 %v1780_v5, %v1427_v45  ;;  %v2395_v44 = vmul.f32 0.044715, %v5882_v17  ;;  %v2426_v45 = vmul.f32 %v2394_v25, %v5875_v9  ;;  %v2457_v7 = vmul.f32 %v2425_v42, %v5869_v3 }
 0x2ca   : > { %v1784_v12 = vpop.f32.mrf.mxu1  ;;  %v5909_v1 = vpop.f32.mrf.mxu0 }
 0x2cb   : > { %v5897_v35 = vadd.f32 %v1784_v12, %v1431_v46  ;;  %v2396_v63 = vmul.f32 0.044715, %v5890_v38  ;;  %v2487_v46 = vadd.f32 %v2455_v41, %v5856_v56  ;;  %v2427_v4 = vmul.f32 %v2395_v44, %v5882_v17 }
 0x2cc   : > { %v1786_v18 = vpop.f32.mrf.mxu1  ;;  %v5917_v11 = vpop.f32.mrf.mxu0  ;;  %v2517_v12 = vmul.f32 0.7978845, %v2485_v57  ;;  %v2458_v22 = vmul.f32 %v2426_v45, %v5875_v9  ;;  %v2489_v44 = vadd.f32 %v2457_v7, %v5869_v3 }
 0x2cd   : > { %v5899_v50 = vadd.f32 %v1786_v18, %v1433_v47  ;;  %v2456_v47 = vmul.f32 %v2424_v37, %v5865_v0  ;;  %v2397_v5 = vmul.f32 0.044715, %v5897_v35  ;;  %v2518_v18 = vmul.f32 0.7978845, %v2486_v61 }
 0x2ce   : > { %v1788_v39 = vpop.f32.mrf.mxu1  ;;  %v2428_v25 = vmul.f32 %v2396_v63, %v5890_v38  ;;  %v5922_v37 = vpop.f32.mrf.mxu0  ;;  %v2459_v36 = vmul.f32 %v2427_v4, %v5882_v17  ;;  %4800 = vtanh.f32 %v2517_v12 }
 0x2cf   : > { %v5905_v60 = vadd.f32 %v1788_v39, %v1435_v48  ;;  %v2398_v48 = vmul.f32 0.044715, %v5899_v50  ;;  %v2519_v39 = vmul.f32 0.7978845, %v2487_v46  ;;  %v2488_v41 = vadd.f32 %v2456_v47, %v5865_v0 }
 0x2d0   : > { %v1790_v53 = vpop.f32.mrf.mxu1  ;;  %v2429_v42 = vmul.f32 %v2397_v5, %v5897_v35  ;;  %v5934_v63 = vpop.f32.mrf.mxu0  ;;  %4802 = vtanh.f32 %v2518_v18  ;;  %v2490_v47 = vadd.f32 %v2458_v22, %v5875_v9  ;;  %v2491_v34 = vadd.f32 %v2459_v36, %v5882_v17 }
 0x2d1   : > { %v2399_v16 = vmul.f32 0.044715, %v5905_v60  ;;  %v2430_v57 = vmul.f32 %v2398_v48, %v5899_v50  ;;  %v5930_v61 = vadd.f32 %v1790_v53, %v5844_v49  ;;  %4804 = vtanh.f32 %v2519_v39 }
 0x2d2   : > { %v1794_v59 = vpop.f32.mrf.mxu1  ;;  %v5940_v7 = vpop.f32.mrf.mxu0  ;;  %v2520_v4 = vmul.f32 0.7978845, %v2488_v41  ;;  %v2460_v48 = vmul.f32 %v2428_v25, %v5890_v38  ;;  %v2521_v53 = vmul.f32 0.7978845, %v2489_v44  ;;  %v2461_v12 = vmul.f32 %v2429_v42, %v5897_v35 }
 0x2d3   : > { %v2431_v46 = vmul.f32 %v2399_v16, %v5905_v60  ;;  %v5944_v49 = vadd.f32 %v1794_v59, %v5846_v51  ;;  %v2400_v16 = vmul.f32 0.044715, %v5930_v61  ;;  %v2462_v33 = vmul.f32 %v2430_v57, %v5899_v50 }
 0x2d4   : > { %v1796_v10 = vpop.f32.mrf.mxu1  ;;  %v5951_v22 = vpop.f32.mrf.mxu0  ;;  %v2522_v39 = vmul.f32 0.7978845, %v2490_v47  ;;  %4806 = vtanh.f32 %v2520_v4  ;;  %v2492_v36 = vadd.f32 %v2460_v48, %v5890_v38  ;;  %v2523_v42 = vmul.f32 0.7978845, %v2491_v34 }
 0x2d5   : > { %6622 = vst [vmem:[#allocation45_spill] sm:$0xff] %v5951_v22  ;;  %v2463_v41 = vmul.f32 %v2431_v46, %v5905_v60  ;;  %v2401_v59 = vmul.f32 0.044715, %v5944_v49  ;;  %4808 = vtanh.f32 %v2521_v53  ;;  %v2493_v44 = vadd.f32 %v2461_v12, %v5897_v35 }
 0x2d6   : > { %v1798_v26 = vpop.f32.mrf.mxu1  ;;  %v5957_v51 = vpop.f32.mrf.mxu0  ;;  %v2432_v32 = vmul.f32 %v2400_v16, %v5930_v61  ;;  %v5964_v57 = vadd.f32 %v1796_v10, %v5848_v28  ;;  %v2494_v31 = vadd.f32 %v2462_v33, %v5899_v50  ;;  %4810 = vtanh.f32 %v2522_v39 }
 0x2d7   : > { %6623 = vst [vmem:[#allocation46_spill] sm:$0xff] %v5957_v51  ;;  %v2495_v4 = vadd.f32 %v2463_v41, %v5905_v60  ;;  %v2524_v34 = vmul.f32 0.7978845, %v2492_v36  ;;  %v2433_v12 = vmul.f32 %v2401_v59, %v5944_v49  ;;  %4812 = vtanh.f32 %v2523_v42 }
 0x2d8   : > { %v5932_v45 = vpop.f32.mrf.mxu1  ;;  %v5968_v46 = vpop.f32.mrf.mxu0  ;;  %v2525_v16 = vmul.f32 0.7978845, %v2493_v44  ;;  %v2402_v28 = vmul.f32 0.044715, %v5964_v57  ;;  %v5979_v10 = vadd.f32 %v1798_v26, %v5852_v54  ;;  %v2526_v39 = vmul.f32 0.7978845, %v2494_v31 }
 0x2d9   : > { %6624 = vst [vmem:[#allocation47_spill] sm:$0xff] %v5968_v46  ;;  %v2464_v41 = vmul.f32 %v2432_v32, %v5930_v61  ;;  %v2527_v27 = vmul.f32 0.7978845, %v2495_v4  ;;  %v2357_v42 = vmul.f32 0.5, %v5850_v43  ;;  %v2358_v44 = vmul.f32 0.5, %v5854_v55 }
 0x2da   : > { %v5938_v5 = vpop.f32.mrf.mxu1  ;;  %v5974_v53 = vpop.f32.mrf.mxu0  ;;  %4814 = vtanh.f32 %v2524_v34  ;;  %v2359_v26 = vmul.f32 0.5, %v5856_v56  ;;  %v2465_v31 = vmul.f32 %v2433_v12, %v5944_v49  ;;  %v2434_v32 = vmul.f32 %v2402_v28, %v5964_v57 }
 0x2db   : > { %6625 = vst [vmem:[#allocation48_spill] sm:$0xff] %v5974_v53  ;;  %v4801_v29 = vpop.eup %4800  ;;  %4816 = vtanh.f32 %v2525_v16  ;;  %v2403_v4 = vmul.f32 0.044715, %v5979_v10  ;;  %v2496_v43 = vadd.f32 %v2464_v41, %v5930_v61  ;;  %v6004_v55 = vadd.f32 %v5932_v45, %v5858_v58 }
 0x2dc   : > { %v5949_v18 = vpop.f32.mrf.mxu1  ;;  %v5983_v33 = vpop.f32.mrf.mxu0  ;;  %4818 = vtanh.f32 %v2526_v39  ;;  %v2361_v56 = vmul.f32 0.5, %v5869_v3  ;;  %v6008_v0 = vmul.f32 0.5, %v5875_v9  ;;  %v6012_v34 = vadd.f32 %v5938_v5, %v5861_v62 }
 0x2dd   : > { %v4803_v24 = vpop.eup %4802  ;;  %4820 = vtanh.f32 %v2527_v27  ;;  %v2581_v16 = vadd.f32 1.0, %v4801_v29  ;;  %v6019_v39 = vmul.f32 0.5, %v5882_v17  ;;  %v6022_v58 = vmul.f32 0.5, %v5890_v38 }
 0x2de   : > { %v5955_v25 = vpop.f32.mrf.mxu1  ;;  %v5988_v59 = vpop.f32.mrf.mxu0  ;;  %6626 = vst [vmem:[#allocation49_spill] sm:$0xff] %v6012_v34  ;;  %v2582_v45 = vadd.f32 1.0, %v4803_v24  ;;  %v6025_v27 = vmul.f32 0.5, %v5897_v35  ;;  %v2497_v62 = vadd.f32 %v2465_v31, %v5944_v49  ;;  %v2435_v41 = vmul.f32 %v2403_v4, %v5979_v10 }
 0x2df   : > { %v4805_v54 = vpop.eup %4804  ;;  %v6031_v29 = vadd.f32 %v5949_v18, %v5867_v2  ;;  %v2528_v38 = vmul.f32 0.7978845, %v2496_v43  ;;  %v2466_v24 = vmul.f32 %v2434_v32, %v5964_v57  ;;  %v6040_v35 = vmul.f32 0.5, %v5899_v50 }
 0x2e0   : > { %v5966_v47 = vpop.f32.mrf.mxu1  ;;  %v5999_v19 = vpop.f32.mrf.mxu0  ;;  %v2583_v9 = vadd.f32 1.0, %v4805_v54  ;;  %v2404_v54 = vmul.f32 0.044715, %v6004_v55  ;;  %v6043_v31 = vmul.f32 0.5, %v5905_v60  ;;  %v6046_v4 = vmul.f32 0.5, %v5930_v61 }
 0x2e1   : > { %v4807_v3 = vpop.eup %4806  ;;  %v2405_v18 = vmul.f32 0.044715, %v6012_v34  ;;  %v6051_v53 = vadd.f32 %v5955_v25, %v5872_v6  ;;  %v6055_v32 = vmul.f32 %v2581_v16, %v2357_v42  ;;  %v6059_v46 = vmul.f32 %v2582_v45, %v2358_v44 }
 0x2e2   : > { %v5972_v48 = vpop.f32.mrf.mxu1  ;;  %v6016_v28 = vpop.f32.mrf.mxu0  ;;  %v2584_v50 = vadd.f32 1.0, %v4807_v3  ;;  %v6061_v60 = vmul.f32 %v2583_v9, %v2359_v26  ;;  %v2529_v51 = vmul.f32 0.7978845, %v2497_v62  ;;  %4822 = vtanh.f32 %v2528_v38 }
 0x2e3   : > { %v4809_v5 = vpop.eup %4808  ;;  %v2498_v25 = vadd.f32 %v2466_v24, %v5964_v57  ;;  %v2467_v42 = vmul.f32 %v2435_v41, %v5979_v10  ;;  %v2436_v16 = vmul.f32 %v2404_v54, %v6004_v55  ;;  %v6073_v44 = vadd.f32 %v5966_v47, %v5879_v15 }
 0x2e4   : > { %v5981_v30 = vpop.f32.mrf.mxu1  ;;  %v6035_v14 = vpop.f32.mrf.mxu0  ;;  %v2585_v61 = vadd.f32 1.0, %v4809_v5  ;;  %v6076_v3 = vmul.f32 0.5, %v5944_v49  ;;  %v2437_v45 = vmul.f32 %v2405_v18, %v6012_v34  ;;  %v2407_v9 = vmul.f32 0.044715, %v6051_v53 }
 0x2e5   : > { %6627 = vst [vmem:[#allocation50_spill] sm:$0xff] %v6035_v14  ;;  %v4811_v2 = vpop.eup %4810  ;;  %v2406_v14 = vmul.f32 0.044715, %v6031_v29  ;;  %v6082_v5 = vmul.f32 %v2584_v50, %v2360_v23  ;;  %v6087_v41 = vmul.f32 0.5, %v5964_v57  ;;  %v6091_v15 = vadd.f32 %v5972_v48, %v5884_v21 }
 0x2e6   : > { %v5986_v36 = vpop.f32.mrf.mxu1  ;;  %v6057_v13 = vpop.f32.mrf.mxu0  ;;  %v2586_v26 = vadd.f32 1.0, %v4811_v2  ;;  %v6095_v49 = vadd.f32 %v5981_v30, %v5892_v40  ;;  %4824 = vtanh.f32 %v2529_v51  ;;  %v6100_v18 = vmul.f32 %v2585_v61, %v2361_v56 }
 0x2e7   : > { %v4813_v8 = vpop.eup %4812  ;;  %6628 = vst [vmem:[#allocation51_spill] sm:$0xff] %v6087_v41  ;;  %v2438_v23 = vmul.f32 %v2406_v14, %v6031_v29  ;;  %v2530_v50 = vmul.f32 0.7978845, %v2498_v25  ;;  %v2499_v41 = vadd.f32 %v2467_v42, %v5979_v10  ;;  %v2408_v48 = vmul.f32 0.044715, %v6073_v44 }
 0x2e8   : > { %v5997_v20 = vpop.f32.mrf.mxu1  ;;  %v6066_v6 = vpop.f32.mrf.mxu0  ;;  %v2587_v47 = vadd.f32 1.0, %v4813_v8  ;;  %6629 = vst [vmem:[#allocation52_spill] sm:$0xff] %v6100_v18  ;;  %v6108_v30 = vadd.f32 %v5986_v36, %v5901_v52  ;;  %v6111_v8 = vmul.f32 %v2586_v26, %v6008_v0  ;;  %v6114_v14 = vmul.f32 0.5, %v5979_v10 }
 0x2e9   : > { %v4815_v24 = vpop.eup %4814  ;;  %v2439_v51 = vmul.f32 %v2407_v9, %v6051_v53  ;;  %v6119_v56 = vadd.f32 %v5997_v20, %v5909_v1  ;;  %v2468_v52 = vmul.f32 %v2436_v16, %v6004_v55  ;;  %v2409_v36 = vmul.f32 0.044715, %v6091_v15 }
 0x2ea   : > { %v6014_v12 = vpop.f32.mrf.mxu1  ;;  %v6084_v38 = vpop.f32.mrf.mxu0  ;;  %6631 = vst [vmem:[#allocation54_spill] sm:$0xff] %v6114_v14  ;;  %v2588_v42 = vadd.f32 1.0, %v4815_v24  ;;  %v2410_v0 = vmul.f32 0.044715, %v6095_v49  ;;  %v6129_v10 = vmul.f32 %v2587_v47, %v6019_v39  ;;  %4826 = vtanh.f32 %v2530_v50 }
 0x2eb   : > { %v4817_v54 = vpop.eup %4816  ;;  %v2531_v1 = vmul.f32 0.7978845, %v2499_v41  ;;  %v2440_v24 = vmul.f32 %v2408_v48, %v6073_v44  ;;  %v2411_v16 = vmul.f32 0.044715, %v6108_v30  ;;  %v2470_v18 = vmul.f32 %v2438_v23, %v6031_v29 }
 0x2ec   : > { %v6033_v17 = vpop.f32.mrf.mxu1  ;;  %v6102_v57 = vpop.f32.mrf.mxu0  ;;  %v2589_v26 = vadd.f32 1.0, %v4817_v54  ;;  %v2412_v39 = vmul.f32 0.044715, %v6119_v56  ;;  %v6141_v54 = vmul.f32 %v2588_v42, %v6022_v58  ;;  %v6146_v50 = vmul.f32 0.5, %v6004_v55 }
 0x2ed   : > { %6630 = vst [vmem:[#allocation53_spill] sm:$0xff] %v6102_v57  ;;  %v4819_v21 = vpop.eup %4818  ;;  %v2469_v57 = vmul.f32 %v2437_v45, %v6012_v34  ;;  %v2500_v45 = vadd.f32 %v2468_v52, %v6004_v55  ;;  %v6150_v41 = vmul.f32 %v2409_v36, %v6091_v15  ;;  %v6157_v23 = vadd.f32 %v6014_v12, %v5917_v11 }
 0x2ee   : > { %v6053_v43 = vpop.f32.mrf.mxu1  ;;  %v4821_v40 = vpop.eup %4820  ;;  %v2590_v20 = vadd.f32 1.0, %v4819_v21  ;;  %v6153_v21 = vmul.f32 %v2410_v0, %v6095_v49  ;;  %v6160_v58 = vmul.f32 %v2589_v26, %v6025_v27  ;;  %v6164_v48 = vadd.f32 %v6033_v17, %v5922_v37 }
 0x2ef   : > { %v6123_v25 = vpop.f32.mrf.mxu0  ;;  %4828 = vtanh.f32 %v2531_v1  ;;  %v2501_v52 = vadd.f32 %v2469_v57, %v6012_v34  ;;  %v4823_v36 = vpop.eup %4822  ;;  %v6173_v11 = vmul.f32 %v2411_v16, %v6108_v30  ;;  %v6179_v27 = vmul.f32 0.5, %v6031_v29 }
 0x2f0   : > { %v6064_v22 = vpop.f32.mrf.mxu1  ;;  %6632 = vst [vmem:[#allocation55_spill] sm:$0xff] %v6123_v25  ;;  %v2591_v25 = vadd.f32 1.0, %v4821_v40  ;;  %v6167_v55 = vmul.f32 %v2590_v20, %v6040_v35  ;;  %v2502_v37 = vadd.f32 %v2470_v18, %v6031_v29  ;;  %v6183_v17 = vmul.f32 %v2412_v39, %v6119_v56 }
 0x2f1   : > { %v6133_v14 = vpop.f32.mrf.mxu0  ;;  %6634 = vst [vmem:[#allocation57_spill] sm:$0xff] %v6179_v27  ;;  %v6187_v35 = vadd.f32 %v6053_v43, %v5934_v63  ;;  %v2532_v26 = vmul.f32 0.7978845, %v2500_v45  ;;  %v2471_v20 = vmul.f32 %v2439_v51, %v6051_v53  ;;  %v6196_v29 = vmul.f32 0.5, %v6051_v53 }
 0x2f2   : > { %v6080_v62 = vpop.f32.mrf.mxu1  ;;  %v6176_v12 = vmul.f32 %v2591_v25, %v6043_v31  ;;  %v2413_v31 = vmul.f32 0.044715, %v6157_v23  ;;  %v2414_v16 = vmul.f32 0.044715, %v6164_v48  ;;  %v2592_v39 = vadd.f32 1.0, %v4823_v36 }
 0x2f3   : > { %6635 = vst [vmem:[#allocation58_spill] sm:$0xff] %v6196_v29  ;;  %v4825_v18 = vpop.eup %4824  ;;  %v2533_v45 = vmul.f32 0.7978845, %v2501_v52  ;;  %v6204_v51 = vadd.f32 %v6064_v22, %v5940_v7  ;;  %4830 = vtanh.f32 %v2532_v26 }
 0x2f4   : > { %v6098_v2 = vpop.f32.mrf.mxu1  ;;  %v6214_v52 = vmul.f32 %v2413_v31, %v6157_v23 }
 0x2f5   : > { %4832 = vtanh.f32 %v2533_v45  ;;  %v2474_v45 = vmul.f32 %v6153_v21, %v6095_v49  ;;  %v6638_v21 = vld [vmem:[#allocation30_spill] sm:$0xff] }
 0x2f6   : > { %v6121_v61 = vpop.f32.mrf.mxu1 }
 0x2f8   : > { %v6131_v9 = vpop.f32.mrf.mxu1 }
 0x2f9   : > { %6633 = vst [vmem:[#allocation56_spill] sm:$0xff] %v6131_v9  ;;  %v6143_v9 = vpop.f32.mrf.mxu0 }
 0x2fa   : > { %v2278_v47 = vpop.f32.mrf.mxu1 }
 0x2fb   : > { %v6169_v42 = vpop.f32.mrf.mxu0  ;;  %v2279_v63 = vadd.f32 %v2278_v47, %v5983_v33  ;;  %v2503_v47 = vadd.f32 %v2471_v20, %v6051_v53  ;;  %v4827_v53 = vpop.eup %4826  ;;  %v2416_v20 = vmul.f32 0.044715, %v6204_v51 }
 0x2fc   : > { %v2280_v40 = vpop.f32.mrf.mxu1 }
 0x2fd   : > { %v6189_v0 = vpop.f32.mrf.mxu0  ;;  %v2281_v25 = vadd.f32 %v2280_v40, %v5988_v59  ;;  %v2472_v40 = vmul.f32 %v2440_v24, %v6073_v44  ;;  %v6219_v24 = vmul.f32 %v2414_v16, %v6164_v48  ;;  %v2645_v36 = vmul.f32 %v6055_v32, %v2279_v63 }
 0x2fe   : > { %v2282_v57 = vpop.f32.mrf.mxu1  ;;  %v2535_v16 = vmul.f32 0.7978845, %v2503_v47 }
 0x2ff   : > { %v2283_v1 = vadd.f32 %v2282_v57, %v5999_v19  ;;  %v6200_v27 = vpop.f32.mrf.mxu0  ;;  %v2534_v19 = vmul.f32 0.7978845, %v2502_v37  ;;  %v2415_v57 = vmul.f32 0.044715, %v6187_v35  ;;  %v2646_v7 = vmul.f32 %v6059_v46, %v2281_v25  ;;  %v6636_v25 = vld [vmem:[#allocation45_spill] sm:$0xff] }
 0x300   : > { %v2284_v43 = vpop.f32.mrf.mxu1  ;;  %v6223_v37 = vmul.f32 %v2592_v39, %v6046_v4  ;;  %v2504_v46 = vadd.f32 %v2472_v40, %v6073_v44  ;;  %v6236_v32 = vadd.f32 %v6080_v62, %v6636_v25  ;;  %v6637_v62 = vld [vmem:[#allocation50_spill] sm:$0xff]  ;;  %v2506_v25 = vadd.f32 %v2474_v45, %v6095_v49 }
 0x301   : > { %v2285_v59 = vadd.f32 %v2284_v43, %v6016_v28  ;;  %v2647_v29 = vmul.f32 %v6061_v60, %v2283_v1  ;;  %v6210_v33 = vpop.f32.mrf.mxu0  ;;  %v2593_v28 = vadd.f32 1.0, %v4825_v18  ;;  %4834 = vtanh.f32 %v2534_v19 }
 0x302   : > { %v2288_v34 = vpop.f32.mrf.mxu1  ;;  %v2594_v19 = vadd.f32 1.0, %v4827_v53  ;;  %v6641_v53 = vld [vmem:[#allocation31_spill] sm:$0xff]  ;;  %4836 = vtanh.f32 %v2535_v16  ;;  %v6646_v16 = vld [vmem:[#allocation32_spill] sm:$0xff] }
 0x303   : > { %v2648_v22 = vmul.f32 %v6082_v5, %v2285_v59  ;;  %v6225_v26 = vpop.f32.mrf.mxu0  ;;  %v6232_v5 = vmul.f32 %v2415_v57, %v6187_v35  ;;  %v6238_v4 = vpack.c.bf16 %v2647_v29, %v2645_v36  ;;  %v6246_v39 = vmul.f32 %v2593_v28, %v6076_v3  ;;  %v4829_v57 = vpop.eup %4828  ;;  %v6639_v28 = vld [vmem:[#allocation46_spill] sm:$0xff]  ;;  %v6640_v36 = vld [vmem:[#allocation47_spill] sm:$0xff] }
 0x304   : > { %v2290_v60 = vpop.f32.mrf.mxu1  ;;  %v2289_v59 = vadd.f32 %v2288_v34, %v6637_v62  ;;  %v2448_v3 = vmul.f32 %v2416_v20, %v6204_v51  ;;  %v2536_v34 = vmul.f32 0.7978845, %v2504_v46 }
 0x305   : > { %v6228_v31 = vpack.c.bf16 %v2648_v22, %v2646_v7  ;;  %v6240_v18 = vpop.f32.mrf.mxu0  ;;  %v2291_v63 = vadd.f32 %v2290_v60, %v6057_v13  ;;  %v2473_v13 = vmul.f32 %v6150_v41, %v6091_v15  ;;  %v2476_v7 = vmul.f32 %v6183_v17, %v6119_v56 }
 0x306   : > { %v2292_v1 = vpop.f32.mrf.mxu1  ;;  %v6264_v22 = vmul.f32 0.044715, %v6236_v32  ;;  %v6268_v41 = vadd.f32 %v6098_v2, %v6639_v28  ;;  %v6642_v2 = vld [vmem:[#allocation52_spill] sm:$0xff]  ;;  %4838 = vtanh.f32 %v2536_v34  ;;  %v2538_v34 = vmul.f32 0.7978845, %v2506_v25 }
 0x307   : > { %v2293_v43 = vadd.f32 %v2292_v1, %v6066_v6  ;;  %2949 = vmatprep.mubr.bf16.mxu0 %v6228_v31  ;;  %v6252_v40 = vpop.f32.mrf.mxu0  ;;  %v2475_v6 = vmul.f32 %v6173_v11, %v6108_v30  ;;  %v6272_v11 = vadd.f32 %v6121_v61, %v6640_v36  ;;  %v2650_v17 = vmul.f32 %v6111_v8, %v2291_v63  ;;  %v6644_v28 = vld [vmem:[#allocation48_spill] sm:$0xff] }
 0x308   : > { %v2294_v29 = vpop.f32.mrf.mxu1  ;;  %2950 = vmatmul.mubr.bf16.vlgmr.msra.gmra.mxu0 %v6238_v4  ;;  %v2649_v1 = vmul.f32 %v6642_v2, %v2289_v59  ;;  %v6645_v36 = vld [vmem:[#allocation56_spill] sm:$0xff]  ;;  %v2508_v63 = vadd.f32 %v2476_v7, %v6119_v56  ;;  %v2418_v45 = vmul.f32 0.044715, %v6268_v41  ;;  %v6649_v2 = vld [vmem:[#allocation55_spill] sm:$0xff]  ;;  %v2478_v7 = vmul.f32 %v6219_v24, %v6164_v48 }
 0x309   : > { %v2295_v47 = vadd.f32 %v2294_v29, %v6084_v38  ;;  %4312 = vmatpush3.bf16.msra.mxu0 %v6638_v21  ;;  %v2651_v60 = vmul.f32 %v6129_v10, %v2293_v43  ;;  %v6276_v20 = vpop.f32.mrf.mxu0  ;;  %v6643_v29 = vld [vmem:[#allocation51_spill] sm:$0xff]  ;;  %v2505_v10 = vadd.f32 %v2473_v13, %v6091_v15  ;;  %v2507_v43 = vadd.f32 %v2475_v6, %v6108_v30  ;;  %v6648_v6 = vld [vmem:[#allocation33_spill] sm:$0xff] }
 0x30a   : > { %v2298_v38 = vpop.f32.mrf.mxu1  ;;  %4313 = vmatprep.subr.bf16.mxu0 %v6641_v53  ;;  %v6283_v61 = vmul.f32 %v2594_v19, %v6643_v29  ;;  %v6291_v8 = vadd.f32 %v6645_v36, %v6644_v28  ;;  %v2419_v59 = vmul.f32 0.044715, %v6272_v11  ;;  %v2595_v13 = vadd.f32 1.0, %v4829_v57  ;;  %v4831_v53 = vpop.eup %4830 }
 0x30b   : > { %v2652_v46 = vmul.f32 %v6141_v54, %v2295_v47  ;;  %v6285_v21 = vpop.f32.mrf.mxu0  ;;  %v6299_v47 = vpack.c.bf16 %v2651_v60, %v2649_v1  ;;  %v2537_v57 = vmul.f32 0.7978845, %v2505_v10  ;;  %v2539_v1 = vmul.f32 0.7978845, %v2507_v43 }
 0x30c   : > { %v2300_v62 = vpop.f32.mrf.mxu1  ;;  %v2540_v24 = vmul.f32 0.7978845, %v2508_v63  ;;  %v2451_v10 = vmul.f32 %v2419_v59, %v6272_v11  ;;  %4840 = vtanh.f32 %v2538_v34 }
 0x30d   : > { %v6293_v54 = vpack.c.bf16 %v2652_v46, %v2650_v17  ;;  %4314 = vmatpush3.bf16.msra.mxu0 %v6646_v16  ;;  %6647 = vst [vmem:[#allocation45_spill] sm:$0xff] %v6299_v47  ;;  %v2301_v29 = vadd.f32 %v2300_v62, %v6649_v2  ;;  %v6650_v46 = vld [vmem:[#allocation53_spill] sm:$0xff]  ;;  %v6309_v60 = vpop.f32.mrf.mxu0  ;;  %v2479_v62 = vmul.f32 %v6232_v5, %v6187_v35  ;;  %v6313_v16 = vpop.eup %4832  ;;  %v6652_v5 = vld [vmem:[#allocation35_spill] sm:$0xff]  ;;  %4842 = vtanh.f32 %v2539_v1 }
 0x30e   : > { %v2302_v19 = vpop.f32.mrf.mxu1  ;;  %4315 = vmatprep.subr.bf16.mxu0 %v6648_v6  ;;  %v2299_v28 = vadd.f32 %v2298_v38, %v6650_v46  ;;  %v2480_v38 = vmul.f32 %v2448_v3, %v6204_v51  ;;  %v4835_v6 = vpop.eup %4834  ;;  %v2450_v2 = vmul.f32 %v2418_v45, %v6268_v41  ;;  %v2510_v3 = vadd.f32 %v2478_v7, %v6164_v48 }
 0x30f   : > { %v2303_v17 = vadd.f32 %v2302_v19, %v6133_v14  ;;  %2959 = vmatprep.mubr.bf16.mxu0 %v6293_v54  ;;  %v2420_v14 = vmul.f32 0.044715, %v6291_v8  ;;  %v6651_v19 = vld [vmem:[#allocation34_spill] sm:$0xff]  ;;  %v6329_v59 = vpop.f32.mrf.mxu0  ;;  %4844 = vtanh.f32 %v2540_v24 }
 0x310   : > { %v2304_v36 = vpop.f32.mrf.mxu1  ;;  %2960 = vmatmul.mubr.bf16.gmra.mxu0 %v6299_v47  ;;  %v2477_v47 = vmul.f32 %v6214_v52, %v6157_v23  ;;  %v2653_v63 = vmul.f32 %v6160_v58, %v2299_v28  ;;  %v6653_v52 = vld [vmem:[#allocation36_spill] sm:$0xff]  ;;  %4846 = vtanh.f32 %v2537_v57  ;;  %v2542_v1 = vmul.f32 0.7978845, %v2510_v3 }
 0x311   : > { %v2305_v25 = vadd.f32 %v2304_v36, %v6143_v9  ;;  %4316 = vmatpush3.bf16.msra.mxu0 %v6651_v19  ;;  %v2655_v43 = vmul.f32 %v6176_v12, %v2303_v17  ;;  %v2654_v9 = vmul.f32 %v6167_v55, %v2301_v29  ;;  %v2596_v19 = vadd.f32 1.0, %v4831_v53  ;;  %v6654_v53 = vld [vmem:[#allocation37_spill] sm:$0xff]  ;;  %v6344_v57 = vpop.f32.mrf.mxu0 }
 0x312   : > { %v2308_v46 = vpop.f32.mrf.mxu1  ;;  %4317 = vmatprep.subr.bf16.mxu0 %v6652_v5  ;;  %v2511_v12 = vadd.f32 %v2479_v62, %v6187_v35  ;;  %v2452_v17 = vmul.f32 %v2420_v14, %v6291_v8  ;;  %v2512_v55 = vadd.f32 %v2480_v38, %v6204_v51  ;;  %v2509_v34 = vadd.f32 %v2477_v47, %v6157_v23  ;;  %v4837_v14 = vpop.eup %4836 }
 0x313   : > { %v2656_v36 = vmul.f32 %v6223_v37, %v2305_v25  ;;  %v2449_v37 = vmul.f32 %v6264_v22, %v6236_v32  ;;  %v2681_v58 = vpack.c.bf16 %v2655_v43, %v2653_v63  ;;  %v2482_v62 = vmul.f32 %v2450_v2, %v6268_v41  ;;  %v6655_v22 = vld [vmem:[#allocation54_spill] sm:$0xff] }
 0x314   : > { %v2310_v45 = vpop.f32.mrf.mxu1  ;;  %v2309_v25 = vadd.f32 %v2308_v46, %v6169_v42  ;;  %v2627_v24 = vmul.f32 %v2595_v13, %v6655_v22  ;;  %v2543_v47 = vmul.f32 0.7978845, %v2511_v12  ;;  %v2628_v43 = vmul.f32 %v2596_v19, %v6146_v50  ;;  %v4839_v42 = vpop.eup %4838 }
 0x315   : > { %v2682_v5 = vpack.c.bf16 %v2656_v36, %v2654_v9  ;;  %4318 = vmatpush3.bf16.msra.mxu0 %v6653_v52  ;;  %v2311_v7 = vadd.f32 %v2310_v45, %v6189_v0  ;;  %v2483_v0 = vmul.f32 %v2451_v10, %v6272_v11  ;;  %v6656_v9 = vld [vmem:[#allocation38_spill] sm:$0xff]  ;;  %v2544_v2 = vmul.f32 0.7978845, %v2512_v55  ;;  %v6657_v45 = vld [vmem:[#allocation39_spill] sm:$0xff] }
 0x316   : > { %v2312_v29 = vpop.f32.mrf.mxu1  ;;  %4319 = vmatprep.subr.bf16.mxu0 %v6654_v53  ;;  %v2484_v36 = vmul.f32 %v2452_v17, %v6291_v8  ;;  %v2598_v3 = vadd.f32 1.0, %v4835_v6  ;;  %v2541_v63 = vmul.f32 0.7978845, %v2509_v34  ;;  %v2481_v12 = vmul.f32 %v2449_v37, %v6236_v32  ;;  %v6356_v17 = vpop.f32.mrf.mxu0 }
 0x317   : > { %v2313_v28 = vadd.f32 %v2312_v29, %v6200_v27  ;;  %2969 = vmatprep.mubr.bf16.mxu0 %v2682_v5  ;;  %3286 = vmatprep.mubr.bf16.mxu1 %v2682_v5  ;;  %v2658_v10 = vmul.f32 %v6283_v61, %v2311_v7  ;;  %4848 = vtanh.f32 %v2542_v1  ;;  %v2514_v50 = vadd.f32 %v2482_v62, %v6268_v41  ;;  %v6659_v7 = vld [vmem:[#allocation41_spill] sm:$0xff] }
 0x318   : > { %v2314_v38 = vpop.f32.mrf.mxu1  ;;  %2970 = vmatmul.mubr.bf16.gmra.mxu0 %v2681_v58  ;;  %3287 = vmatmul.mubr.bf16.vlgmr.msra.gmra.mxu1 %v2681_v58  ;;  %v2599_v52 = vadd.f32 1.0, %v4837_v14  ;;  %4850 = vtanh.f32 %v2543_v47  ;;  %v2515_v6 = vadd.f32 %v2483_v0, %v6272_v11  ;;  %v2600_v29 = vadd.f32 1.0, %v4839_v42  ;;  %v6658_v58 = vld [vmem:[#allocation40_spill] sm:$0xff]  ;;  %v6663_v42 = vld [vmem:[#allocation42_spill] sm:$0xff] }
 0x319   : > { %v2315_v27 = vadd.f32 %v2314_v38, %v6210_v33  ;;  %4320 = vmatpush3.bf16.msra.mxu0 %v6656_v9  ;;  %v2659_v46 = vmul.f32 %v2627_v24, %v2313_v28  ;;  %v2657_v33 = vmul.f32 %v6246_v39, %v2309_v25  ;;  %4852 = vtanh.f32 %v2544_v2  ;;  %v4841_v25 = vpop.eup %4840  ;;  %v6661_v38 = vld [vmem:[#allocation58_spill] sm:$0xff] }
 0x31a   : > { %v2318_v13 = vpop.f32.mrf.mxu1  ;;  %4321 = vmatprep.subr.bf16.mxu0 %v6657_v45  ;;  %v2516_v61 = vadd.f32 %v2484_v36, %v6291_v8  ;;  %v2597_v37 = vadd.f32 1.0, %v6313_v16  ;;  %4854 = vtanh.f32 %v2541_v63  ;;  %v2513_v39 = vadd.f32 %v2481_v12, %v6236_v32  ;;  %v6660_v16 = vld [vmem:[#allocation49_spill] sm:$0xff]  ;;  %v6664_v12 = vld [vmem:[#allocation43_spill] sm:$0xff] }
 0x31b   : > { %v2660_v5 = vmul.f32 %v2628_v43, %v2315_v27  ;;  %v2683_v34 = vpack.c.bf16 %v2659_v46, %v2657_v33  ;;  %v2376_v62 = vmul.f32 0.5, %v6073_v44  ;;  %v2546_v14 = vmul.f32 0.7978845, %v2514_v50  ;;  %v6370_v27 = vpop.f32.mrf.mxu0  ;;  %v4843_v43 = vpop.eup %4842 }
 0x31c   : > { %v2320_v19 = vpop.f32.mrf.mxu1  ;;  %v2319_v22 = vadd.f32 %v2318_v13, %v6225_v26  ;;  %v2373_v24 = vmul.f32 0.5, %v6660_v16  ;;  %v2631_v47 = vmul.f32 %v2599_v52, %v6661_v38  ;;  %v2548_v36 = vmul.f32 0.7978845, %v2516_v61  ;;  %v4845_v26 = vpop.eup %4844 }
 0x31d   : > { %v2684_v55 = vpack.c.bf16 %v2660_v5, %v2658_v10  ;;  %4322 = vmatpush3.bf16.msra.mxu0 %v6658_v58  ;;  %v2321_v28 = vadd.f32 %v2320_v19, %v6240_v18  ;;  %v2547_v18 = vmul.f32 0.7978845, %v2515_v6  ;;  %v2632_v44 = vmul.f32 %v2600_v29, %v2376_v62  ;;  %v4847_v10 = vpop.eup %4846  ;;  %v2069_v52 = vpop.f32.mrf.mxu0  ;;  %v6665_v29 = vld [vmem:[#allocation44_spill] sm:$0xff] }
 0x31e   : > { %v2322_v53 = vpop.f32.mrf.mxu1  ;;  %4323 = vmatprep.subr.bf16.mxu0 %v6659_v7  ;;  %v2629_v46 = vmul.f32 %v2597_v37, %v2373_v24  ;;  %v2545_v45 = vmul.f32 0.7978845, %v2513_v39  ;;  %4856 = vtanh.f32 %v2546_v14  ;;  %v2601_v58 = vadd.f32 1.0, %v4847_v10 }
 0x31f   : > { %v2323_v1 = vadd.f32 %v2322_v53, %v6252_v40  ;;  %2979 = vmatprep.mubr.bf16.mxu0 %v2684_v55  ;;  %3294 = vmatprep.mubr.bf16.mxu1 %v2684_v55  ;;  %v6662_v40 = vld [vmem:[#allocation57_spill] sm:$0xff]  ;;  %4858 = vtanh.f32 %v2547_v18  ;;  %v2604_v55 = vadd.f32 1.0, %v4845_v26  ;;  %v2379_v37 = vmul.f32 0.5, %v6108_v30  ;;  %v2071_v30 = vpop.f32.mrf.mxu0 }
 0x320   : > { %v2324_v0 = vpop.f32.mrf.mxu1  ;;  %2980 = vmatmul.mubr.bf16.gmra.mxu0 %v2683_v34  ;;  %3295 = vmatmul.mubr.bf16.gmra.mxu1 %v2683_v34  ;;  %v2630_v9 = vmul.f32 %v2598_v3, %v6662_v40  ;;  %v2661_v33 = vmul.f32 %v2629_v46, %v2319_v22  ;;  %v2603_v3 = vadd.f32 1.0, %v4843_v43  ;;  %4860 = vtanh.f32 %v2548_v36 }
 0x321   : > { %v2325_v2 = vadd.f32 %v2324_v0, %v6276_v20  ;;  %4324 = vmatpush3.bf16.msra.mxu0 %v6663_v42  ;;  %v2663_v13 = vmul.f32 %v2631_v47, %v2323_v1  ;;  %v2602_v20 = vadd.f32 1.0, %v4841_v25  ;;  %4862 = vtanh.f32 %v2545_v45 }
 0x322   : > { %v2328_v63 = vpop.f32.mrf.mxu1  ;;  %4325 = vmatprep.subr.bf16.mxu0 %v6664_v12  ;;  %v2662_v5 = vmul.f32 %v2630_v9, %v2321_v28  ;;  %v2378_v39 = vmul.f32 0.5, %v6095_v49  ;;  %v2380_v28 = vmul.f32 0.5, %v6119_v56  ;;  %v2377_v14 = vmul.f32 0.5, %v6091_v15  ;;  %v2075_v15 = vpop.f32.mrf.mxu0 }
 0x323   : > { %v2664_v50 = vmul.f32 %v2632_v44, %v2325_v2  ;;  %v2685_v53 = vpack.c.bf16 %v2663_v13, %v2661_v33  ;;  %v2329_v62 = vadd.f32 %v2328_v63, %v6285_v21  ;;  %v2635_v25 = vmul.f32 %v2603_v3, %v2379_v37 }
 0x324   : > { %v2330_v19 = vpop.f32.mrf.mxu1  ;;  %v4849_v1 = vpop.eup %4848  ;;  %v2636_v24 = vmul.f32 %v2604_v55, %v2380_v28  ;;  %v2633_v38 = vmul.f32 %v2601_v58, %v2377_v14  ;;  %v2383_v46 = vmul.f32 0.5, %v6187_v35  ;;  %v2382_v63 = vmul.f32 0.5, %v6164_v48 }
 0x325   : > { %v2686_v6 = vpack.c.bf16 %v2664_v50, %v2662_v5  ;;  %4326 = vmatpush3.bf16.msra.mxu0 %v6665_v29  ;;  %v2331_v34 = vadd.f32 %v2330_v19, %v6309_v60  ;;  %v4851_v16 = vpop.eup %4850  ;;  %v2634_v60 = vmul.f32 %v2602_v20, %v2378_v39  ;;  %v2606_v2 = vadd.f32 1.0, %v4849_v1  ;;  %v2077_v19 = vpop.f32.mrf.mxu0 }
 0x326   : > { %v2332_v61 = vpop.f32.mrf.mxu1  ;;  %v2665_v21 = vmul.f32 %v2633_v38, %v2329_v62  ;;  %v2607_v9 = vadd.f32 1.0, %v4851_v16  ;;  %v2384_v12 = vmul.f32 0.5, %v6204_v51  ;;  %v2381_v50 = vmul.f32 0.5, %v6157_v23 }
 0x327   : > { %v2333_v7 = vadd.f32 %v2332_v61, %v6329_v59  ;;  %2989 = vmatprep.mubr.bf16.mxu0 %v2686_v6  ;;  %3302 = vmatprep.mubr.bf16.mxu1 %v2686_v6  ;;  %v4853_v59 = vpop.eup %4852  ;;  %v2666_v18 = vmul.f32 %v2634_v60, %v2331_v34  ;;  %v2638_v20 = vmul.f32 %v2606_v2, %v2382_v63  ;;  %v2387_v62 = vmul.f32 0.5, %v6272_v11  ;;  %v2694_v2 = vld [vmem:[#allocation3] sm:$0xff] }
 0x328   : > { %v2334_v22 = vpop.f32.mrf.mxu1  ;;  %2990 = vmatmul.mubr.bf16.gmra.mxu0 %v2685_v53  ;;  %3303 = vmatmul.mubr.bf16.gmra.mxu1 %v2685_v53  ;;  %v4855_v56 = vpop.eup %4854  ;;  %v2608_v36 = vadd.f32 1.0, %v4853_v59  ;;  %v2639_v33 = vmul.f32 %v2607_v9, %v2383_v46  ;;  %v2388_v16 = vmul.f32 0.5, %v6291_v8  ;;  %v2693_v8 = vld [vmem:[#allocation3 + $0xb0] sm:$0xff] }
 0x329   : > { %v2335_v49 = vadd.f32 %v2334_v22, %v6344_v57  ;;  %v2667_v47 = vmul.f32 %v2635_v25, %v2333_v7  ;;  %v2605_v42 = vadd.f32 1.0, %v4855_v56  ;;  %v2386_v22 = vmul.f32 0.5, %v6268_v41 }
 0x32a   : > { %v2338_v0 = vpop.f32.mrf.mxu1  ;;  %v2640_v6 = vmul.f32 %v2608_v36, %v2384_v12 }
 0x32b   : > { %v2668_v43 = vmul.f32 %v2636_v24, %v2335_v49  ;;  %v2687_v57 = vpack.c.bf16 %v2667_v47, %v2665_v21  ;;  %v4857_v10 = vpop.eup %4856  ;;  %v2339_v5 = vadd.f32 %v2338_v0, %v6356_v17  ;;  %v2079_v17 = vpop.f32.mrf.mxu0  ;;  %v2385_v49 = vmul.f32 0.5, %v6236_v32  ;;  %v6666_v32 = vld [vmem:[#allocation45_spill] sm:$0xff] }
 0x32c   : > { %v2340_v40 = vpop.f32.mrf.mxu1  ;;  %v4859_v35 = vpop.eup %4858  ;;  %v2610_v34 = vadd.f32 1.0, %v4857_v10 }
 0x32d   : > { %v2688_v44 = vpack.c.bf16 %v2668_v43, %v2666_v18  ;;  %v2341_v13 = vadd.f32 %v2340_v40, %v6370_v27  ;;  %v4861_v48 = vpop.eup %4860  ;;  %v2611_v23 = vadd.f32 1.0, %v4859_v35  ;;  %v2081_v24 = vpop.f32.mrf.mxu0 }
 0x32e   : > { %v2342_v26 = vpop.f32.mrf.mxu1  ;;  %v4863_v58 = vpop.eup %4862  ;;  %v2612_v7 = vadd.f32 1.0, %v4861_v48  ;;  %v2642_v47 = vmul.f32 %v2610_v34, %v2386_v22  ;;  %v2704_v34 = vld [vmem:[#allocation3 + $0xb8] sm:$0xff] }
 0x32f   : > { %v2343_v45 = vadd.f32 %v2342_v26, %v2069_v52  ;;  %2999 = vmatprep.mubr.bf16.mxu0 %v2688_v44  ;;  %3310 = vmatprep.mubr.bf16.mxu1 %v2688_v44  ;;  %v2637_v52 = vmul.f32 %v2605_v42, %v2381_v50  ;;  %v2670_v51 = vmul.f32 %v2638_v20, %v2341_v13  ;;  %v2609_v28 = vadd.f32 1.0, %v4863_v58  ;;  %v2695_v42 = vld [vmem:[#allocation3 + $0xd8] sm:$0xff]  ;;  %v2701_v20 = vld [vmem:[#allocation3 + $0x80] sm:$0xff] }
 0x330   : > { %v2344_v3 = vpop.f32.mrf.mxu1  ;;  %3000 = vmatmul.mubr.bf16.gmra.mxu0 %v2687_v57  ;;  %3311 = vmatmul.mubr.bf16.gmra.mxu1 %v2687_v57  ;;  %v2643_v59 = vmul.f32 %v2611_v23, %v2387_v62  ;;  %v2644_v11 = vmul.f32 %v2612_v7, %v2388_v16  ;;  %v2696_v57 = vld [vmem:[#allocation3 + $0x18] sm:$0xff]  ;;  %v3098_v58 = vld [vmem:[#allocation4 + $0x20] sm:$0xff] }
 0x331   : > { %v2345_v27 = vadd.f32 %v2344_v3, %v2071_v30  ;;  %v2671_v55 = vmul.f32 %v2639_v33, %v2343_v45  ;;  %v2669_v37 = vmul.f32 %v2637_v52, %v2339_v5  ;;  %v2641_v56 = vmul.f32 %v2609_v28, %v2385_v49  ;;  %v2699_v5 = vld [vmem:[#allocation3 + $0x30] sm:$0xff]  ;;  %v2702_v52 = vld [vmem:[#allocation3 + $0x88] sm:$0xff] }
 0x332   : > { %v2348_v29 = vpop.f32.mrf.mxu1 }
 0x333   : > { %v2672_v61 = vmul.f32 %v2640_v6, %v2345_v27  ;;  %v2689_v14 = vpack.c.bf16 %v2671_v55, %v2669_v37  ;;  %v2349_v60 = vadd.f32 %v2348_v29, %v2075_v15 }
 0x334   : > { %v2350_v53 = vpop.f32.mrf.mxu1 }
 0x335   : > { %v2690_v39 = vpack.c.bf16 %v2672_v61, %v2670_v51  ;;  %v2351_v25 = vadd.f32 %v2350_v53, %v2077_v19  ;;  %v2673_v21 = vmul.f32 %v2641_v56, %v2349_v60  ;;  %v2700_v19 = vld [vmem:[#allocation3 + $0x48] sm:$0xff]  ;;  %v2706_v60 = vld [vmem:[#allocation3 + $0xf0] sm:$0xff] }
 0x336   : > { %v2352_v1 = vpop.f32.mrf.mxu1  ;;  %v2703_v61 = vld [vmem:[#allocation3 + $0xe8] sm:$0xff] }
 0x337   : > { %v2353_v30 = vadd.f32 %v2352_v1, %v2079_v17  ;;  %3009 = vmatprep.mubr.bf16.mxu0 %v2690_v39  ;;  %3318 = vmatprep.mubr.bf16.mxu1 %v2690_v39  ;;  %v2674_v43 = vmul.f32 %v2642_v47, %v2351_v25  ;;  %v3099_v1 = vld [vmem:[#allocation4 + $0x28] sm:$0xff] }
 0x338   : > { %v2354_v38 = vpop.f32.mrf.mxu1  ;;  %3010 = vmatmul.mubr.bf16.gmra.mxu0 %v2689_v14  ;;  %3319 = vmatmul.mubr.bf16.gmra.mxu1 %v2689_v14  ;;  %v2705_v14 = vld [vmem:[#allocation3 + $0x60] sm:$0xff] }
 0x339   : > { %v2355_v0 = vadd.f32 %v2354_v38, %v2081_v24  ;;  %v2675_v18 = vmul.f32 %v2643_v59, %v2353_v30  ;;  %v3100_v38 = vld [vmem:[#allocation4 + $0x30] sm:$0xff] }
 0x33b   : > { %v2676_v41 = vmul.f32 %v2644_v11, %v2355_v0  ;;  %v2691_v9 = vpack.c.bf16 %v2675_v18, %v2673_v21  ;;  %v2707_v0 = vld [vmem:[#allocation3 + $0x8] sm:$0xff] }
 0x33d   : > { %v2692_v40 = vpack.c.bf16 %v2676_v41, %v2674_v43  ;;  %v2708_v41 = vld [vmem:[#allocation3 + $0x78] sm:$0xff] }
 0x33f   : > { %3019 = vmatprep.mubr.bf16.mxu0 %v2692_v40  ;;  %3326 = vmatprep.mubr.bf16.mxu1 %v2692_v40 }
 0x340   : > { %3020 = vmatmul.mubr.bf16.gmra.mxu0 %v2691_v9  ;;  %3327 = vmatmul.mubr.bf16.gmra.mxu1 %v2691_v9 }
 0x341   : > { %3270 = vmatprep.mubr.bf16.mxu0 %v6228_v31  ;;  %v2697_v31 = vld [vmem:[#allocation3 + $0x50] sm:$0xff] }
 0x348   : > { %3271 = vmatmul.mubr.bf16.vlgmr.msra.gmra.mxu0 %v6238_v4 }
 0x349   : > { %3278 = vmatprep.mubr.bf16.mxu0 %v6293_v54  ;;  %v2698_v54 = vld [vmem:[#allocation3 + $0x68] sm:$0xff] }
 0x350   : > { %3279 = vmatmul.mubr.bf16.gmra.mxu0 %v6666_v32  ;;  %v3101_v32 = vld [vmem:[#allocation4 + $0x38] sm:$0xff] }
 0x3c8   : > { %v2951_v15 = vpop.f32.mrf.mxu0 }
 0x3c9   : > { %v3030_v44 = vadd.f32 %v2951_v15, %v2693_v8  ;;  %v2709_v15 = vld [vmem:[#allocation3 + $0x38] sm:$0xff] }
 0x3ca   : > { %v2953_v36 = vpop.f32.mrf.mxu0 }
 0x3cb   : > { %3062 = vst [vmem:[#allocation3 + $0xb0] sm:$0xff] %v3030_v44  ;;  %v3031_v26 = vadd.f32 %v2953_v36, %v2694_v2 }
 0x3cc   : > { %v2955_v46 = vpop.f32.mrf.mxu0 }
 0x3cd   : > { %3063 = vst [vmem:[#allocation3] sm:$0xff] %v3031_v26  ;;  %v3032_v13 = vadd.f32 %v2955_v46, %v2695_v42  ;;  %v2710_v26 = vld [vmem:[#allocation3 + $0x58] sm:$0xff] }
 0x3ce   : > { %v2957_v63 = vpop.f32.mrf.mxu0 }
 0x3cf   : > { %3064 = vst [vmem:[#allocation3 + $0xd8] sm:$0xff] %v3032_v13  ;;  %v3033_v4 = vadd.f32 %v2957_v63, %v2696_v57  ;;  %v3102_v63 = vld [vmem:[#allocation4 + $0x40] sm:$0xff] }
 0x3d0   : > { %v2961_v45 = vpop.f32.mrf.mxu0 }
 0x3d1   : > { %3065 = vst [vmem:[#allocation3 + $0x18] sm:$0xff] %v3033_v4  ;;  %v3034_v12 = vadd.f32 %v2961_v45, %v2697_v31  ;;  %v2711_v4 = vld [vmem:[#allocation3 + $0x40] sm:$0xff] }
 0x3d2   : > { %v2963_v10 = vpop.f32.mrf.mxu0 }
 0x3d3   : > { %3066 = vst [vmem:[#allocation3 + $0x50] sm:$0xff] %v3034_v12  ;;  %v3035_v50 = vadd.f32 %v2963_v10, %v2698_v54 }
 0x3d4   : > { %v2965_v33 = vpop.f32.mrf.mxu0 }
 0x3d5   : > { %3067 = vst [vmem:[#allocation3 + $0x68] sm:$0xff] %v3035_v50  ;;  %v3036_v3 = vadd.f32 %v2965_v33, %v2699_v5  ;;  %v2712_v5 = vld [vmem:[#allocation3 + $0xc8] sm:$0xff] }
 0x3d6   : > { %v2967_v35 = vpop.f32.mrf.mxu0 }
 0x3d7   : > { %3068 = vst [vmem:[#allocation3 + $0x30] sm:$0xff] %v3036_v3  ;;  %v3037_v27 = vadd.f32 %v2967_v35, %v2700_v19  ;;  %v3103_v3 = vld [vmem:[#allocation4 + $0x48] sm:$0xff] }
 0x3d8   : > { %v2971_v6 = vpop.f32.mrf.mxu0  ;;  %v4339_v48 = vpop.f32.mrf.mxu1 }
 0x3d9   : > { %3069 = vst [vmem:[#allocation3 + $0x48] sm:$0xff] %v3037_v27  ;;  %v3038_v55 = vadd.f32 %v2971_v6, %v2701_v20  ;;  %v2713_v20 = vld [vmem:[#allocation3 + $0xe0] sm:$0xff] }
 0x3da   : > { %v2973_v29 = vpop.f32.mrf.mxu0  ;;  %v4340_v51 = vpop.f32.mrf.mxu1 }
 0x3db   : > { %3070 = vst [vmem:[#allocation3 + $0x80] sm:$0xff] %v3038_v55  ;;  %v3039_v37 = vadd.f32 %v2973_v29, %v2702_v52  ;;  %v4341_v17 = vadd.f32 %v4340_v51, %v4339_v48  ;;  %v2714_v55 = vld [vmem:[#allocation3 + $0x90] sm:$0xff] }
 0x3dc   : > { %v2975_v53 = vpop.f32.mrf.mxu0  ;;  %v4342_v23 = vpop.f32.mrf.mxu1 }
 0x3dd   : > { %3071 = vst [vmem:[#allocation3 + $0x88] sm:$0xff] %v3039_v37  ;;  %v3339_v39 = vadd.f32 %v4341_v17, %v3098_v58  ;;  %v3040_v7 = vadd.f32 %v2975_v53, %v2703_v61  ;;  %v3104_v61 = vld [vmem:[#allocation4 + $0x50] sm:$0xff] }
 0x3de   : > { %v2977_v28 = vpop.f32.mrf.mxu0  ;;  %v4343_v62 = vpop.f32.mrf.mxu1  ;;  %v2715_v17 = vld [vmem:[#allocation3 + $0x70] sm:$0xff] }
 0x3df   : > { %3356 = vst.msk [vmem:[#allocation4 + $0x20] sm:$0xff] %vm3351_vm1, %v3339_v39  ;;  %3072 = vst [vmem:[#allocation3 + $0xe8] sm:$0xff] %v3040_v7  ;;  %v3041_v25 = vadd.f32 %v2977_v28, %v2704_v34  ;;  %v4344_v22 = vadd.f32 %v4343_v62, %v4342_v23  ;;  %v2716_v7 = vld [vmem:[#allocation3 + $0xc0] sm:$0xff] }
 0x3e0   : > { %v2981_v30 = vpop.f32.mrf.mxu0  ;;  %v4345_v16 = vpop.f32.mrf.mxu1 }
 0x3e1   : > { %3073 = vst [vmem:[#allocation3 + $0xb8] sm:$0xff] %v3041_v25  ;;  %v3340_v49 = vadd.f32 %v4344_v22, %v3099_v1  ;;  %v3042_v24 = vadd.f32 %v2981_v30, %v2705_v14  ;;  %v3105_v14 = vld [vmem:[#allocation4 + $0x58] sm:$0xff]  ;;  %v2717_v22 = vld [vmem:[#allocation3 + $0xa8] sm:$0xff] }
 0x3e2   : > { %v2983_v59 = vpop.f32.mrf.mxu0  ;;  %v4346_v47 = vpop.f32.mrf.mxu1 }
 0x3e3   : > { %3357 = vst.msk [vmem:[#allocation4 + $0x28] sm:$0xff] %vm3351_vm1, %v3340_v49  ;;  %3074 = vst [vmem:[#allocation3 + $0x60] sm:$0xff] %v3042_v24  ;;  %v3043_v11 = vadd.f32 %v2983_v59, %v2706_v60  ;;  %v4347_v56 = vadd.f32 %v4346_v47, %v4345_v16  ;;  %v2718_v24 = vld [vmem:[#allocation3 + $0xd0] sm:$0xff] }
 0x3e4   : > { %v2985_v18 = vpop.f32.mrf.mxu0  ;;  %v4348_v43 = vpop.f32.mrf.mxu1 }
 0x3e5   : > { %3075 = vst [vmem:[#allocation3 + $0xf0] sm:$0xff] %v3043_v11  ;;  %v3341_v21 = vadd.f32 %v4347_v56, %v3100_v38  ;;  %v3044_v40 = vadd.f32 %v2985_v18, %v2707_v0  ;;  %v3106_v0 = vld [vmem:[#allocation4 + $0x60] sm:$0xff]  ;;  %v2719_v56 = vld [vmem:[#allocation3 + $0x10] sm:$0xff] }
 0x3e6   : > { %v2987_v9 = vpop.f32.mrf.mxu0  ;;  %v4349_v8 = vpop.f32.mrf.mxu1 }
 0x3e7   : > { %3358 = vst.msk [vmem:[#allocation4 + $0x30] sm:$0xff] %vm3351_vm1, %v3341_v21  ;;  %3076 = vst [vmem:[#allocation3 + $0x8] sm:$0xff] %v3044_v40  ;;  %v3045_v2 = vadd.f32 %v2987_v9, %v2708_v41  ;;  %v4350_v44 = vadd.f32 %v4349_v8, %v4348_v43  ;;  %v2720_v40 = vld [vmem:[#allocation3 + $0x28] sm:$0xff] }
 0x3e8   : > { %v2991_v36 = vpop.f32.mrf.mxu0  ;;  %v4351_v42 = vpop.f32.mrf.mxu1 }
 0x3e9   : > { %3077 = vst [vmem:[#allocation3 + $0x78] sm:$0xff] %v3045_v2  ;;  %v3342_v46 = vadd.f32 %v4350_v44, %v3101_v32  ;;  %v3046_v57 = vadd.f32 %v2991_v36, %v2709_v15  ;;  %v3107_v15 = vld [vmem:[#allocation4 + $0x68] sm:$0xff]  ;;  %v2721_v44 = vld [vmem:[#allocation3 + $0xa0] sm:$0xff] }
 0x3ea   : > { %v2993_v13 = vpop.f32.mrf.mxu0  ;;  %v4352_v31 = vpop.f32.mrf.mxu1 }
 0x3eb   : > { %3359 = vst.msk [vmem:[#allocation4 + $0x38] sm:$0xff] %vm3351_vm1, %v3342_v46  ;;  %3078 = vst [vmem:[#allocation3 + $0x38] sm:$0xff] %v3046_v57  ;;  %v3047_v45 = vadd.f32 %v2993_v13, %v2710_v26  ;;  %v4353_v54 = vadd.f32 %v4352_v31, %v4351_v42  ;;  %v2722_v57 = vld [vmem:[#allocation3 + $0xf8] sm:$0xff] }
 0x3ec   : > { %v2995_v12 = vpop.f32.mrf.mxu0  ;;  %v4354_v10 = vpop.f32.mrf.mxu1 }
 0x3ed   : > { %3079 = vst [vmem:[#allocation3 + $0x58] sm:$0xff] %v3047_v45  ;;  %v3343_v50 = vadd.f32 %v4353_v54, %v3102_v63  ;;  %v3048_v33 = vadd.f32 %v2995_v12, %v2711_v4  ;;  %v3108_v4 = vld [vmem:[#allocation4 + $0x70] sm:$0xff]  ;;  %v2723_v54 = vld [vmem:[#allocation3 + $0x20] sm:$0xff] }
 0x3ee   : > { %v2997_v19 = vpop.f32.mrf.mxu0  ;;  %v4355_v35 = vpop.f32.mrf.mxu1 }
 0x3ef   : > { %3360 = vst.msk [vmem:[#allocation4 + $0x40] sm:$0xff] %vm3351_vm1, %v3343_v50  ;;  %3080 = vst [vmem:[#allocation3 + $0x40] sm:$0xff] %v3048_v33  ;;  %v3049_v27 = vadd.f32 %v2997_v19, %v2712_v5  ;;  %v4356_v6 = vadd.f32 %v4355_v35, %v4354_v10  ;;  %v2724_v33 = vld [vmem:[#allocation3 + $0x98] sm:$0xff] }
 0x3f0   : > { %v3001_v48 = vpop.f32.mrf.mxu0  ;;  %v4357_v52 = vpop.f32.mrf.mxu1 }
 0x3f1   : > { %3081 = vst [vmem:[#allocation3 + $0xc8] sm:$0xff] %v3049_v27  ;;  %v3344_v29 = vadd.f32 %v4356_v6, %v3103_v3  ;;  %v3050_v58 = vadd.f32 %v3001_v48, %v2713_v20  ;;  %v3109_v20 = vld [vmem:[#allocation4 + $0x78] sm:$0xff] }
 0x3f2   : > { %v3003_v51 = vpop.f32.mrf.mxu0  ;;  %v4358_v37 = vpop.f32.mrf.mxu1 }
 0x3f3   : > { %3361 = vst.msk [vmem:[#allocation4 + $0x48] sm:$0xff] %vm3351_vm1, %v3344_v29  ;;  %3082 = vst [vmem:[#allocation3 + $0xe0] sm:$0xff] %v3050_v58  ;;  %v3051_v53 = vadd.f32 %v3003_v51, %v2714_v55  ;;  %v4359_v23 = vadd.f32 %v4358_v37, %v4357_v52  ;;  %v3094_v29 = vld [vmem:[#allocation4] sm:$0xff] }
 0x3f4   : > { %v3005_v34 = vpop.f32.mrf.mxu0  ;;  %v4360_v39 = vpop.f32.mrf.mxu1 }
 0x3f5   : > { %3083 = vst [vmem:[#allocation3 + $0x90] sm:$0xff] %v3051_v53  ;;  %v3345_v28 = vadd.f32 %v4359_v23, %v3104_v61  ;;  %v3052_v1 = vadd.f32 %v3005_v34, %v2715_v17  ;;  %v3095_v17 = vld [vmem:[#allocation4 + $0x8] sm:$0xff] }
 0x3f6   : > { %v3007_v62 = vpop.f32.mrf.mxu0  ;;  %v4361_v25 = vpop.f32.mrf.mxu1 }
 0x3f7   : > { %3362 = vst.msk [vmem:[#allocation4 + $0x50] sm:$0xff] %vm3351_vm1, %v3345_v28  ;;  %3084 = vst [vmem:[#allocation3 + $0x70] sm:$0xff] %v3052_v1  ;;  %v3053_v30 = vadd.f32 %v3007_v62, %v2716_v7  ;;  %v4362_v16 = vadd.f32 %v4361_v25, %v4360_v39  ;;  %v3096_v7 = vld [vmem:[#allocation4 + $0x10] sm:$0xff]  ;;  %v3097_v25 = vld [vmem:[#allocation4 + $0x18] sm:$0xff] }
 0x3f8   : > { %v3011_v60 = vpop.f32.mrf.mxu0  ;;  %v4363_v49 = vpop.f32.mrf.mxu1 }
 0x3f9   : > { %3085 = vst [vmem:[#allocation3 + $0xc0] sm:$0xff] %v3053_v30  ;;  %v3346_v59 = vadd.f32 %v4362_v16, %v3105_v14  ;;  %v3054_v38 = vadd.f32 %v3011_v60, %v2717_v22 }
 0x3fa   : > { %v3013_v47 = vpop.f32.mrf.mxu0  ;;  %v4364_v11 = vpop.f32.mrf.mxu1 }
 0x3fb   : > { %3363 = vst.msk [vmem:[#allocation4 + $0x58] sm:$0xff] %vm3351_vm1, %v3346_v59  ;;  %3086 = vst [vmem:[#allocation3 + $0xa8] sm:$0xff] %v3054_v38  ;;  %v3055_v18 = vadd.f32 %v3013_v47, %v2718_v24  ;;  %v4365_v43 = vadd.f32 %v4364_v11, %v4363_v49 }
 0x3fc   : > { %v3015_v41 = vpop.f32.mrf.mxu0  ;;  %v4366_v21 = vpop.f32.mrf.mxu1 }
 0x3fd   : > { %3087 = vst [vmem:[#allocation3 + $0xd0] sm:$0xff] %v3055_v18  ;;  %v3347_v9 = vadd.f32 %v4365_v43, %v3106_v0  ;;  %v3056_v32 = vadd.f32 %v3015_v41, %v2719_v56 }
 0x3fe   : > { %v3017_v8 = vpop.f32.mrf.mxu0  ;;  %v4367_v2 = vpop.f32.mrf.mxu1 }
 0x3ff   : > { %3364 = vst.msk [vmem:[#allocation4 + $0x60] sm:$0xff] %vm3351_vm1, %v3347_v9  ;;  %3088 = vst [vmem:[#allocation3 + $0x10] sm:$0xff] %v3056_v32  ;;  %v3057_v36 = vadd.f32 %v3017_v8, %v2720_v40  ;;  %v4368_v42 = vadd.f32 %v4367_v2, %v4366_v21 }
 0x400   : > { %v3021_v26 = vpop.f32.mrf.mxu0  ;;  %v4369_v46 = vpop.f32.mrf.mxu1 }
 0x401   : > { %3089 = vst [vmem:[#allocation3 + $0x28] sm:$0xff] %v3057_v36  ;;  %v3348_v13 = vadd.f32 %v4368_v42, %v3107_v15  ;;  %v3058_v63 = vadd.f32 %v3021_v26, %v2721_v44 }
 0x402   : > { %v3023_v31 = vpop.f32.mrf.mxu0  ;;  %v4370_v45 = vpop.f32.mrf.mxu1 }
 0x403   : > { %3365 = vst.msk [vmem:[#allocation4 + $0x68] sm:$0xff] %vm3351_vm1, %v3348_v13  ;;  %3090 = vst [vmem:[#allocation3 + $0xa0] sm:$0xff] %v3058_v63  ;;  %v3059_v12 = vadd.f32 %v3023_v31, %v2722_v57  ;;  %v4371_v10 = vadd.f32 %v4370_v45, %v4369_v46 }
 0x404   : > { %v3025_v5 = vpop.f32.mrf.mxu0  ;;  %v4372_v50 = vpop.f32.mrf.mxu1 }
 0x405   : > { %3091 = vst [vmem:[#allocation3 + $0xf8] sm:$0xff] %v3059_v12  ;;  %v3349_v19 = vadd.f32 %v4371_v10, %v3108_v4  ;;  %v3060_v3 = vadd.f32 %v3025_v5, %v2723_v54 }
 0x406   : > { %v3027_v35 = vpop.f32.mrf.mxu0  ;;  %v4373_v27 = vpop.f32.mrf.mxu1 }
 0x407   : > { %3366 = vst.msk [vmem:[#allocation4 + $0x70] sm:$0xff] %vm3351_vm1, %v3349_v19  ;;  %3092 = vst [vmem:[#allocation3 + $0x20] sm:$0xff] %v3060_v3  ;;  %v3061_v6 = vadd.f32 %v3027_v35, %v2724_v33  ;;  %v4374_v48 = vadd.f32 %v4373_v27, %v4372_v50 }
 0x408   : > { %v4327_v52 = vpop.f32.mrf.mxu0 }
 0x409   : > { %3093 = vst [vmem:[#allocation3 + $0x98] sm:$0xff] %v3061_v6  ;;  %v3350_v55 = vadd.f32 %v4374_v48, %v3109_v20 }
 0x40a   : > { %v4328_v58 = vpop.f32.mrf.mxu0 }
 0x40b   : > { %3367 = vst.msk [vmem:[#allocation4 + $0x78] sm:$0xff] %vm3351_vm1, %v3350_v55  ;;  %v4329_v51 = vadd.f32 %v4328_v58, %v4327_v52 }
 0x40c   : > { %v4330_v61 = vpop.f32.mrf.mxu0 }
 0x40d   : > { %v3335_v37 = vadd.f32 %v4329_v51, %v3094_v29 }
 0x40e   : > { %v4331_v53 = vpop.f32.mrf.mxu0 }
 0x40f   : > { %3352 = vst.msk [vmem:[#allocation4] sm:$0xff] %vm3351_vm1, %v3335_v37  ;;  %v4332_v23 = vadd.f32 %v4331_v53, %v4330_v61 }
 0x410   : > { %v4333_v34 = vpop.f32.mrf.mxu0 }
 0x411   : > { %v3336_v39 = vadd.f32 %v4332_v23, %v3095_v17 }
 0x412   : > { %v4334_v28 = vpop.f32.mrf.mxu0 }
 0x413   : > { %3353 = vst.msk [vmem:[#allocation4 + $0x8] sm:$0xff] %vm3351_vm1, %v3336_v39  ;;  %v4335_v1 = vadd.f32 %v4334_v28, %v4333_v34 }
 0x414   : > { %v4336_v62 = vpop.f32.mrf.mxu0 }
 0x415   : > { %v3337_v14 = vadd.f32 %v4335_v1, %v3096_v7 }
 0x416   : > { %v4337_v22 = vpop.f32.mrf.mxu0 }
 0x417   : > { %3354 = vst.msk [vmem:[#allocation4 + $0x10] sm:$0xff] %vm3351_vm1, %v3337_v14  ;;  %v4338_v30 = vadd.f32 %v4337_v22, %v4336_v62  ;;  %3371 = sbr.rel (%p4152_p6) target bundleno = 1283 (0x503), region = 118 }
 0x419   : > { %v3338_v16 = vadd.f32 %v4338_v30, %v3097_v25 }
 0x41b   : > { %3355 = vst.msk [vmem:[#allocation4 + $0x18] sm:$0xff] %vm3351_vm1, %v3338_v16 }
 0x41c   : > { %v3420_v60 = vld [vmem:[%s6667_s9] sm:$0xff]  ;;  %v5107_v59 = vmov 0.0   ;;  %v3405_v0 = vld [vmem:[#allocation4 + $0x8] sm:$0xff]  ;;  %v3414_v18 = vld [vmem:[#allocation4 + $0x50] sm:$0xff] }
 0x41d   : > { %v3422_v49 = vunpack.c.h.bf16 %v3420_v60  ;;  %v3421_v24 = vunpack.c.l.bf16 %v3420_v60  ;;  %3535 = vmatprep.mubr.f32.mxu0 %v5107_v59  ;;  %3583 = vmatprep.mubr.f32.mxu1 %v5107_v59  ;;  %v3404_v38 = vld [vmem:[#allocation4] sm:$0xff]  ;;  %v3413_v11 = vld [vmem:[#allocation4 + $0x48] sm:$0xff]  ;;  %v3415_v41 = vld [vmem:[#allocation4 + $0x58] sm:$0xff] }
 0x41e   : > { %v3412_v47 = vld [vmem:[#allocation4 + $0x40] sm:$0xff]  ;;  %v3406_v56 = vld [vmem:[#allocation4 + $0x10] sm:$0xff]  ;;  %v3409_v9 = vld [vmem:[#allocation4 + $0x28] sm:$0xff] }
 0x41f   : > { %3501 = vmatprep.subr.mxu0 %v3422_v49  ;;  %4407 = vmatprep.subr.mxu1 %v3422_v49  ;;  %v3408_v21 = vld [vmem:[#allocation4 + $0x20] sm:$0xff]  ;;  %v3417_v32 = vld [vmem:[#allocation4 + $0x68] sm:$0xff]  ;;  %v3410_v8 = vld [vmem:[#allocation4 + $0x30] sm:$0xff] }
 0x420   : > { %3502 = vmatpush1.msra.mxu0 %v3421_v24  ;;  %4408 = vmatpush1.msra.mxu1 %v3421_v24  ;;  %v3416_v40 = vld [vmem:[#allocation4 + $0x60] sm:$0xff]  ;;  %v3418_v15 = vld [vmem:[#allocation4 + $0x70] sm:$0xff]  ;;  %v3411_v2 = vld [vmem:[#allocation4 + $0x38] sm:$0xff] }
 0x421   : > { %4153 = vmatmul.mubr.msk.f32.vlgmr.msra.gmra.mxu0 %vm3351_vm1, %v3404_v38  ;;  %4161 = vmatmul.mubr.msk.f32.vlgmr.msra.gmra.mxu1 %vm3351_vm1, %v3412_v47  ;;  %v3419_v44 = vld [vmem:[#allocation4 + $0x78] sm:$0xff]  ;;  %v3372_v36 = vld [vmem:[#allocation3 + $0xb0] sm:$0xff]  ;;  %v3373_v57 = vld [vmem:[#allocation3] sm:$0xff] }
 0x422   : > { %3541 = vmatprep.mubr.f32.mxu0 %v5107_v59  ;;  %3589 = vmatprep.mubr.f32.mxu1 %v5107_v59  ;;  %v3407_v43 = vld [vmem:[#allocation4 + $0x18] sm:$0xff]  ;;  %v3390_v12 = vld [vmem:[#allocation3 + $0x40] sm:$0xff]  ;;  %v3391_v3 = vld [vmem:[#allocation3 + $0xc8] sm:$0xff] }
 0x423   : > { %v3388_v42 = vld [vmem:[#allocation3 + $0x38] sm:$0xff]  ;;  %v3376_v48 = vld [vmem:[#allocation3 + $0x50] sm:$0xff]  ;;  %v3392_v52 = vld [vmem:[#allocation3 + $0xe0] sm:$0xff] }
 0x424   : > { %v3389_v13 = vld [vmem:[#allocation3 + $0x58] sm:$0xff]  ;;  %v3377_v61 = vld [vmem:[#allocation3 + $0x68] sm:$0xff]  ;;  %v3393_v37 = vld [vmem:[#allocation3 + $0x90] sm:$0xff] }
 0x425   : > { %4154 = vmatmul.mubr.msk.f32.gmra.mxu0 %vm3351_vm1, %v3405_v0  ;;  %4162 = vmatmul.mubr.msk.f32.gmra.mxu1 %vm3351_vm1, %v3413_v11  ;;  %v3374_v54 = vld [vmem:[#allocation3 + $0xd8] sm:$0xff]  ;;  %v3378_v39 = vld [vmem:[#allocation3 + $0x30] sm:$0xff]  ;;  %v3379_v25 = vld [vmem:[#allocation3 + $0x48] sm:$0xff] }
 0x426   : > { %3547 = vmatprep.mubr.f32.mxu0 %v5107_v59  ;;  %3595 = vmatprep.mubr.f32.mxu1 %v5107_v59  ;;  %v3375_v19 = vld [vmem:[#allocation3 + $0x18] sm:$0xff]  ;;  %v3394_v7 = vld [vmem:[#allocation3 + $0x70] sm:$0xff]  ;;  %v3395_v22 = vld [vmem:[#allocation3 + $0xc0] sm:$0xff] }
 0x427   : > { %v3380_v24 = vld [vmem:[#allocation3 + $0x80] sm:$0xff] }
 0x429   : > { %4155 = vmatmul.mubr.msk.f32.gmra.mxu0 %vm3351_vm1, %v3406_v56  ;;  %4163 = vmatmul.mubr.msk.f32.gmra.mxu1 %vm3351_vm1, %v3414_v18  ;;  %v3381_v56 = vld [vmem:[#allocation3 + $0x88] sm:$0xff]  ;;  %v3397_v18 = vld [vmem:[#allocation3 + $0xd0] sm:$0xff] }
 0x42a   : > { %3553 = vmatprep.mubr.f32.mxu0 %v5107_v59  ;;  %3601 = vmatprep.mubr.f32.mxu1 %v5107_v59 }
 0x42d   : > { %4156 = vmatmul.mubr.msk.f32.gmra.mxu0 %vm3351_vm1, %v3407_v43  ;;  %4164 = vmatmul.mubr.msk.f32.gmra.mxu1 %vm3351_vm1, %v3415_v41 }
 0x42e   : > { %3559 = vmatprep.mubr.f32.mxu0 %v5107_v59  ;;  %3607 = vmatprep.mubr.f32.mxu1 %v5107_v59 }
 0x431   : > { %4157 = vmatmul.mubr.msk.f32.gmra.mxu0 %vm3351_vm1, %v3408_v21  ;;  %4165 = vmatmul.mubr.msk.f32.gmra.mxu1 %vm3351_vm1, %v3416_v40 }
 0x432   : > { %3565 = vmatprep.mubr.f32.mxu0 %v5107_v59  ;;  %3613 = vmatprep.mubr.f32.mxu1 %v5107_v59 }
 0x435   : > { %4158 = vmatmul.mubr.msk.f32.gmra.mxu0 %vm3351_vm1, %v3409_v9  ;;  %4166 = vmatmul.mubr.msk.f32.gmra.mxu1 %vm3351_vm1, %v3417_v32  ;;  %v3382_v9 = vld [vmem:[#allocation3 + $0xe8] sm:$0xff]  ;;  %v3398_v32 = vld [vmem:[#allocation3 + $0x10] sm:$0xff] }
 0x436   : > { %3571 = vmatprep.mubr.f32.mxu0 %v5107_v59  ;;  %3619 = vmatprep.mubr.f32.mxu1 %v5107_v59 }
 0x439   : > { %4159 = vmatmul.mubr.msk.f32.gmra.mxu0 %vm3351_vm1, %v3410_v8  ;;  %4167 = vmatmul.mubr.msk.f32.gmra.mxu1 %vm3351_vm1, %v3418_v15 }
 0x43a   : > { %3577 = vmatprep.mubr.f32.mxu0 %v5107_v59  ;;  %3625 = vmatprep.mubr.f32.mxu1 %v5107_v59  ;;  %v3396_v59 = vld [vmem:[#allocation3 + $0xa8] sm:$0xff] }
 0x43d   : > { %4160 = vmatmul.mubr.msk.f32.gmra.mxu0 %vm3351_vm1, %v3411_v2  ;;  %4168 = vmatmul.mubr.msk.f32.gmra.mxu1 %vm3351_vm1, %v3419_v44 }
 0x4e1   : > { %v3537_v26 = vpop.f32.mrf.mxu0  ;;  %v3585_v46 = vpop.f32.mrf.mxu1 }
 0x4e2   : > { %v3632_v63 = vadd.f32 %v3537_v26, %v3372_v36  ;;  %v3648_v31 = vadd.f32 %v3585_v46, %v3388_v42  ;;  %v3383_v36 = vld [vmem:[#allocation3 + $0xb8] sm:$0xff]  ;;  %v3399_v42 = vld [vmem:[#allocation3 + $0x28] sm:$0xff] }
 0x4e3   : > { %v3539_v4 = vpop.f32.mrf.mxu0  ;;  %v3587_v45 = vpop.f32.mrf.mxu1 }
 0x4e4   : > { %3664 = vst [vmem:[%s5444_s22] sm:$0xff] %v3632_v63  ;;  %3680 = vst [vmem:[%s5444_s22 + $0x80] sm:$0xff] %v3648_v31  ;;  %v3633_v10 = vadd.f32 %v3539_v4, %v3373_v57  ;;  %v3649_v5 = vadd.f32 %v3587_v45, %v3389_v13  ;;  %v3384_v63 = vld [vmem:[#allocation3 + $0x60] sm:$0xff] }
 0x4e5   : > { %v3543_v50 = vpop.f32.mrf.mxu0  ;;  %v3591_v33 = vpop.f32.mrf.mxu1  ;;  %v3400_v31 = vld [vmem:[#allocation3 + $0xa0] sm:$0xff] }
 0x4e6   : > { %3665 = vst [vmem:[%s5444_s22 + $0x8] sm:$0xff] %v3633_v10  ;;  %3681 = vst [vmem:[%s5444_s22 + $0x88] sm:$0xff] %v3649_v5  ;;  %v3634_v35 = vadd.f32 %v3543_v50, %v3374_v54  ;;  %v3650_v20 = vadd.f32 %v3591_v33, %v3390_v12  ;;  %v3385_v10 = vld [vmem:[#allocation3 + $0xf0] sm:$0xff]  ;;  %v3401_v5 = vld [vmem:[#allocation3 + $0xf8] sm:$0xff] }
 0x4e7   : > { %v3545_v27 = vpop.f32.mrf.mxu0  ;;  %v3593_v6 = vpop.f32.mrf.mxu1 }
 0x4e8   : > { %3666 = vst [vmem:[%s5444_s22 + $0x10] sm:$0xff] %v3634_v35  ;;  %3682 = vst [vmem:[%s5444_s22 + $0x90] sm:$0xff] %v3650_v20  ;;  %v3635_v55 = vadd.f32 %v3545_v27, %v3375_v19  ;;  %v3651_v29 = vadd.f32 %v3593_v6, %v3391_v3  ;;  %v3386_v35 = vld [vmem:[#allocation3 + $0x8] sm:$0xff]  ;;  %v3402_v20 = vld [vmem:[#allocation3 + $0x20] sm:$0xff] }
 0x4e9   : > { %v3549_v58 = vpop.f32.mrf.mxu0  ;;  %v3597_v51 = vpop.f32.mrf.mxu1 }
 0x4ea   : > { %3667 = vst [vmem:[%s5444_s22 + $0x18] sm:$0xff] %v3635_v55  ;;  %3683 = vst [vmem:[%s5444_s22 + $0x98] sm:$0xff] %v3651_v29  ;;  %v3636_v17 = vadd.f32 %v3549_v58, %v3376_v48  ;;  %v3652_v53 = vadd.f32 %v3597_v51, %v3392_v52  ;;  %v3387_v55 = vld [vmem:[#allocation3 + $0x78] sm:$0xff] }
 0x4eb   : > { %v3551_v23 = vpop.f32.mrf.mxu0  ;;  %v3599_v34 = vpop.f32.mrf.mxu1  ;;  %v3403_v29 = vld [vmem:[#allocation3 + $0x98] sm:$0xff] }
 0x4ec   : > { %3668 = vst [vmem:[%s5444_s22 + $0x20] sm:$0xff] %v3636_v17  ;;  %3684 = vst [vmem:[%s5444_s22 + $0xa0] sm:$0xff] %v3652_v53  ;;  %v3637_v28 = vadd.f32 %v3551_v23, %v3377_v61  ;;  %v3653_v1 = vadd.f32 %v3599_v34, %v3393_v37 }
 0x4ed   : > { %v3555_v62 = vpop.f32.mrf.mxu0  ;;  %v3603_v14 = vpop.f32.mrf.mxu1 }
 0x4ee   : > { %3669 = vst [vmem:[%s5444_s22 + $0x28] sm:$0xff] %v3637_v28  ;;  %3685 = vst [vmem:[%s5444_s22 + $0xa8] sm:$0xff] %v3653_v1  ;;  %v3638_v30 = vadd.f32 %v3555_v62, %v3378_v39  ;;  %v3654_v16 = vadd.f32 %v3603_v14, %v3394_v7 }
 0x4ef   : > { %v3557_v60 = vpop.f32.mrf.mxu0  ;;  %v3605_v49 = vpop.f32.mrf.mxu1 }
 0x4f0   : > { %3670 = vst [vmem:[%s5444_s22 + $0x30] sm:$0xff] %v3638_v30  ;;  %3686 = vst [vmem:[%s5444_s22 + $0xb0] sm:$0xff] %v3654_v16  ;;  %v3639_v38 = vadd.f32 %v3557_v60, %v3379_v25  ;;  %v3655_v47 = vadd.f32 %v3605_v49, %v3395_v22 }
 0x4f1   : > { %v3561_v0 = vpop.f32.mrf.mxu0  ;;  %v3609_v11 = vpop.f32.mrf.mxu1 }
 0x4f2   : > { %3671 = vst [vmem:[%s5444_s22 + $0x38] sm:$0xff] %v3639_v38  ;;  %3687 = vst [vmem:[%s5444_s22 + $0xb8] sm:$0xff] %v3655_v47  ;;  %v3640_v43 = vadd.f32 %v3561_v0, %v3380_v24  ;;  %v3656_v41 = vadd.f32 %v3609_v11, %v3396_v59 }
 0x4f3   : > { %v3563_v21 = vpop.f32.mrf.mxu0  ;;  %v3611_v40 = vpop.f32.mrf.mxu1 }
 0x4f4   : > { %3672 = vst [vmem:[%s5444_s22 + $0x40] sm:$0xff] %v3640_v43  ;;  %3688 = vst [vmem:[%s5444_s22 + $0xc0] sm:$0xff] %v3656_v41  ;;  %v3641_v8 = vadd.f32 %v3563_v21, %v3381_v56  ;;  %v3657_v15 = vadd.f32 %v3611_v40, %v3397_v18 }
 0x4f5   : > { %v3567_v2 = vpop.f32.mrf.mxu0  ;;  %v3615_v44 = vpop.f32.mrf.mxu1 }
 0x4f6   : > { %3673 = vst [vmem:[%s5444_s22 + $0x48] sm:$0xff] %v3641_v8  ;;  %3689 = vst [vmem:[%s5444_s22 + $0xc8] sm:$0xff] %v3657_v15  ;;  %v3642_v26 = vadd.f32 %v3567_v2, %v3382_v9  ;;  %v3658_v46 = vadd.f32 %v3615_v44, %v3398_v32 }
 0x4f7   : > { %v3569_v57 = vpop.f32.mrf.mxu0  ;;  %v3617_v13 = vpop.f32.mrf.mxu1 }
 0x4f8   : > { %3674 = vst [vmem:[%s5444_s22 + $0x50] sm:$0xff] %v3642_v26  ;;  %3690 = vst [vmem:[%s5444_s22 + $0xd0] sm:$0xff] %v3658_v46  ;;  %v3643_v4 = vadd.f32 %v3569_v57, %v3383_v36  ;;  %v3659_v45 = vadd.f32 %v3617_v13, %v3399_v42 }
 0x4f9   : > { %v3573_v54 = vpop.f32.mrf.mxu0  ;;  %v3621_v12 = vpop.f32.mrf.mxu1 }
 0x4fa   : > { %3675 = vst [vmem:[%s5444_s22 + $0x58] sm:$0xff] %v3643_v4  ;;  %3691 = vst [vmem:[%s5444_s22 + $0xd8] sm:$0xff] %v3659_v45  ;;  %v3644_v50 = vadd.f32 %v3573_v54, %v3384_v63  ;;  %v3660_v33 = vadd.f32 %v3621_v12, %v3400_v31 }
 0x4fb   : > { %v3575_v19 = vpop.f32.mrf.mxu0  ;;  %v3623_v3 = vpop.f32.mrf.mxu1 }
 0x4fc   : > { %3676 = vst [vmem:[%s5444_s22 + $0x60] sm:$0xff] %v3644_v50  ;;  %3692 = vst [vmem:[%s5444_s22 + $0xe0] sm:$0xff] %v3660_v33  ;;  %v3645_v27 = vadd.f32 %v3575_v19, %v3385_v10  ;;  %v3661_v6 = vadd.f32 %v3623_v3, %v3401_v5 }
 0x4fd   : > { %v3579_v48 = vpop.f32.mrf.mxu0  ;;  %v3627_v52 = vpop.f32.mrf.mxu1 }
 0x4fe   : > { %3677 = vst [vmem:[%s5444_s22 + $0x68] sm:$0xff] %v3645_v27  ;;  %3693 = vst [vmem:[%s5444_s22 + $0xe8] sm:$0xff] %v3661_v6  ;;  %v3646_v58 = vadd.f32 %v3579_v48, %v3386_v35  ;;  %v3662_v51 = vadd.f32 %v3627_v52, %v3402_v20 }
 0x4ff   : > { %v3581_v61 = vpop.f32.mrf.mxu0  ;;  %v3629_v37 = vpop.f32.mrf.mxu1 }
 0x500   : > { %3678 = vst [vmem:[%s5444_s22 + $0x70] sm:$0xff] %v3646_v58  ;;  %3694 = vst [vmem:[%s5444_s22 + $0xf0] sm:$0xff] %v3662_v51  ;;  %v3647_v17 = vadd.f32 %v3581_v61, %v3387_v55  ;;  %v3663_v53 = vadd.f32 %v3629_v37, %v3403_v29 }
 0x502   : > { %3679 = vst [vmem:[%s5444_s22 + $0x78] sm:$0xff] %v3647_v17  ;;  %3695 = vst [vmem:[%s5444_s22 + $0xf8] sm:$0xff] %v3663_v53 }
 0x503 PF: > { %s4199_s30 = sshll.u32 %s5084_s16, 12  ;;  %s6669_s26 = sld [smem:[#allocation66_spill]] }
 0x504   : > { %s3711_s7 = sshll.u32 %s5444_s22, 4  ;;  %s6478_s2 = scalar_lea.sflag [#allocation8], %s692_s20  ;;  %s6474_s7 = int_to_ptr.vmem [resolvable:$true] %s3711_s7 }
 0x505   : > { %s4968_s0 = scalar_lea.vmem %s6474_s7, 4096  ;;  %s5108_s16 = smov [#allocation14]  }
 0x506   : > { %p4969_p7 = scmp.ne.s32.totalorder %s6474_s7, %s4968_s0  ;;  %s4972_s17 = sshll.u32 %s5108_s16, 4  ;;  %s4973_s17 = int_to_ptr.vmem [resolvable:$false] %s4972_s17 }
 0x507   : > { %s4974_s28 = scalar_lea.vmem %s4973_s17, 8192  ;;  %p4975_p11 = scmp.lt.s32.totalorder %s6474_s7, %s4973_s17 }
 0x508   : > { %p4970_p9 = pnand %p4969_p7, %p5253_p12  ;;  %p4976_p13 = scmp.lt.s32.totalorder %s4974_s28, %s4968_s0 }
 0x509   : > { %s6471_s14 = scalar_lea.hbm %s6669_s26, %s4199_s30 }
 0x50a   : > { %p4971_p10 = pneg %p4970_p9  ;;  %p4977_p0 = por %p4976_p13, %p4975_p11 }
 0x50c   : > { %p4978_p2 = pnand %p4977_p0, %p4971_p10 }
 0x50e   : > { %4981 = shalt.err (!%p4978_p2)
}
 0x50f   : > { %s4982_s20 = scalar_lea.hbm %s6471_s14, 4096  ;;  %s4986_s21 = scalar_lea.hbm %s6669_s26, 8192 }
 0x510   : > { %p4983_p4 = scmp.ne.s32.totalorder %s6471_s14, %s4982_s20  ;;  %p4987_p8 = scmp.lt.s32.totalorder %s6471_s14, %s6669_s26 }
 0x511   : > { %p4988_p6 = scmp.lt.s32.totalorder %s4986_s21, %s4982_s20 }
 0x512   : > { %p4984_p3 = pnand %p4983_p4, %p5253_p12 }
 0x513   : > { %p4989_p7 = por %p4988_p6, %p4987_p8 }
 0x514   : > { %p4985_p5 = pneg %p4984_p3 }
 0x516   : > { %p4990_p9 = pnand %p4989_p7, %p4985_p5 }
 0x518   : > { %4993 = shalt.err (!%p4990_p9)
}
 0x519   : > { %s5109_s1 = smov 256   ;;  %s5110_s11 = smov 16  }
 0x51a   : > { %4417 = dma.vmem_to_hbm [thread:$0]  (%p5253_p12), %s6474_s7, 4096, %s6471_s14, %s6478_s2, %s5109_s1, %s5109_s1, %s5110_s11  }
 0x51b PF: > { %s6670_s29 = sld [smem:[#allocation19_spill]]  ;;  %p4423_p10 = scmp.ge.s32.totalorder %s5096_s19, 2 }
 0x51d   : > { %p4420_p11 = pnand %p4423_p10, %p5259_p1 }
 0x51f   : > { %p4421_p13 = pneg %p4420_p11 }
 0x521   : > { %s3726_s8 = sand.u32 1, %s6670_s29  }
 0x522   : > { %s3727_s23 = scalar_lea.sflag [#allocation8], %s3726_s8 }
 0x523   : > { %5051 = dma.done.wait (%p4421_p13), %s3727_s23, 4096  }
 0x524   : > { %5053 = vsyncadd (%p4421_p13), %s3727_s23, 4294963200  ;;  %s31_s19 = sadd.s32 1, %s5096_s19   ;;  %s6672_s9 = sld [smem:[#allocation20_spill]] }
 0x525   : > { %p28_p0 = scmp.ge.s32.totalorder %s31_s19, 10   ;;  %s6673_s11 = sld [smem:[#allocation27_spill]] }
 0x526   : > { %s6674_s15 = sld [smem:[#allocation21_spill]]  ;;  %s6680_s30 = smov %s5060_s10 }
 0x527   : > { %s6675_s14 = sld [smem:[#allocation26_spill]]  ;;  %s6682_s12 = smov %s5072_s13 }
 0x528   : > { %s6676_s27 = sld [smem:[#allocation22_spill]] }
 0x529   : > { %s6677_s16 = sld [smem:[#allocation23_spill]] }
 0x52a   : > { %s6678_s17 = sld [smem:[#allocation24_spill]]  ;;  %s6681_s10 = smov %s6672_s9 }
 0x52b   : > { %s6679_s18 = sld [smem:[#allocation25_spill]]  ;;  %30 = sbr.rel (!%p28_p0) target bundleno = 22 (0x16), region = 198 }
 0x52c   : > { %s6683_s13 = smov %s6674_s15 }
 0x52e   : > { %s6684_s15 = smov %s6676_s27 }
 0x530   :  { %3732 = vsyncpa [#allocation7], 1 }
 0x531   :  { %3734 = vsyncpa [#allocation7 + $0x1], 1 }
 0x532   :  { %3735 = vsyncpa [#allocation10], 1 }
 0x533   :  { %3737 = vsyncpa [#allocation10 + $0x1], 1 }
 0x534   :  { %3738 = vsyncpa [#allocation13], 1 }
 0x535   :  { %3740 = vsyncpa [#allocation13 + $0x1], 1 }
 0x536   :  { %3741 = vsyncpa [#allocation8], 1 }
 0x537   :  { %3743 = vsyncpa [#allocation8 + $0x1], 1 }

</bundles_post_ra>
